<compile_context>
chip_gen: v7x
topology: tpu7x:2x2x1
jax: 0.10.0
libtpu: 0.0.40
codegen_flags: <defaults>
</compile_context>

<pallas_src>
import functools

import numpy as np
import jax
import jax.numpy as jnp
from jax.experimental import pallas as pl
from jax.experimental.pallas import tpu as pltpu


# --------------------- shared math (kernel AND pure-JAX reference) ----------

_EPS = 1e-6  # LayerNorm eps from the spec


def _layernorm(v):
    mu = jnp.mean(v, axis=-1, keepdims=True)
    d = v - mu
    var = jnp.mean(d * d, axis=-1, keepdims=True)
    return d * jax.lax.rsqrt(var + _EPS)


def _silu(v):
    return v * jax.nn.sigmoid(v)


def _gelu_tanh(v):
    # nn.GELU(approximate='tanh') used inside the Mlp block.
    c = np.float32(np.sqrt(2.0 / np.pi))
    return 0.5 * v * (1.0 + jnp.tanh(c * (v + 0.044715 * v * v * v)))


def _gelu_erf(v, recip=None):
    # F.gelu default (exact, erf-based). erf via Abramowitz & Stegun 7.1.26,
    # |err| < 1.5e-7. `recip` lets the kernel route the divide to the EUP.
    u = v * np.float32(1.0 / np.sqrt(2.0))
    a1, a2, a3, a4, a5 = (0.254829592, -0.284496736, 1.421413741,
                          -1.453152027, 1.061405429)
    p = 0.3275911
    au = jnp.abs(u)
    den = 1.0 + p * au
    tt = recip(den) if recip is not None else 1.0 / den
    poly = ((((a5 * tt + a4) * tt + a3) * tt + a2) * tt + a1) * tt
    e = 1.0 - poly * jnp.exp(-au * au)
    erf_u = jnp.where(u < 0, -e, e)
    return 0.5 * v * (1.0 + erf_u)


def _sinusoid_freqs(hidden_dim, scale=10000.0):
    half = hidden_dim // 2
    exponent = -np.log(scale) * np.arange(half, dtype=np.float32) / (half - 1)
    return jnp.asarray(np.exp(exponent)[None, :], dtype=jnp.float32)  # (1, half)


def _round_up(a, m):
    return (a + m - 1) // m * m


def _default_vmem_limit():
    # Weight-resident kernels: use most of physical VMEM, leaving ~16% headroom
    # for compiler-internal scratch.  128 MiB (v5e/v6e) -> ~107 MiB;
    # 64 MiB (v7x) -> ~53 MiB.
    try:
        phys = int(pltpu.get_tpu_info().vmem_capacity_bytes)
    except Exception:  # unknown chip / emulator: conservative choice safe everywhere
        phys = 64 * 1024 * 1024
    return max(32 * 1024 * 1024, int(phys * 0.84))


def _choose_batch_tile(B, batch_tile):
    Br = _round_up(max(B, 1), 8)
    TB = max(8, min((batch_tile // 8) * 8, Br))
    # Keep >= 2 batch tiles when possible so the "parallel" batch axis can feed
    # both TensorCores on megacore parts (v7x).
    if Br // TB < 2 and Br >= 16:
        TB = _round_up((Br + 1) // 2, 8)
    B_pad = _round_up(max(B, 1), TB)
    return TB, B_pad


def _largest_tile_divisor(tb, cap):
    cap = max(8, (cap // 8) * 8)
    if tb <= cap:
        return tb
    for d in range(cap, 7, -8):
        if tb % d == 0:
            return d
    return 8


# ----------------------------- kernel A: prologue -----------------------------

def _dit_prologue_kernel(x_dim, z_dim, hidden_dim, mlp_chunk,
                         xzt_ref, freqs_ref,
                         wx_ref, bx_ref, wz_ref, bz_ref,
                         wt1s_ref, wt1c_ref, bt1_ref, wt2_ref, bt2_ref,
                         wada_ref, bada_ref,
                         wm1_ref, bm1_ref, wm2_ref, bm2_ref,
                         xs_ref):
    f32, bf16 = jnp.float32, jnp.bfloat16
    H = hidden_dim
    Hm = wm1_ref.shape[1]

    def mm(a, w):  # bf16 x bf16 matmul, f32 accumulation (MXU full-rate)
        return jnp.dot(a.astype(bf16), w, preferred_element_type=f32)

    slab = xzt_ref[...]                                   # (TB, PW) packed [x|z|t|0..]

    # ---- timestep embedding ([sin|cos] halves folded into the wt1 halves) ----
    tcol = slab[:, x_dim + z_dim:x_dim + z_dim + 1]       # (TB, 1)
    arg = tcol * freqs_ref[...]                           # (TB, half)
    ht = (mm(jnp.sin(arg), wt1s_ref[...]) +
          mm(jnp.cos(arg), wt1c_ref[...]) + bt1_ref[...])
    temb = mm(_silu(ht), wt2_ref[...]) + bt2_ref[...]

    # ---- conditioning + fused 6-way adaLN modulation --------------------------
    c = mm(slab, wz_ref[...]) + bz_ref[...] + temb        # z_emb(z) + t_emb
    sc = _silu(c).astype(bf16)
    mods = jnp.dot(sc, wada_ref[...], preferred_element_type=f32) + bada_ref[...]
    shift_msa = mods[:, 0 * H:1 * H]
    scale_msa = mods[:, 1 * H:2 * H]
    gate_msa = mods[:, 2 * H:3 * H]
    shift_mlp = mods[:, 3 * H:4 * H]
    scale_mlp = mods[:, 4 * H:5 * H]
    gate_mlp = mods[:, 5 * H:6 * H]

    # ---- DiT block -------------------------------------------------------------
    xh = mm(slab, wx_ref[...]) + bx_ref[...]              # x_emb(x)
    xh = xh + gate_msa * (_layernorm(xh) * (1.0 + scale_msa) + shift_msa)

    # Mlp (fc1 -> gelu(tanh) -> fc2), chunked over the 4H hidden dim so the
    # (TB, 4H) intermediate never lives in full.
    h_in = (_layernorm(xh) * (1.0 + scale_mlp) + shift_mlp).astype(bf16)
    mlp = None
    for c0 in range(0, Hm, mlp_chunk):
        c1 = min(c0 + mlp_chunk, Hm)
        hc = _gelu_tanh(jnp.dot(h_in, wm1_ref[:, c0:c1],
                                preferred_element_type=f32) + bm1_ref[:, c0:c1])
        part = jnp.dot(hc.astype(bf16), wm2_ref[c0:c1, :],
                       preferred_element_type=f32)
        mlp = part if mlp is None else mlp + part
    mlp = mlp + bm2_ref[...]

    xs_ref[...] = xh + gate_mlp * mlp


# --------------------------- kernel B: residual + out -------------------------

def _dit_residual_kernel(num_hidden,
                         xs_ref, wl_ref, bl_ref, wo_ref, bo_ref,
                         o_ref, acc_ref):
    f32, bf16 = jnp.float32, jnp.bfloat16
    layer = pl.program_id(1)

    @pl.when(layer == 0)
    def _load():
        acc_ref[...] = xs_ref[...]

    # one residual layer per grid step; its (H, H) weight is streamed per step
    if num_hidden > 0:
        xn = _layernorm(acc_ref[...])
        y = (jnp.dot(xn.astype(bf16), wl_ref[0], preferred_element_type=f32)
             + bl_ref[0] + xn)
        # divide -> EUP approximate reciprocal (frees VALU slots, esp. on v5e)
        acc_ref[...] = _gelu_erf(y, recip=lambda u: pl.reciprocal(u, approx=True))

    @pl.when(layer == pl.num_programs(1) - 1)
    def _project():
        o_ref[...] = (jnp.dot(acc_ref[...].astype(bf16), wo_ref[...],
                              preferred_element_type=f32) + bo_ref[...])


# --------------------------------- wrapper -----------------------------------

def dit_flow_forward(x, z, t, params, *, hidden_dim, num_layers,
                     batch_tile=1024, prologue_batch_tile=256,
                     mlp_chunk=2048, vmem_limit_bytes=None):
    f32, bf16 = jnp.float32, jnp.bfloat16
    B, x_dim = x.shape
    _, z_dim = z.shape
    H = hidden_dim
    half = H // 2
    Hm = 4 * H
    num_hidden = max(num_layers - 1, 0)
    layer_steps = max(num_hidden, 1)
    out_pad = _round_up(max(x_dim, 128), 128)  # lane-dense output slab

    if vmem_limit_bytes is None:
        vmem_limit_bytes = _default_vmem_limit()

    # ---- batch tiling --------------------------------------------------------
    TB_res, B_pad = _choose_batch_tile(B, batch_tile)
    TB_pro = _largest_tile_divisor(TB_res, prologue_batch_tile)

    # ---- pack x / z / t into one lane-dense (B_pad, PW) slab ------------------
    PW = _round_up(x_dim + z_dim + 1, 128)
    slab = jnp.zeros((B_pad, PW), f32)
    slab = slab.at[:B, :x_dim].set(x.astype(f32))
    slab = slab.at[:B, x_dim:x_dim + z_dim].set(z.astype(f32))
    slab = slab.at[:B, x_dim + z_dim].set(t.reshape(B).astype(f32))

    freqs = _sinusoid_freqs(H)

    # ---- weight prep: bf16 matrices, f32 biases, zero-padded to the slab ------
    wt1 = params["wt1"]
    wx_pad = jnp.zeros((PW, H), f32).at[:x_dim, :].set(params["wx"]).astype(bf16)
    wz_pad = jnp.zeros((PW, H), f32).at[x_dim:x_dim + z_dim, :].set(
        params["wz"]).astype(bf16)
    wo_pad = jnp.zeros((H, out_pad), f32).at[:, :x_dim].set(params["wo"]).astype(bf16)
    bo_pad = jnp.zeros((1, out_pad), f32).at[:, :x_dim].set(params["bo"])

    CONST = pl.Buffered(1)  # grid-invariant blocks: no double-buffering

    def const2(shape):
        return pl.BlockSpec(shape, lambda b: (0, 0), pipeline_mode=CONST)

    # ================= kernel A: prologue (embeddings + DiT block) =============
    pro_inputs = (
        slab, freqs,
        wx_pad, params["bx"].astype(f32),
        wz_pad, params["bz"].astype(f32),
        wt1[:half].astype(bf16), wt1[half:].astype(bf16), params["bt1"].astype(f32),
        params["wt2"].astype(bf16), params["bt2"].astype(f32),
        params["wada"].astype(bf16), params["bada"].astype(f32),
        params["wm1"].astype(bf16), params["bm1"].astype(f32),
        params["wm2"].astype(bf16), params["bm2"].astype(f32),
    )
    pro_in_specs = [
        pl.BlockSpec((TB_pro, PW), lambda b: (b, 0)),
        const2((1, half)),
        const2((PW, H)), const2((1, H)),
        const2((PW, H)), const2((1, H)),
        const2((half, H)), const2((half, H)), const2((1, H)),
        const2((H, H)), const2((1, H)),
        const2((H, 6 * H)), const2((1, 6 * H)),
        const2((H, Hm)), const2((1, Hm)),
        const2((Hm, H)), const2((1, H)),
    ]
    pro_flops = 2 * B_pad * (2 * PW * H + 2 * half * H + H * H + 6 * H * H
                             + 2 * H * Hm)
    pro_trans = B_pad * (2 * half + 2 * H + Hm)
    pro_bytes = (sum(int(np.prod(a.shape)) * a.dtype.itemsize for a in pro_inputs)
                 + B_pad * H * 4)

    xs = pl.pallas_call(
        functools.partial(_dit_prologue_kernel, x_dim, z_dim, H, mlp_chunk),
        out_shape=jax.ShapeDtypeStruct((B_pad, H), f32),
        grid_spec=pltpu.PrefetchScalarGridSpec(
            num_scalar_prefetch=0,
            grid=(B_pad // TB_pro,),
            in_specs=pro_in_specs,
            out_specs=pl.BlockSpec((TB_pro, H), lambda b: (b, 0)),
        ),
        compiler_params=pltpu.CompilerParams(
            dimension_semantics=("parallel",),
            vmem_limit_bytes=vmem_limit_bytes),
        cost_estimate=pl.CostEstimate(
            flops=int(pro_flops), transcendentals=int(pro_trans),
            bytes_accessed=int(pro_bytes)),
    )(*pro_inputs)

    # =============== kernel B: residual layer loop + x_out projection ==========
    res_inputs = (xs,
                  params["wl"].astype(bf16), params["bl"].astype(f32),
                  wo_pad, bo_pad)
    wl_mode = pl.Buffered(min(3, layer_steps))   # deeper pipeline for the stream
    res_in_specs = [
        pl.BlockSpec((TB_res, H), lambda b, l: (b, 0)),
        pl.BlockSpec((1, H, H), lambda b, l: (l, 0, 0), pipeline_mode=wl_mode),
        pl.BlockSpec((1, 1, H), lambda b, l: (l, 0, 0), pipeline_mode=wl_mode),
        pl.BlockSpec((H, out_pad), lambda b, l: (0, 0), pipeline_mode=CONST),
        pl.BlockSpec((1, out_pad), lambda b, l: (0, 0), pipeline_mode=CONST),
    ]
    n_tiles = B_pad // TB_res
    res_flops = 2 * B_pad * (num_hidden * H * H + H * out_pad)
    res_trans = B_pad * num_hidden * H
    # wl/bl are re-streamed once per batch tile (grid is (batch, layer))
    res_bytes = (B_pad * H * 4
                 + n_tiles * layer_steps * (H * H * 2 + H * 4)
                 + H * out_pad * 2 + out_pad * 4
                 + B_pad * out_pad * 4)

    out = pl.pallas_call(
        functools.partial(_dit_residual_kernel, num_hidden),
        out_shape=jax.ShapeDtypeStruct((B_pad, out_pad), f32),
        grid_spec=pltpu.PrefetchScalarGridSpec(
            num_scalar_prefetch=0,
            grid=(n_tiles, layer_steps),
            in_specs=res_in_specs,
            out_specs=pl.BlockSpec((TB_res, out_pad), lambda b, l: (b, 0)),
            scratch_shapes=[pltpu.VMEM((TB_res, H), f32)],   # residual stream
        ),
        compiler_params=pltpu.CompilerParams(
            dimension_semantics=("parallel", "arbitrary"),
            vmem_limit_bytes=vmem_limit_bytes),
        cost_estimate=pl.CostEstimate(
            flops=int(res_flops), transcendentals=int(res_trans),
            bytes_accessed=int(res_bytes)),
    )(*res_inputs)

    return out[:B, :x_dim]


# ----------------------------- reference & params ----------------------------

def reference_forward(x, z, t, params, *, hidden_dim, num_layers):
    """Plain-JAX mirror of the kernel math (same bf16 weight casts)."""
    H = hidden_dim
    half = H // 2
    f32, bf16 = jnp.float32, jnp.bfloat16

    def mm(a, w):
        return jnp.dot(a.astype(bf16), w.astype(bf16), preferred_element_type=f32)

    freqs = _sinusoid_freqs(H)
    arg = t.reshape(-1, 1).astype(f32) * freqs
    wt1 = params["wt1"]
    ht = mm(jnp.sin(arg), wt1[:half]) + mm(jnp.cos(arg), wt1[half:]) + params["bt1"]
    temb = mm(_silu(ht), params["wt2"]) + params["bt2"]

    c = mm(z, params["wz"]) + params["bz"] + temb
    sc = _silu(c)
    mods = mm(sc, params["wada"]) + params["bada"]
    shift_msa = mods[:, 0 * H:1 * H]
    scale_msa = mods[:, 1 * H:2 * H]
    gate_msa = mods[:, 2 * H:3 * H]
    shift_mlp = mods[:, 3 * H:4 * H]
    scale_mlp = mods[:, 4 * H:5 * H]
    gate_mlp = mods[:, 5 * H:6 * H]

    xh = mm(x, params["wx"]) + params["bx"]
    xh = xh + gate_msa * (_layernorm(xh) * (1.0 + scale_msa) + shift_msa)
    h = _layernorm(xh) * (1.0 + scale_mlp) + shift_mlp
    h = _gelu_tanh(mm(h, params["wm1"]) + params["bm1"])
    h = mm(h, params["wm2"]) + params["bm2"]
    xh = xh + gate_mlp * h

    for i in range(max(num_layers - 1, 0)):
        xn = _layernorm(xh)
        xh = _gelu_erf(mm(xn, params["wl"][i]) + params["bl"][i] + xn)

    return mm(xh, params["wo"]) + params["bo"]


def init_params(key, x_dim, z_dim, hidden_dim, num_layers):
    H = hidden_dim
    num_hidden = max(num_layers - 1, 0)
    L = max(num_hidden, 1)
    ks = jax.random.split(key, 11)

    def lin(k, din, dout):
        kw, kb = jax.random.split(k)
        w = jax.random.normal(kw, (din, dout), jnp.float32) / np.sqrt(din)
        b = jax.random.normal(kb, (1, dout), jnp.float32) * 0.02
        return w, b

    wx, bx = lin(ks[0], x_dim, H)
    wz, bz = lin(ks[1], z_dim, H)
    wt1, bt1 = lin(ks[2], H, H)
    wt2, bt2 = lin(ks[3], H, H)
    wada, bada = lin(ks[4], H, 6 * H)        # adaLN_modulation Linear(H, 6H)
    wm1, bm1 = lin(ks[6], H, 4 * H)
    wm2, bm2 = lin(ks[7], 4 * H, H)
    wl = jax.random.normal(ks[8], (L, H, H), jnp.float32) / np.sqrt(H)
    bl = jax.random.normal(ks[9], (L, 1, H), jnp.float32) * 0.02
    if num_hidden == 0:
        wl = jnp.zeros_like(wl)
        bl = jnp.zeros_like(bl)
    wo, bo = lin(ks[10], H, x_dim)
    return dict(wx=wx, bx=bx, wz=wz, bz=bz, wt1=wt1, bt1=bt1, wt2=wt2, bt2=bt2,
                wada=wada, bada=bada, wm1=wm1, bm1=bm1, wm2=wm2, bm2=bm2,
                wl=wl, bl=bl, wo=wo, bo=bo)


if __name__ == "__main__":
    B, x_dim, z_dim, hidden_dim, num_layers = 128, 4, 8, 64, 4

    key = jax.random.PRNGKey(0)
    kx, kz, kt, kp = jax.random.split(key, 4)
    x = jax.random.normal(kx, (B, x_dim), jnp.float32)
    z = jax.random.normal(kz, (B, z_dim), jnp.float32)
    t = jax.random.uniform(kt, (B,), jnp.float32)
    params = init_params(kp, x_dim, z_dim, hidden_dim, num_layers)

    # At this toy size: residual grid (2 batch tiles, 3 layer steps),
    # prologue grid (2 batch tiles).
    out = dit_flow_forward(x, z, t, params, hidden_dim=hidden_dim,
                           num_layers=num_layers)
    out = jax.block_until_ready(out)

    assert out.shape == (B, x_dim) and out.dtype == jnp.float32
    assert bool(jnp.all(jnp.isfinite(out)))

    ref = jax.block_until_ready(
        reference_forward(x, z, t, params, hidden_dim=hidden_dim,
                          num_layers=num_layers))
    err = float(jnp.max(jnp.abs(out - ref)))
    # bf16 matmuls + EUP approximate reciprocal inside gelu_erf -> loose abs tol
    assert err < 1e-1, f"kernel/reference mismatch: max abs err = {err}"
    print("KERNEL_OK")
</pallas_src>

<mosaic_0001>
module attributes {stable_mosaic.version = 11 : i64} {
  func.func @_dit_prologue_kernel(%arg0: i32, %arg1: memref<64x128xf32, #tpu.memory_space<vmem>>, %arg2: memref<1x32xf32, #tpu.memory_space<vmem>>, %arg3: memref<128x64xbf16, #tpu.memory_space<vmem>>, %arg4: memref<1x64xf32, #tpu.memory_space<vmem>>, %arg5: memref<128x64xbf16, #tpu.memory_space<vmem>>, %arg6: memref<1x64xf32, #tpu.memory_space<vmem>>, %arg7: memref<32x64xbf16, #tpu.memory_space<vmem>>, %arg8: memref<32x64xbf16, #tpu.memory_space<vmem>>, %arg9: memref<1x64xf32, #tpu.memory_space<vmem>>, %arg10: memref<64x64xbf16, #tpu.memory_space<vmem>>, %arg11: memref<1x64xf32, #tpu.memory_space<vmem>>, %arg12: memref<64x384xbf16, #tpu.memory_space<vmem>>, %arg13: memref<1x384xf32, #tpu.memory_space<vmem>>, %arg14: memref<64x256xbf16, #tpu.memory_space<vmem>>, %arg15: memref<1x256xf32, #tpu.memory_space<vmem>>, %arg16: memref<256x64xbf16, #tpu.memory_space<vmem>>, %arg17: memref<1x64xf32, #tpu.memory_space<vmem>>, %arg18: memref<64x64xf32, #tpu.memory_space<vmem>>) attributes {dimension_semantics = [#tpu.dimension_semantics<parallel>], iteration_bounds = array<i64: 2>, scalar_prefetch = 0 : i64, scratch_operands = 0 : i64, tpu.core_type = #tpu.core_type<tc>, window_params = [{transform_indices = @transform_0, window_bounds = array<i64: 64, 128>}, {pipeline_mode = #tpu.pipeline_mode<synchronous>, transform_indices = @transform_1, window_bounds = array<i64: 1, 32>}, {pipeline_mode = #tpu.pipeline_mode<synchronous>, transform_indices = @transform_2, window_bounds = array<i64: 128, 64>}, {pipeline_mode = #tpu.pipeline_mode<synchronous>, transform_indices = @transform_3, window_bounds = array<i64: 1, 64>}, {pipeline_mode = #tpu.pipeline_mode<synchronous>, transform_indices = @transform_4, window_bounds = array<i64: 128, 64>}, {pipeline_mode = #tpu.pipeline_mode<synchronous>, transform_indices = @transform_5, window_bounds = array<i64: 1, 64>}, {pipeline_mode = #tpu.pipeline_mode<synchronous>, transform_indices = @transform_6, window_bounds = array<i64: 32, 64>}, {pipeline_mode = #tpu.pipeline_mode<synchronous>, transform_indices = @transform_7, window_bounds = array<i64: 32, 64>}, {pipeline_mode = #tpu.pipeline_mode<synchronous>, transform_indices = @transform_8, window_bounds = array<i64: 1, 64>}, {pipeline_mode = #tpu.pipeline_mode<synchronous>, transform_indices = @transform_9, window_bounds = array<i64: 64, 64>}, {pipeline_mode = #tpu.pipeline_mode<synchronous>, transform_indices = @transform_10, window_bounds = array<i64: 1, 64>}, {pipeline_mode = #tpu.pipeline_mode<synchronous>, transform_indices = @transform_11, window_bounds = array<i64: 64, 384>}, {pipeline_mode = #tpu.pipeline_mode<synchronous>, transform_indices = @transform_12, window_bounds = array<i64: 1, 384>}, {pipeline_mode = #tpu.pipeline_mode<synchronous>, transform_indices = @transform_13, window_bounds = array<i64: 64, 256>}, {pipeline_mode = #tpu.pipeline_mode<synchronous>, transform_indices = @transform_14, window_bounds = array<i64: 1, 256>}, {pipeline_mode = #tpu.pipeline_mode<synchronous>, transform_indices = @transform_15, window_bounds = array<i64: 256, 64>}, {pipeline_mode = #tpu.pipeline_mode<synchronous>, transform_indices = @transform_16, window_bounds = array<i64: 1, 64>}, {transform_indices = @transform_17, window_bounds = array<i64: 64, 64>}]} {
    %c0 = arith.constant 0 : index
    %c0_0 = arith.constant 0 : index
    %0 = vector.load %arg1[%c0, %c0_0] : memref<64x128xf32, #tpu.memory_space<vmem>>, vector<64x128xf32>
    %1 = vector.extract_strided_slice %0 {offsets = [0, 12], sizes = [64, 1], strides = [1, 1]} : vector<64x128xf32> to vector<64x1xf32>
    %c0_1 = arith.constant 0 : index
    %c0_2 = arith.constant 0 : index
    %2 = vector.load %arg2[%c0_1, %c0_2] : memref<1x32xf32, #tpu.memory_space<vmem>>, vector<1x32xf32>
    %3 = vector.broadcast %1 : vector<64x1xf32> to vector<64x32xf32>
    %4 = vector.broadcast %2 : vector<1x32xf32> to vector<64x32xf32>
    %5 = arith.mulf %3, %4 : vector<64x32xf32>
    %6 = math.sin %5 : vector<64x32xf32>
    %c0_3 = arith.constant 0 : index
    %c0_4 = arith.constant 0 : index
    %7 = vector.load %arg7[%c0_3, %c0_4] : memref<32x64xbf16, #tpu.memory_space<vmem>>, vector<32x64xbf16>
    %8 = arith.truncf %6 : vector<64x32xf32> to vector<64x32xbf16>
    %cst = arith.constant dense<0.000000e+00> : vector<64x64xf32>
    %9 = tpu.matmul %8, %7, %cst {dimension_numbers = #tpu.dot_dimension_numbers<[1], [0], [0], [1], [0, 0, 1, 1], [], []>} : vector<64x32xbf16>, vector<32x64xbf16>, vector<64x64xf32> -> vector<64x64xf32>
    %10 = math.cos %5 : vector<64x32xf32>
    %c0_5 = arith.constant 0 : index
    %c0_6 = arith.constant 0 : index
    %11 = vector.load %arg8[%c0_5, %c0_6] : memref<32x64xbf16, #tpu.memory_space<vmem>>, vector<32x64xbf16>
    %12 = arith.truncf %10 : vector<64x32xf32> to vector<64x32xbf16>
    %cst_7 = arith.constant dense<0.000000e+00> : vector<64x64xf32>
    %13 = tpu.matmul %12, %11, %cst_7 {dimension_numbers = #tpu.dot_dimension_numbers<[1], [0], [0], [1], [0, 0, 1, 1], [], []>} : vector<64x32xbf16>, vector<32x64xbf16>, vector<64x64xf32> -> vector<64x64xf32>
    %14 = arith.addf %9, %13 : vector<64x64xf32>
    %c0_8 = arith.constant 0 : index
    %c0_9 = arith.constant 0 : index
    %15 = vector.load %arg9[%c0_8, %c0_9] : memref<1x64xf32, #tpu.memory_space<vmem>>, vector<1x64xf32>
    %16 = vector.broadcast %15 : vector<1x64xf32> to vector<64x64xf32>
    %17 = arith.addf %14, %16 : vector<64x64xf32>
    %18 = arith.negf %17 : vector<64x64xf32>
    %19 = math.exp %18 : vector<64x64xf32>
    %cst_10 = arith.constant 1.000000e+00 : f32
    %20 = vector.broadcast %cst_10 : f32 to vector<64x64xf32>
    %21 = arith.addf %20, %19 : vector<64x64xf32>
    %22 = arith.divf %20, %21 : vector<64x64xf32>
    %23 = arith.mulf %17, %22 : vector<64x64xf32>
    %c0_11 = arith.constant 0 : index
    %c0_12 = arith.constant 0 : index
    %24 = vector.load %arg10[%c0_11, %c0_12] : memref<64x64xbf16, #tpu.memory_space<vmem>>, vector<64x64xbf16>
    %25 = arith.truncf %23 : vector<64x64xf32> to vector<64x64xbf16>
    %cst_13 = arith.constant dense<0.000000e+00> : vector<64x64xf32>
    %26 = tpu.matmul %25, %24, %cst_13 {dimension_numbers = #tpu.dot_dimension_numbers<[1], [0], [0], [1], [0, 0, 1, 1], [], []>} : vector<64x64xbf16>, vector<64x64xbf16>, vector<64x64xf32> -> vector<64x64xf32>
    %c0_14 = arith.constant 0 : index
    %c0_15 = arith.constant 0 : index
    %27 = vector.load %arg11[%c0_14, %c0_15] : memref<1x64xf32, #tpu.memory_space<vmem>>, vector<1x64xf32>
    %28 = vector.broadcast %27 : vector<1x64xf32> to vector<64x64xf32>
    %29 = arith.addf %26, %28 : vector<64x64xf32>
    %c0_16 = arith.constant 0 : index
    %c0_17 = arith.constant 0 : index
    %30 = vector.load %arg5[%c0_16, %c0_17] : memref<128x64xbf16, #tpu.memory_space<vmem>>, vector<128x64xbf16>
    %31 = arith.truncf %0 : vector<64x128xf32> to vector<64x128xbf16>
    %cst_18 = arith.constant dense<0.000000e+00> : vector<64x64xf32>
    %32 = tpu.matmul %31, %30, %cst_18 {dimension_numbers = #tpu.dot_dimension_numbers<[1], [0], [0], [1], [0, 0, 1, 1], [], []>} : vector<64x128xbf16>, vector<128x64xbf16>, vector<64x64xf32> -> vector<64x64xf32>
    %c0_19 = arith.constant 0 : index
    %c0_20 = arith.constant 0 : index
    %33 = vector.load %arg6[%c0_19, %c0_20] : memref<1x64xf32, #tpu.memory_space<vmem>>, vector<1x64xf32>
    %34 = vector.broadcast %33 : vector<1x64xf32> to vector<64x64xf32>
    %35 = arith.addf %32, %34 : vector<64x64xf32>
    %36 = arith.addf %35, %29 : vector<64x64xf32>
    %37 = arith.negf %36 : vector<64x64xf32>
    %38 = math.exp %37 : vector<64x64xf32>
    %cst_21 = arith.constant 1.000000e+00 : f32
    %39 = vector.broadcast %cst_21 : f32 to vector<64x64xf32>
    %40 = arith.addf %39, %38 : vector<64x64xf32>
    %41 = arith.divf %39, %40 : vector<64x64xf32>
    %42 = arith.mulf %36, %41 : vector<64x64xf32>
    %43 = arith.truncf %42 : vector<64x64xf32> to vector<64x64xbf16>
    %c0_22 = arith.constant 0 : index
    %c0_23 = arith.constant 0 : index
    %44 = vector.load %arg12[%c0_22, %c0_23] : memref<64x384xbf16, #tpu.memory_space<vmem>>, vector<64x384xbf16>
    %cst_24 = arith.constant dense<0.000000e+00> : vector<64x384xf32>
    %45 = tpu.matmul %43, %44, %cst_24 {dimension_numbers = #tpu.dot_dimension_numbers<[1], [0], [0], [1], [0, 0, 1, 1], [], []>} : vector<64x64xbf16>, vector<64x384xbf16>, vector<64x384xf32> -> vector<64x384xf32>
    %c0_25 = arith.constant 0 : index
    %c0_26 = arith.constant 0 : index
    %46 = vector.load %arg13[%c0_25, %c0_26] : memref<1x384xf32, #tpu.memory_space<vmem>>, vector<1x384xf32>
    %47 = vector.broadcast %46 : vector<1x384xf32> to vector<64x384xf32>
    %48 = arith.addf %45, %47 : vector<64x384xf32>
    %49 = vector.extract_strided_slice %48 {offsets = [0, 0], sizes = [64, 64], strides = [1, 1]} : vector<64x384xf32> to vector<64x64xf32>
    %50 = vector.extract_strided_slice %48 {offsets = [0, 64], sizes = [64, 64], strides = [1, 1]} : vector<64x384xf32> to vector<64x64xf32>
    %51 = vector.extract_strided_slice %48 {offsets = [0, 128], sizes = [64, 64], strides = [1, 1]} : vector<64x384xf32> to vector<64x64xf32>
    %52 = vector.extract_strided_slice %48 {offsets = [0, 192], sizes = [64, 64], strides = [1, 1]} : vector<64x384xf32> to vector<64x64xf32>
    %53 = vector.extract_strided_slice %48 {offsets = [0, 256], sizes = [64, 64], strides = [1, 1]} : vector<64x384xf32> to vector<64x64xf32>
    %54 = vector.extract_strided_slice %48 {offsets = [0, 320], sizes = [64, 64], strides = [1, 1]} : vector<64x384xf32> to vector<64x64xf32>
    %c0_27 = arith.constant 0 : index
    %c0_28 = arith.constant 0 : index
    %55 = vector.load %arg3[%c0_27, %c0_28] : memref<128x64xbf16, #tpu.memory_space<vmem>>, vector<128x64xbf16>
    %56 = arith.truncf %0 : vector<64x128xf32> to vector<64x128xbf16>
    %cst_29 = arith.constant dense<0.000000e+00> : vector<64x64xf32>
    %57 = tpu.matmul %56, %55, %cst_29 {dimension_numbers = #tpu.dot_dimension_numbers<[1], [0], [0], [1], [0, 0, 1, 1], [], []>} : vector<64x128xbf16>, vector<128x64xbf16>, vector<64x64xf32> -> vector<64x64xf32>
    %c0_30 = arith.constant 0 : index
    %c0_31 = arith.constant 0 : index
    %58 = vector.load %arg4[%c0_30, %c0_31] : memref<1x64xf32, #tpu.memory_space<vmem>>, vector<1x64xf32>
    %59 = vector.broadcast %58 : vector<1x64xf32> to vector<64x64xf32>
    %60 = arith.addf %57, %59 : vector<64x64xf32>
    %cst_32 = arith.constant dense<0.000000e+00> : vector<64xf32>
    %61 = vector.multi_reduction <add>, %60, %cst_32 [1] : vector<64x64xf32> to vector<64xf32>
    %62 = vector.shape_cast %61 : vector<64xf32> to vector<64x1xf32>
    %cst_33 = arith.constant 6.400000e+01 : f32
    %63 = vector.broadcast %cst_33 : f32 to vector<64x1xf32>
    %64 = arith.divf %62, %63 : vector<64x1xf32>
    %65 = vector.broadcast %64 : vector<64x1xf32> to vector<64x64xf32>
    %66 = arith.subf %60, %65 : vector<64x64xf32>
    %67 = arith.mulf %66, %66 : vector<64x64xf32>
    %cst_34 = arith.constant dense<0.000000e+00> : vector<64xf32>
    %68 = vector.multi_reduction <add>, %67, %cst_34 [1] : vector<64x64xf32> to vector<64xf32>
    %69 = vector.shape_cast %68 : vector<64xf32> to vector<64x1xf32>
    %cst_35 = arith.constant 6.400000e+01 : f32
    %70 = vector.broadcast %cst_35 : f32 to vector<64x1xf32>
    %71 = arith.divf %69, %70 : vector<64x1xf32>
    %cst_36 = arith.constant 9.99999997E-7 : f32
    %72 = vector.broadcast %cst_36 : f32 to vector<64x1xf32>
    %73 = arith.addf %71, %72 : vector<64x1xf32>
    %74 = math.rsqrt %73 : vector<64x1xf32>
    %75 = vector.broadcast %74 : vector<64x1xf32> to vector<64x64xf32>
    %76 = arith.mulf %66, %75 : vector<64x64xf32>
    %cst_37 = arith.constant 1.000000e+00 : f32
    %77 = vector.broadcast %cst_37 : f32 to vector<64x64xf32>
    %78 = arith.addf %77, %50 : vector<64x64xf32>
    %79 = arith.mulf %76, %78 : vector<64x64xf32>
    %80 = arith.addf %79, %49 : vector<64x64xf32>
    %81 = arith.mulf %51, %80 : vector<64x64xf32>
    %82 = arith.addf %60, %81 : vector<64x64xf32>
    %cst_38 = arith.constant dense<0.000000e+00> : vector<64xf32>
    %83 = vector.multi_reduction <add>, %82, %cst_38 [1] : vector<64x64xf32> to vector<64xf32>
    %84 = vector.shape_cast %83 : vector<64xf32> to vector<64x1xf32>
    %cst_39 = arith.constant 6.400000e+01 : f32
    %85 = vector.broadcast %cst_39 : f32 to vector<64x1xf32>
    %86 = arith.divf %84, %85 : vector<64x1xf32>
    %87 = vector.broadcast %86 : vector<64x1xf32> to vector<64x64xf32>
    %88 = arith.subf %82, %87 : vector<64x64xf32>
    %89 = arith.mulf %88, %88 : vector<64x64xf32>
    %cst_40 = arith.constant dense<0.000000e+00> : vector<64xf32>
    %90 = vector.multi_reduction <add>, %89, %cst_40 [1] : vector<64x64xf32> to vector<64xf32>
    %91 = vector.shape_cast %90 : vector<64xf32> to vector<64x1xf32>
    %cst_41 = arith.constant 6.400000e+01 : f32
    %92 = vector.broadcast %cst_41 : f32 to vector<64x1xf32>
    %93 = arith.divf %91, %92 : vector<64x1xf32>
    %cst_42 = arith.constant 9.99999997E-7 : f32
    %94 = vector.broadcast %cst_42 : f32 to vector<64x1xf32>
    %95 = arith.addf %93, %94 : vector<64x1xf32>
    %96 = math.rsqrt %95 : vector<64x1xf32>
    %97 = vector.broadcast %96 : vector<64x1xf32> to vector<64x64xf32>
    %98 = arith.mulf %88, %97 : vector<64x64xf32>
    %cst_43 = arith.constant 1.000000e+00 : f32
    %99 = vector.broadcast %cst_43 : f32 to vector<64x64xf32>
    %100 = arith.addf %99, %53 : vector<64x64xf32>
    %101 = arith.mulf %98, %100 : vector<64x64xf32>
    %102 = arith.addf %101, %52 : vector<64x64xf32>
    %103 = arith.truncf %102 : vector<64x64xf32> to vector<64x64xbf16>
    %c0_44 = arith.constant 0 : index
    %c0_45 = arith.constant 0 : index
    %104 = vector.load %arg14[%c0_44, %c0_45] : memref<64x256xbf16, #tpu.memory_space<vmem>>, vector<64x256xbf16>
    %cst_46 = arith.constant dense<0.000000e+00> : vector<64x256xf32>
    %105 = tpu.matmul %103, %104, %cst_46 {dimension_numbers = #tpu.dot_dimension_numbers<[1], [0], [0], [1], [0, 0, 1, 1], [], []>} : vector<64x64xbf16>, vector<64x256xbf16>, vector<64x256xf32> -> vector<64x256xf32>
    %c0_47 = arith.constant 0 : index
    %c0_48 = arith.constant 0 : index
    %106 = vector.load %arg15[%c0_47, %c0_48] : memref<1x256xf32, #tpu.memory_space<vmem>>, vector<1x256xf32>
    %107 = vector.broadcast %106 : vector<1x256xf32> to vector<64x256xf32>
    %108 = arith.addf %105, %107 : vector<64x256xf32>
    %cst_49 = arith.constant 5.000000e-01 : f32
    %109 = vector.broadcast %cst_49 : f32 to vector<64x256xf32>
    %110 = arith.mulf %109, %108 : vector<64x256xf32>
    %cst_50 = arith.constant 4.471500e-02 : f32
    %111 = vector.broadcast %cst_50 : f32 to vector<64x256xf32>
    %112 = arith.mulf %111, %108 : vector<64x256xf32>
    %113 = arith.mulf %112, %108 : vector<64x256xf32>
    %114 = arith.mulf %113, %108 : vector<64x256xf32>
    %115 = arith.addf %108, %114 : vector<64x256xf32>
    %cst_51 = arith.constant 0.797884583 : f32
    %116 = vector.broadcast %cst_51 : f32 to vector<64x256xf32>
    %117 = arith.mulf %116, %115 : vector<64x256xf32>
    %118 = math.tanh %117 : vector<64x256xf32>
    %cst_52 = arith.constant 1.000000e+00 : f32
    %119 = vector.broadcast %cst_52 : f32 to vector<64x256xf32>
    %120 = arith.addf %119, %118 : vector<64x256xf32>
    %121 = arith.mulf %110, %120 : vector<64x256xf32>
    %122 = arith.truncf %121 : vector<64x256xf32> to vector<64x256xbf16>
    %c0_53 = arith.constant 0 : index
    %c0_54 = arith.constant 0 : index
    %123 = vector.load %arg16[%c0_53, %c0_54] : memref<256x64xbf16, #tpu.memory_space<vmem>>, vector<256x64xbf16>
    %cst_55 = arith.constant dense<0.000000e+00> : vector<64x64xf32>
    %124 = tpu.matmul %122, %123, %cst_55 {dimension_numbers = #tpu.dot_dimension_numbers<[1], [0], [0], [1], [0, 0, 1, 1], [], []>} : vector<64x256xbf16>, vector<256x64xbf16>, vector<64x64xf32> -> vector<64x64xf32>
    %c0_56 = arith.constant 0 : index
    %c0_57 = arith.constant 0 : index
    %125 = vector.load %arg17[%c0_56, %c0_57] : memref<1x64xf32, #tpu.memory_space<vmem>>, vector<1x64xf32>
    %126 = vector.broadcast %125 : vector<1x64xf32> to vector<64x64xf32>
    %127 = arith.addf %124, %126 : vector<64x64xf32>
    %128 = arith.mulf %54, %127 : vector<64x64xf32>
    %129 = arith.addf %82, %128 : vector<64x64xf32>
    %c0_58 = arith.constant 0 : index
    %c0_59 = arith.constant 0 : index
    %130 = vector.load %arg18[%c0_58, %c0_59] : memref<64x64xf32, #tpu.memory_space<vmem>>, vector<64x64xf32>
    tpu.vector_store %arg18[%c0_58, %c0_59], %129 {strides = array<i32>} : memref<64x64xf32, #tpu.memory_space<vmem>>, vector<64x64xf32>,
    return
  }
  func.func @transform_0(%arg0: i32) -> (i32, i32) {
    %c0_i32 = arith.constant 0 : i32
    %c0_i32_0 = arith.constant 0 : i32
    return %arg0, %c0_i32 : i32, i32
  }
  func.func @transform_1(%arg0: i32) -> (i32, i32) {
    %c0_i32 = arith.constant 0 : i32
    %c0_i32_0 = arith.constant 0 : i32
    %c0_i32_1 = arith.constant 0 : i32
    return %c0_i32, %c0_i32_0 : i32, i32
  }
  func.func @transform_2(%arg0: i32) -> (i32, i32) {
    %c0_i32 = arith.constant 0 : i32
    %c0_i32_0 = arith.constant 0 : i32
    %c0_i32_1 = arith.constant 0 : i32
    return %c0_i32, %c0_i32_0 : i32, i32
  }
  func.func @transform_3(%arg0: i32) -> (i32, i32) {
    %c0_i32 = arith.constant 0 : i32
    %c0_i32_0 = arith.constant 0 : i32
    %c0_i32_1 = arith.constant 0 : i32
    return %c0_i32, %c0_i32_0 : i32, i32
  }
  func.func @transform_4(%arg0: i32) -> (i32, i32) {
    %c0_i32 = arith.constant 0 : i32
    %c0_i32_0 = arith.constant 0 : i32
    %c0_i32_1 = arith.constant 0 : i32
    return %c0_i32, %c0_i32_0 : i32, i32
  }
  func.func @transform_5(%arg0: i32) -> (i32, i32) {
    %c0_i32 = arith.constant 0 : i32
    %c0_i32_0 = arith.constant 0 : i32
    %c0_i32_1 = arith.constant 0 : i32
    return %c0_i32, %c0_i32_0 : i32, i32
  }
  func.func @transform_6(%arg0: i32) -> (i32, i32) {
    %c0_i32 = arith.constant 0 : i32
    %c0_i32_0 = arith.constant 0 : i32
    %c0_i32_1 = arith.constant 0 : i32
    return %c0_i32, %c0_i32_0 : i32, i32
  }
  func.func @transform_7(%arg0: i32) -> (i32, i32) {
    %c0_i32 = arith.constant 0 : i32
    %c0_i32_0 = arith.constant 0 : i32
    %c0_i32_1 = arith.constant 0 : i32
    return %c0_i32, %c0_i32_0 : i32, i32
  }
  func.func @transform_8(%arg0: i32) -> (i32, i32) {
    %c0_i32 = arith.constant 0 : i32
    %c0_i32_0 = arith.constant 0 : i32
    %c0_i32_1 = arith.constant 0 : i32
    return %c0_i32, %c0_i32_0 : i32, i32
  }
  func.func @transform_9(%arg0: i32) -> (i32, i32) {
    %c0_i32 = arith.constant 0 : i32
    %c0_i32_0 = arith.constant 0 : i32
    %c0_i32_1 = arith.constant 0 : i32
    return %c0_i32, %c0_i32_0 : i32, i32
  }
  func.func @transform_10(%arg0: i32) -> (i32, i32) {
    %c0_i32 = arith.constant 0 : i32
    %c0_i32_0 = arith.constant 0 : i32
    %c0_i32_1 = arith.constant 0 : i32
    return %c0_i32, %c0_i32_0 : i32, i32
  }
  func.func @transform_11(%arg0: i32) -> (i32, i32) {
    %c0_i32 = arith.constant 0 : i32
    %c0_i32_0 = arith.constant 0 : i32
    %c0_i32_1 = arith.constant 0 : i32
    return %c0_i32, %c0_i32_0 : i32, i32
  }
  func.func @transform_12(%arg0: i32) -> (i32, i32) {
    %c0_i32 = arith.constant 0 : i32
    %c0_i32_0 = arith.constant 0 : i32
    %c0_i32_1 = arith.constant 0 : i32
    return %c0_i32, %c0_i32_0 : i32, i32
  }
  func.func @transform_13(%arg0: i32) -> (i32, i32) {
    %c0_i32 = arith.constant 0 : i32
    %c0_i32_0 = arith.constant 0 : i32
    %c0_i32_1 = arith.constant 0 : i32
    return %c0_i32, %c0_i32_0 : i32, i32
  }
  func.func @transform_14(%arg0: i32) -> (i32, i32) {
    %c0_i32 = arith.constant 0 : i32
    %c0_i32_0 = arith.constant 0 : i32
    %c0_i32_1 = arith.constant 0 : i32
    return %c0_i32, %c0_i32_0 : i32, i32
  }
  func.func @transform_15(%arg0: i32) -> (i32, i32) {
    %c0_i32 = arith.constant 0 : i32
    %c0_i32_0 = arith.constant 0 : i32
    %c0_i32_1 = arith.constant 0 : i32
    return %c0_i32, %c0_i32_0 : i32, i32
  }
  func.func @transform_16(%arg0: i32) -> (i32, i32) {
    %c0_i32 = arith.constant 0 : i32
    %c0_i32_0 = arith.constant 0 : i32
    %c0_i32_1 = arith.constant 0 : i32
    return %c0_i32, %c0_i32_0 : i32, i32
  }
  func.func @transform_17(%arg0: i32) -> (i32, i32) {
    %c0_i32 = arith.constant 0 : i32
    %c0_i32_0 = arith.constant 0 : i32
    return %arg0, %c0_i32 : i32, i32
  }
}

</mosaic_0001>

<bundles_post_ra>
// kernel: tpu_custom_call.1
= control target key start
LH: loop header
LB: loop body
LE: loop exit
PB: predicated region body
PF: predicated region fallthrough
CT: control target
= control target key end

     0   :  { %s7010_s0 = inlined_call_operand.vmem [shape: f32[128,128], index: 0, kind: input, shape index: {}]   ;;  %s7011_s1 = inlined_call_operand.hbm [shape: f32[1,32], index: 1, kind: input, shape index: {}]   ;;  %s7012_s2 = inlined_call_operand.vmem [shape: bf16[128,64], index: 2, kind: input, shape index: {}]   ;;  %s7013_s3 = inlined_call_operand.vmem [shape: f32[1,64], index: 3, kind: input, shape index: {}]   ;;  %s7014_s4 = inlined_call_operand.vmem [shape: bf16[128,64], index: 4, kind: input, shape index: {}]   ;;  %s7015_s5 = inlined_call_operand.hbm [shape: f32[1,64], index: 5, kind: input, shape index: {}]   ;;  %s7016_s6 = inlined_call_operand.vmem [shape: bf16[32,64], index: 6, kind: input, shape index: {}]   ;;  %s7017_s7 = inlined_call_operand.hbm [shape: bf16[32,64], index: 7, kind: input, shape index: {}]   ;;  %s7018_s8 = inlined_call_operand.vmem [shape: f32[1,64], index: 8, kind: input, shape index: {}]   ;;  %s7019_s9 = inlined_call_operand.hbm [shape: bf16[64,64], index: 9, kind: input, shape index: {}]   ;;  %s7020_s10 = inlined_call_operand.vmem [shape: f32[1,64], index: 10, kind: input, shape index: {}]   ;;  %s7021_s11 = inlined_call_operand.vmem [shape: bf16[64,384], index: 11, kind: input, shape index: {}]   ;;  %s7022_s12 = inlined_call_operand.vmem [shape: f32[1,384], index: 12, kind: input, shape index: {}]   ;;  %s7023_s13 = inlined_call_operand.vmem [shape: bf16[64,256], index: 13, kind: input, shape index: {}]   ;;  %s7024_s14 = inlined_call_operand.vmem [shape: f32[1,256], index: 14, kind: input, shape index: {}]   ;;  %s7025_s15 = inlined_call_operand.vmem [shape: bf16[256,64], index: 15, kind: input, shape index: {}]   ;;  %s7026_s16 = inlined_call_operand.vmem [shape: f32[1,64], index: 16, kind: input, shape index: {}]   ;;  %s7027_s17 = inlined_call_operand.vmem [shape: f32[128,64], index: 17, kind: output, shape index: {}]  }
   0x1   :  { %7037 = sst [smem:[#allocation12_spill]] %s7010_s0 }
   0x2   :  { %7038 = sst [smem:[#allocation13_spill]] %s7011_s1 }
   0x3   :  { %7039 = sst [smem:[#allocation14_spill]] %s7024_s14 }
   0x4   :  { %7040 = sst [smem:[#allocation15_spill]] %s7025_s15 }
   0x5   :  { %7041 = sst [smem:[#allocation16_spill]] %s7026_s16 }
   0x6   :  { %7042 = sst [smem:[#allocation17_spill]] %s7027_s17 }
   0x7   :  { %22 = vsyncpa [#allocation3], 0 }
   0x8   :  { %23 = vsyncpa [#allocation5], 0 }
   0x9   :  { %24 = vsyncpa [#allocation8], 0  ;;  %s5304_s24 = smov 0  }
   0xa LB: > { %s5199_s25 = smov [#allocation4]   ;;  %s7029_s27 = sadd.s32 4294967295, %s5197_s24   ;;  %s5197_s24 = sphi %s5304_s24, %s30_s24  }
   0xb   : > { %s456_s26 = sshll.u32 %s5199_s25, 4  ;;  %p4330_p0 = scmp.ge.s32.totalorder %s5197_s24, 1  ;;  %s5318_s26 = int_to_ptr.vmem [resolvable:$true] %s456_s26 }
   0xc   : > { %p423_p1 = scmp.lt.s32.totalorder %s5197_s24, 3  ;;  %p5314_p2 = scmp.eq.s32.totalorder %s7029_s27, 0 }
   0xd   : > { %s5200_s0 = smov [#allocation2]   ;;  %s5201_s18 = smov [#allocation6]  }
   0xe   : > { %s7043_s28 = scalar_select %p5314_p2, 1, 0 }
   0xf   : > { %p5320_p3 = pnand %p4330_p0, %p423_p1  ;;  %s436_s30 = sshll.u32 %s5200_s0, 4  ;;  %s5326_s30 = int_to_ptr.vmem [resolvable:$true] %s436_s30 }
  0x10   : > { %s469_s19 = sshll.u32 %s5201_s18, 4  ;;  %s5202_s20 = smov [#allocation7]   ;;  %s5334_s19 = int_to_ptr.vmem [resolvable:$true] %s469_s19 }
  0x11   : > { %s7044_s29 = scalar_select %p5320_p3, 1, 0 }
  0x12   : > { %p4793_p4 = pneg %p5320_p3  ;;  %s5336_s21 = sshll.u32 %s5202_s20, 4  ;;  %s486_s21 = int_to_ptr.vmem [resolvable:$true] %s5336_s21 }
  0x13   : > { %s5067_s25 = scalar_lea.hbm %s7015_s5, 16 }
  0x14   : > { %p5330_p5 = pnand %p5314_p2, %p4793_p4  ;;  %p5068_p6 = scmp.ne.s32.totalorder %s7015_s5, %s5067_s25 }
  0x15   : > { %p5074_p10 = scmp.lt.u32.totalorder %s5067_s25, %s7015_s5 }
  0x16   : > { %p5346_p7 = pneg %p5330_p5 }
  0x18   : > { %p5070_p8 = pnand %p5346_p7, %p5068_p6 }
  0x1a   : > { %p5071_p9 = pneg %p5070_p8 }
  0x1c   : > { %p5076_p11 = pnand %p5074_p10, %p5071_p9 }
  0x1e   : > { %5079 = shalt.err (!%p5076_p11)
}
  0x1f   : > { %s5080_s27 = scalar_lea.vmem %s5318_s26, 16  ;;  %s5087_s22 = scalar_lea.vmem %s5318_s26, 32 }
  0x20   : > { %p5081_p12 = scmp.ne.s32.totalorder %s5318_s26, %s5080_s27  ;;  %p5088_p1 = scmp.lt.s32.totalorder %s5318_s26, %s5318_s26 }
  0x21   : > { %p5089_p4 = scmp.lt.s32.totalorder %s5087_s22, %s5080_s27 }
  0x22   : > { %p5083_p13 = pnand %p5081_p12, %p5346_p7 }
  0x23   : > { %p5090_p6 = por %p5089_p4, %p5088_p1 }
  0x24   : > { %p5084_p0 = pneg %p5083_p13 }
  0x26   : > { %p5091_p8 = pnand %p5090_p6, %p5084_p0 }
  0x28   : > { %5094 = shalt.err (!%p5091_p8)
}
  0x29   : > { %4799 = dma.hbm_to_vmem [thread:$0]  (!%p5330_p5), %s7015_s5, 16, %s5318_s26, [#allocation5]  }
  0x2a   : > { %s7047_s20 = sld [smem:[#allocation13_spill]] }
  0x30   : > { %s5095_s16 = scalar_lea.hbm %s7047_s20, 16 }
  0x31   : > { %p5096_p9 = scmp.ne.s32.totalorder %s7047_s20, %s5095_s16  ;;  %p5102_p12 = scmp.lt.u32.totalorder %s5095_s16, %s7047_s20 }
  0x33   : > { %p5098_p10 = pnand %p5096_p9, %p5346_p7 }
  0x35   : > { %p5099_p11 = pneg %p5098_p10 }
  0x37   : > { %p5104_p13 = pnand %p5102_p12, %p5099_p11 }
  0x39   : > { %5107 = shalt.err (!%p5104_p13)
}
  0x3a   : > { %s5108_s26 = scalar_lea.vmem %s5326_s30, 16  ;;  %s5115_s14 = scalar_lea.vmem %s5326_s30, 32 }
  0x3b   : > { %p5109_p0 = scmp.ne.s32.totalorder %s5326_s30, %s5108_s26  ;;  %p5116_p6 = scmp.lt.s32.totalorder %s5326_s30, %s5326_s30 }
  0x3c   : > { %p5117_p8 = scmp.lt.s32.totalorder %s5115_s14, %s5108_s26 }
  0x3d   : > { %p5111_p1 = pnand %p5109_p0, %p5346_p7 }
  0x3e   : > { %p5118_p9 = por %p5117_p8, %p5116_p6 }
  0x3f   : > { %p5112_p4 = pneg %p5111_p1 }
  0x41   : > { %p5119_p10 = pnand %p5118_p9, %p5112_p4 }
  0x43   : > { %5122 = shalt.err (!%p5119_p10)
}
  0x44   : > { %4796 = dma.hbm_to_vmem [thread:$0]  (!%p5330_p5), %s7047_s20, 16, %s5326_s30, [#allocation3]  }
  0x45   : > { %s5123_s25 = scalar_lea.hbm %s7017_s7, 256 }
  0x46   : > { %p5124_p11 = scmp.ne.s32.totalorder %s7017_s7, %s5123_s25  ;;  %p5130_p0 = scmp.lt.u32.totalorder %s5123_s25, %s7017_s7 }
  0x48   : > { %p5126_p12 = pnand %p5124_p11, %p5346_p7 }
  0x4a   : > { %p5127_p13 = pneg %p5126_p12 }
  0x4c   : > { %p5132_p1 = pnand %p5130_p0, %p5127_p13 }
  0x4e   : > { %5135 = shalt.err (!%p5132_p1)
}
  0x4f   : > { %s5136_s30 = scalar_lea.vmem %s5334_s19, 256  ;;  %p5144_p9 = scmp.lt.s32.totalorder %s5334_s19, %s5334_s19 }
  0x50   : > { %p5137_p4 = scmp.ne.s32.totalorder %s5334_s19, %s5136_s30  ;;  %p5145_p10 = scmp.lt.s32.totalorder %s5136_s30, %s5136_s30 }
  0x52   : > { %p5139_p6 = pnand %p5137_p4, %p5346_p7  ;;  %p5146_p11 = por %p5145_p10, %p5144_p9 }
  0x54   : > { %p5140_p8 = pneg %p5139_p6 }
  0x56   : > { %p5147_p12 = pnand %p5146_p11, %p5140_p8 }
  0x58   : > { %5150 = shalt.err (!%p5147_p12)
}
  0x59   : > { %s5203_s14 = smov 64   ;;  %s5204_s15 = smov 4  }
  0x5a   : > { %4802 = dma.hbm_to_vmem [thread:$0]  (!%p5330_p5), %s7017_s7, 256, %s5334_s19, [#allocation5], %s5203_s14, %s5203_s14, %s5204_s15  }
  0x5b   : > { %s5151_s0 = scalar_lea.hbm %s7019_s9, 512 }
  0x5c   : > { %p5152_p13 = scmp.ne.s32.totalorder %s7019_s9, %s5151_s0  ;;  %p5158_p4 = scmp.lt.u32.totalorder %s5151_s0, %s7019_s9 }
  0x5e   : > { %p5154_p0 = pnand %p5152_p13, %p5346_p7 }
  0x60   : > { %p5155_p1 = pneg %p5154_p0 }
  0x62   : > { %p5160_p6 = pnand %p5158_p4, %p5155_p1 }
  0x64   : > { %5163 = shalt.err (!%p5160_p6)
}
  0x65   : > { %s5164_s16 = scalar_lea.vmem %s486_s21, 512  ;;  %p5172_p11 = scmp.lt.s32.totalorder %s486_s21, %s486_s21 }
  0x66   : > { %p5165_p8 = scmp.ne.s32.totalorder %s486_s21, %s5164_s16  ;;  %p5173_p12 = scmp.lt.s32.totalorder %s5164_s16, %s5164_s16 }
  0x68   : > { %p5167_p9 = pnand %p5165_p8, %p5346_p7  ;;  %p5174_p2 = por %p5173_p12, %p5172_p11 }
  0x6a   : > { %p5168_p10 = pneg %p5167_p9 }
  0x6c   : > { %p5175_p3 = pnand %p5174_p2, %p5168_p10 }
  0x6e   : > { %5178 = shalt.err (!%p5175_p3)
}
  0x6f   : > { %4805 = dma.hbm_to_vmem [thread:$0]  (!%p5330_p5), %s7019_s9, 512, %s486_s21, [#allocation8], %s5203_s14, %s5203_s14, %s5204_s15  }
  0x70   : > { %p7048_p13 = scmp.ne.s32.totalorder %s7044_s29, 0 }
  0x71   : > { %p7049_p0 = scmp.ne.s32.totalorder (!%p7048_p13), %s7043_s28, 0 }
  0x72   : > { %531 = sbr.rel (%p7048_p13) target bundleno = 2666 (0xa6a), region = 88 }
  0x79   : > { %5184 = dma.done.wait (%p7049_p0), [#allocation3], 16  }
  0x7a   : > { %5186 = vsyncadd (%p7049_p0), [#allocation3], 4294967280 }
  0x7b   : > { %5188 = dma.done.wait (%p7049_p0), [#allocation5], 272  }
  0x7c   : > { %5190 = vsyncadd (%p7049_p0), [#allocation5], 4294967024 }
  0x7d   : > { %5192 = dma.done.wait (%p7049_p0), [#allocation8], 512  }
  0x7e   : > { %5194 = vsyncadd (%p7049_p0), [#allocation8], 4294966784  ;;  %s7050_s29 = sadd.s32 4294967295, %s5197_s24   ;;  %v5205_v0 = vmov 12   ;;  %s7051_s15 = sld [smem:[#allocation12_spill]] }
  0x7f   : > { %s4341_s1 = sshll.u32 %s7050_s29, 3  ;;  %4838 = vset.pattern.permute.xlu1 %v5205_v0  ;;  %4837 = vset.pattern.permute.xlu0 %v5205_v0  ;;  %v5466_v13 = vld [vmem:[#allocation2] ss:$0 sm:$0xff]  ;;  %v5206_v49 = vmov 683565275   ;;  %s5213_s19 = smov 64  }
  0x80   : > { %p596_p2 = scmp.lt.s32.totalorder %s4341_s1, 15  ;;  %v7035_v53 = vmov 2475754826   ;;  %v5208_v55 = vmov 2131351028   ;;  %s7071_s26 = sld [smem:[#allocation14_spill]] }
  0x81   : > { %v5209_v57 = vmov 2102212464   ;;  %v5210_v59 = vmov 920167782   ;;  %s7072_s17 = sld [smem:[#allocation16_spill]]  ;;  %s7073_s14 = sld [smem:[#allocation17_spill]] }
  0x82   : > { %s7075_s1 = smov (!%p596_p2, %s4341_s1), 15 }
  0x83   : > { %s4342_s21 = sshll.u32 %s7075_s1, 3 }
  0x84   : > { %s599_s23 = scalar_lea.vmem %s7051_s15, %s4342_s21  ;;  %s7070_s15 = sld [smem:[#allocation15_spill]] }
  0x85   : > { %v610_v1 = vld [vmem:[%s599_s23 + $0x10] sm:$0xff]  ;;  %v611_v2 = vld [vmem:[%s599_s23 + $0x18] sm:$0xff]  ;;  %v608_v3 = vld [vmem:[%s599_s23] sm:$0xff] }
  0x86   : > { %629 = vperm.xlu1 %4838, %v610_v1   ;;  %v5458_v4 = vpack.c.bf16 %v611_v2, %v610_v1  ;;  %v609_v5 = vld [vmem:[%s599_s23 + $0x8] sm:$0xff]  ;;  %619 = vperm.xlu0 %4837, %v608_v3   ;;  %v612_v7 = vld [vmem:[%s599_s23 + $0x20] sm:$0xff]  ;;  %v615_v10 = vld [vmem:[%s599_s23 + $0x38] sm:$0xff] }
  0x87   : > { %v613_v6 = vld [vmem:[%s599_s23 + $0x28] sm:$0xff]  ;;  %v5460_v8 = vpack.c.bf16 %v609_v5, %v608_v3  ;;  %v614_v11 = vld [vmem:[%s599_s23 + $0x30] sm:$0xff]  ;;  %s605_s23 = scalar_lea.vmem %s7073_s14, %s4342_s21 }
  0x88   : > { %v5462_v9 = vpack.c.bf16 %v613_v6, %v612_v7  ;;  %v5464_v12 = vpack.c.bf16 %v615_v10, %v614_v11 }
  0x8a   : > { %634 = vperm.xlu1 %4838, %v611_v2   ;;  %624 = vperm.xlu0 %4837, %v609_v5   ;;  %v5211_v2 = vmov 1326507024  }
  0x8e   : > { %644 = vperm.xlu1 %4838, %v613_v6   ;;  %639 = vperm.xlu0 %4837, %v612_v7  }
  0x92   : > { %654 = vperm.xlu1 %4838, %v615_v10   ;;  %649 = vperm.xlu0 %4837, %v614_v11  }
 0x105   : > { %v630_v14 = vpop.permute.xlu1 %629  ;;  %v620_v15 = vpop.permute.xlu0 %619 }
 0x106   : > { %v5469_v16 = vmul.f32 %v5466_v13, %v630_v14  ;;  %v5472_v17 = vmul.f32 %v5466_v13, %v620_v15 }
 0x108   : > { %v879_v18 = vand.u32 2147483647, %v5469_v16  ;;  %v882_v19 = vand.u32 2139095040, %v5469_v16  ;;  %v671_v20 = vand.u32 2147483647, %v5472_v17  ;;  %v674_v21 = vand.u32 2139095040, %v5472_v17 }
 0x109   : > { %v635_v22 = vpop.permute.xlu1 %634  ;;  %v625_v37 = vpop.permute.xlu0 %624 }
 0x10a   : > { %v883_v23 = vshrl.u32 %v882_v19, 23  ;;  %v886_v24 = vand.u32 8388607, %v879_v18  ;;  %v5481_v25 = vmul.f32 %v5466_v13, %v635_v22  ;;  %v675_v26 = vshrl.u32 %v674_v21, 23 }
 0x10b   : > { %v678_v27 = vand.u32 8388607, %v671_v20  ;;  %v5488_v43 = vmul.f32 %v5466_v13, %v625_v37 }
 0x10c   : > { %v4354_v28 = vadd.s32 4294967169, %v883_v23  ;;  %v4346_v29 = vadd.s32 4294967169, %v675_v26  ;;  %v986_v30 = vand.u32 2139095040, %v5481_v25  ;;  %v887_v31 = vor.u32 8388608, %v886_v24 }
 0x10d   : > { %v679_v33 = vor.u32 8388608, %v678_v27  ;;  %v983_v35 = vand.u32 2147483647, %v5481_v25 }
 0x10e   : > { %v889_v32 = vadd.s32 1, %v4354_v28  ;;  %v681_v34 = vadd.s32 1, %v4346_v29  ;;  %v987_v36 = vshrl.u32 %v986_v30, 23  ;;  %v5490_v44 = vshll.u32 %v887_v31, 8 }
 0x10f   : > { %v5494_v46 = vshll.u32 %v679_v33, 8  ;;  %v5498_v47 = vand.u32 8388607, %v983_v35 }
 0x110   : > { %vm890_vm0 = vcmp.gt.s32.totalorder %v889_v32, 0  ;;  %vm682_vm1 = vcmp.gt.s32.totalorder %v681_v34, 0  ;;  %v4358_v39 = vadd.s32 4294967169, %v987_v36 }
 0x111   : > { %v891_v38 = vsel %vm890_vm0, %v889_v32, 0  ;;  %v683_v42 = vsel %vm682_vm1, %v681_v34, 0 }
 0x112   : > { %v892_v40 = vshrl.u32 %v891_v38, 5  ;;  %v893_v41 = vand.u32 31, %v891_v38  ;;  %v5492_v45 = vshrl.u32 %v683_v42, 5  ;;  %v685_v51 = vand.u32 31, %v683_v42 }
 0x113   : > { %v5501_v52 = vadd.s32 1, %v4358_v39 }
 0x114   : > { %v894_v48 = vsub.s32 32, %v893_v41  ;;  %v896_v50 = vshll.u32 %v5206_v49, %v893_v41  ;;  %v899_v54 = vshll.u32 %v7035_v53, %v893_v41  ;;  %v902_v56 = vshll.u32 %v5208_v55, %v893_v41 }
 0x115   : > { %v905_v58 = vshll.u32 %v5209_v57, %v893_v41  ;;  %v908_v60 = vshll.u32 %v5210_v59, %v893_v41  ;;  %vm911_vm2 = vcmp.lt.s32.totalorder %v892_v40, 1  ;;  %vm912_vm3 = vcmp.lt.s32.totalorder %v892_v40, 2 }
 0x116   : > { %v897_v61 = vshrl.u32 %v7035_v53, %v894_v48  ;;  %v900_v62 = vshrl.u32 %v5208_v55, %v894_v48  ;;  %v903_v63 = vshrl.u32 %v5209_v57, %v894_v48  ;;  %v895_v0 = vshrl.u32 %v5206_v49, %v894_v48 }
 0x117   : > { %v906_v1 = vshrl.u32 %v5210_v59, %v894_v48  ;;  %v909_v3 = vshrl.u32 %v5211_v2, %v894_v48  ;;  %v686_v10 = vsub.s32 32, %v685_v51  ;;  %vm913_vm4 = vcmp.lt.s32.totalorder %v892_v40, 3 }
 0x118   : > { %v898_v5 = vor.u32 %v897_v61, %v896_v50  ;;  %v901_v6 = vor.u32 %v900_v62, %v899_v54  ;;  %v904_v7 = vor.u32 %v903_v63, %v902_v56  ;;  %vm914_vm5 = vcmp.lt.s32.totalorder %v892_v40, 4 }
 0x119   : > { %v907_v11 = vor.u32 %v906_v1, %v905_v58  ;;  %v910_v14 = vor.u32 %v909_v3, %v908_v60  ;;  %v688_v27 = vshll.u32 %v5206_v49, %v685_v51  ;;  %v689_v30 = vshrl.u32 %v7035_v53, %v686_v10 }
 0x11a   : > { %v915_v15 = vsel %vm911_vm2, %v895_v0, %v898_v5  ;;  %v916_v19 = vsel %vm914_vm5, %v904_v7, 2102212464  ;;  %v919_v21 = vsel %vm911_vm2, %v898_v5, %v901_v6  ;;  %v923_v22 = vsel %vm911_vm2, %v901_v6, %v904_v7 }
 0x11b   : > { %v917_v23 = vsel %vm913_vm4, %v901_v6, %v916_v19  ;;  %v920_v24 = vsel %vm914_vm5, %v907_v11, 920167782  ;;  %v924_v26 = vsel %vm914_vm5, %v910_v14, 1326507024  ;;  %v691_v31 = vshll.u32 %v7035_v53, %v685_v51 }
 0x11c   : > { %v921_v28 = vsel %vm913_vm4, %v904_v7, %v920_v24  ;;  %v925_v29 = vsel %vm913_vm4, %v907_v11, %v924_v26  ;;  %v918_v32 = vsel %vm912_vm3, %v915_v15, %v917_v23  ;;  %v692_v36 = vshrl.u32 %v5208_v55, %v686_v10 }
 0x11d   : > { %v922_v33 = vsel %vm912_vm3, %v919_v21, %v921_v28  ;;  %v926_v34 = vsel %vm912_vm3, %v923_v22, %v925_v29  ;;  %v690_v42 = vor.u32 %v689_v30, %v688_v27  ;;  %v694_v50 = vshll.u32 %v5208_v55, %v685_v51 }
 0x11e   : > { %v5524_v37 = vmul.u32.u64.low %v5490_v44, %v926_v34  ;;  %v5525_v38 = vmul.u32.u64.high %v5490_v44, %v926_v34, %v5524_v37  ;;  %v5528_v39 = vmul.u32.u64.low %v5490_v44, %v922_v33  ;;  %v5529_v41 = vmul.u32.u64.high %v5490_v44, %v922_v33, %v5528_v39 }
 0x11f   : > { %v693_v48 = vor.u32 %v692_v36, %v691_v31  ;;  %v695_v54 = vshrl.u32 %v5209_v57, %v686_v10  ;;  %v687_v40 = vshrl.u32 %v5206_v49, %v686_v10  ;;  %v697_v56 = vshll.u32 %v5209_v57, %v685_v51 }
 0x120   : > { %v698_v58 = vshrl.u32 %v5210_v59, %v686_v10  ;;  %v701_v60 = vshrl.u32 %v5211_v2, %v686_v10  ;;  %v934_v61 = vmul.u32 %v5490_v44, %v918_v32  ;;  %v700_v63 = vshll.u32 %v5210_v59, %v685_v51 }
 0x121   : > { %v696_v62 = vor.u32 %v695_v54, %v694_v50  ;;  %vm703_vm6 = vcmp.lt.s32.totalorder %v5492_v45, 1  ;;  %vm936_vm7 = vc.u32 %v5525_v38, %v5528_v39  ;;  %v937_v0 = vadd.s32 1, %v5529_v41 }
 0x122   : > { %v699_v1 = vor.u32 %v698_v58, %v697_v56  ;;  %vm704_vm8 = vcmp.lt.s32.totalorder %v5492_v45, 2  ;;  %v702_v3 = vor.u32 %v701_v60, %v700_v63  ;;  %vm705_vm9 = vcmp.lt.s32.totalorder %v5492_v45, 3 }
 0x123   : > { %vm706_vm10 = vcmp.lt.s32.totalorder %v5492_v45, 4  ;;  %v711_v5 = vsel %vm703_vm6, %v690_v42, %v693_v48  ;;  %v938_v44 = vsel %vm936_vm7, %v937_v0, %v5529_v41  ;;  %v715_v7 = vsel %vm703_vm6, %v693_v48, %v696_v62 }
 0x124   : > { %v708_v6 = vsel %vm706_vm10, %v696_v62, 2102212464  ;;  %v712_v51 = vsel %vm706_vm10, %v699_v1, 920167782  ;;  %v939_v10 = vadd.s32 %v938_v44, %v934_v61  ;;  %v707_v11 = vsel %vm703_vm6, %v687_v40, %v690_v42 }
 0x125   : > { %v713_v14 = vsel %vm705_vm9, %v696_v62, %v712_v51  ;;  %v716_v15 = vsel %vm706_vm10, %v702_v3, 1326507024  ;;  %v709_v19 = vsel %vm705_vm9, %v693_v48, %v708_v6  ;;  %vm994_vm11 = vcmp.gt.s32.totalorder %v5501_v52, 0 }
 0x126   : > { %v714_v21 = vsel %vm704_vm8, %v711_v5, %v713_v14  ;;  %v717_v22 = vsel %vm705_vm9, %v699_v1, %v716_v15  ;;  %v940_v23 = vadd.s32 536870912, %v939_v10  ;;  %v995_v30 = vsel %vm994_vm11, %v5501_v52, 0 }
 0x127   : > { %v718_v24 = vsel %vm704_vm8, %v715_v7, %v717_v22  ;;  %v5554_v26 = vmul.u32.u64.low %v5494_v46, %v714_v21  ;;  %v5555_v27 = vmul.u32.u64.high %v5494_v46, %v714_v21, %v5554_v26  ;;  %v778_v31 = vand.u32 2139095040, %v5488_v43 }
 0x128   : > { %v5559_v28 = vmul.u32.u64.low %v5494_v46, %v718_v24  ;;  %v5560_v29 = vmul.u32.u64.high %v5494_v46, %v718_v24, %v5559_v28  ;;  %v5564_v32 = vshrl.u32 %v940_v23, 30  ;;  %v710_v33 = vsel %vm704_vm8, %v707_v11, %v709_v19 }
 0x129   : > { %v997_v34 = vand.u32 31, %v995_v30  ;;  %v729_v37 = vadd.s32 1, %v5555_v27  ;;  %v775_v42 = vand.u32 2147483647, %v5488_v43  ;;  %v726_v48 = vmul.u32 %v5494_v46, %v710_v33 }
 0x12a   : > { %v942_v36 = vshll.u32 %v5564_v32, 30  ;;  %vm728_vm12 = vc.u32 %v5560_v29, %v5554_v26  ;;  %v991_v52 = vor.u32 8388608, %v5498_v47  ;;  %v779_v50 = vshrl.u32 %v778_v31, 23 }
 0x12b   : > { %v998_v41 = vsub.s32 32, %v997_v34  ;;  %v730_v45 = vsel %vm728_vm12, %v729_v37, %v5555_v27  ;;  %v5578_v40 = vshrl.u32 %v995_v30, 5  ;;  %v1000_v56 = vshll.u32 %v5206_v49, %v997_v34 }
 0x12c   : > { %v5575_v54 = vsub.s32 %v939_v10, %v942_v36  ;;  %v731_v58 = vadd.s32 %v730_v45, %v726_v48  ;;  %v1003_v61 = vshll.u32 %v7035_v53, %v997_v34  ;;  %v1006_v47 = vshll.u32 %v5208_v55, %v997_v34 }
 0x12d   : > { %v1001_v60 = vshrl.u32 %v7035_v53, %v998_v41  ;;  %v1004_v46 = vshrl.u32 %v5208_v55, %v998_v41  ;;  %v1007_v63 = vshrl.u32 %v5209_v57, %v998_v41  ;;  %v1009_v0 = vshll.u32 %v5209_v57, %v997_v34 }
 0x12e   : > { %v945_v62 = vsub.s32 0, %v5575_v54  ;;  %v732_v1 = vadd.s32 536870912, %v731_v58  ;;  %v1010_v44 = vshrl.u32 %v5210_v59, %v998_v41  ;;  %v1012_v7 = vshll.u32 %v5210_v59, %v997_v34 }
 0x12f   : > { %v1002_v3 = vor.u32 %v1001_v60, %v1000_v56  ;;  %v1005_v5 = vor.u32 %v1004_v46, %v1003_v61  ;;  %v1008_v51 = vor.u32 %v1007_v63, %v1006_v47  ;;  %v1013_v10 = vshrl.u32 %v5211_v2, %v998_v41 }
 0x130   : > { %v4355_v6 = vmin.u32 %v945_v62, %v5575_v54  ;;  %v935_v11 = vadd.s32 %v5528_v39, %v5525_v38  ;;  %v5594_v14 = vshrl.u32 %v732_v1, 30  ;;  %v1011_v15 = vor.u32 %v1010_v44, %v1009_v0 }
 0x131   : > { %v5596_v19 = vshll.u32 %v991_v52, 8  ;;  %v1014_v22 = vor.u32 %v1013_v10, %v1012_v7  ;;  %vm1015_vm13 = vcmp.lt.s32.totalorder %v5578_v40, 1  ;;  %v4350_v23 = vadd.s32 4294967169, %v779_v50 }
 0x132   : > { %v947_v21 = vclz %v4355_v6  ;;  %v734_v24 = vshll.u32 %v5594_v14, 30  ;;  %vm1016_vm14 = vcmp.lt.s32.totalorder %v5578_v40, 2  ;;  %vm1018_vm15 = vcmp.lt.s32.totalorder %v5578_v40, 4 }
 0x133   : > { %v1023_v27 = vsel %vm1015_vm13, %v1002_v3, %v1005_v5  ;;  %vm1017_vm0 = vcmp.lt.s32.totalorder %v5578_v40, 3  ;;  %v1024_v39 = vsel %vm1018_vm15, %v1011_v15, 920167782  ;;  %v1027_v28 = vsel %vm1015_vm13, %v1005_v5, %v1008_v51 }
 0x134   : > { %v4356_v38 = vadd.s32 4294967294, %v947_v21  ;;  %v5607_v30 = vsub.s32 %v731_v58, %v734_v24  ;;  %v1020_v31 = vsel %vm1018_vm15, %v1008_v51, 2102212464  ;;  %v1025_v33 = vsel %vm1017_vm0, %v1008_v51, %v1024_v39  ;;  %v645_v58 = vpop.permute.xlu1 %644 }
 0x135   : > { %v1028_v34 = vsel %vm1018_vm15, %v1014_v22, 1326507024  ;;  %v999_v36 = vshrl.u32 %v5206_v49, %v998_v41  ;;  %v1026_v37 = vsel %vm1016_vm14, %v1023_v27, %v1025_v33  ;;  %v785_v56 = vadd.s32 1, %v4350_v23 }
 0x136   : > { %vm4357_vm1 = vcmp.lt.s32.totalorder %v4356_v38, 0  ;;  %v1029_v48 = vsel %vm1017_vm0, %v1011_v15, %v1028_v34  ;;  %v737_v50 = vsub.s32 0, %v5607_v30  ;;  %v1021_v41 = vsel %vm1017_vm0, %v1005_v5, %v1020_v31 }
 0x137   : > { %v950_v52 = vsel %vm4357_vm1, 0, %v4356_v38  ;;  %v1030_v45 = vsel %vm1016_vm14, %v1027_v28, %v1029_v48  ;;  %v1019_v46 = vsel %vm1015_vm13, %v999_v36, %v1002_v3  ;;  %vm786_vm2 = vcmp.gt.s32.totalorder %v785_v56, 0 }
 0x138   : > { %v951_v60 = vsub.s32 32, %v950_v52  ;;  %v955_v61 = vsub.s32 4294967266, %v950_v52  ;;  %v4347_v62 = vmin.u32 %v737_v50, %v5607_v30  ;;  %v5634_v6 = vmul.f32 %v5466_v13, %v645_v58 }
 0x139   : > { %v5625_v47 = vmul.u32.u64.low %v5596_v19, %v1030_v45  ;;  %v5626_v63 = vmul.u32.u64.high %v5596_v19, %v1030_v45, %v5625_v47  ;;  %v5629_v1 = vmul.u32.u64.low %v5596_v19, %v1026_v37  ;;  %v5630_v44 = vmul.u32.u64.high %v5596_v19, %v1026_v37, %v5629_v1 }
 0x13a   : > { %v956_v0 = vadd.s32 127, %v955_v61  ;;  %v953_v3 = vshrl.u32 %v935_v11, %v951_v60  ;;  %v739_v51 = vclz %v4347_v62  ;;  %v787_v7 = vsel %vm786_vm2, %v785_v56, 0 }
 0x13b   : > { %v1022_v10 = vsel %vm1016_vm14, %v1019_v46, %v1021_v41  ;;  %v782_v15 = vand.u32 8388607, %v775_v42  ;;  %v789_v21 = vand.u32 31, %v787_v7  ;;  %v952_v22 = vshll.u32 %v5575_v54, %v950_v52 }
 0x13c   : > { %v957_v5 = vshll.u32 %v956_v0, 23  ;;  %v4348_v23 = vadd.s32 4294967294, %v739_v51  ;;  %vm1040_vm3 = vc.u32 %v5626_v63, %v5629_v1  ;;  %v965_v27 = vsub.s32 4, %v5564_v32 }
 0x13d   : > { %v1041_v11 = vadd.s32 1, %v5630_v44  ;;  %v1194_v38 = vand.u32 2139095040, %v5634_v6  ;;  %v954_v39 = vor.u32 %v953_v3, %v952_v22  ;;  %v1038_v40 = vmul.u32 %v5596_v19, %v1022_v10 }
 0x13e   : > { %v958_v24 = vor.u32 4788187, %v957_v5  ;;  %vm4349_vm4 = vcmp.lt.s32.totalorder %v4348_v23, 0  ;;  %v790_v28 = vsub.s32 32, %v789_v21  ;;  %vm881_vm5 = vcmp.lt.s32.totalorder %v5469_v16, 0 }
 0x13f   : > { %v742_v31 = vsel %vm4349_vm4, 0, %v4348_v23  ;;  %v1042_v54 = vsel %vm1040_vm3, %v1041_v11, %v5630_v44  ;;  %v783_v33 = vor.u32 8388608, %v782_v15  ;;  %v727_v36 = vadd.s32 %v5554_v26, %v5560_v29 }
 0x140   : > { %v959_v34 = vand.u32 2147483647, %v958_v24  ;;  %v1043_v37 = vadd.s32 %v1042_v54, %v1038_v40  ;;  %v1191_v48 = vand.u32 2147483647, %v5634_v6  ;;  %v5655_v52 = vsel %vm881_vm5, %v965_v27, %v5564_v32 }
 0x141   : > { %v743_v19 = vsub.s32 32, %v742_v31  ;;  %v747_v50 = vsub.s32 4294967266, %v742_v31  ;;  %v1195_v45 = vshrl.u32 %v1194_v38, 23  ;;  %v961_v56 = vcvt.s32.f32 %v954_v39 }
 0x142   : > { %v1044_v58 = vadd.s32 536870912, %v1043_v37  ;;  %v788_v60 = vshrl.u32 %v787_v7, 5  ;;  %v799_v61 = vshrl.u32 %v5209_v57, %v790_v28  ;;  %v792_v46 = vshll.u32 %v5206_v49, %v789_v21 }
 0x143   : > { %v793_v26 = vshrl.u32 %v7035_v53, %v790_v28  ;;  %v795_v29 = vshll.u32 %v7035_v53, %v789_v21  ;;  %v796_v41 = vshrl.u32 %v5208_v55, %v790_v28  ;;  %v962_v62 = vmul.f32 %v961_v56, %v959_v34 }
 0x144   : > { %v5662_v47 = vshrl.u32 %v1044_v58, 30  ;;  %v798_v32 = vshll.u32 %v5208_v55, %v789_v21  ;;  %v802_v0 = vshrl.u32 %v5210_v59, %v790_v28  ;;  %v745_v44 = vshrl.u32 %v727_v36, %v743_v19 }
 0x145   : > { %v748_v3 = vadd.s32 127, %v747_v50  ;;  %v801_v51 = vshll.u32 %v5209_v57, %v789_v21  ;;  %v805_v7 = vshrl.u32 %v5211_v2, %v790_v28  ;;  %v744_v5 = vshll.u32 %v5607_v30, %v742_v31 }
 0x146   : > { %v1046_v10 = vshll.u32 %v5662_v47, 30  ;;  %v800_v15 = vor.u32 %v799_v61, %v798_v32  ;;  %v5670_v22 = vshll.u32 %v783_v33, 8  ;;  %v794_v23 = vor.u32 %v793_v26, %v792_v46 }
 0x147   : > { %v797_v24 = vor.u32 %v796_v41, %v795_v29  ;;  %v803_v27 = vor.u32 %v802_v0, %v801_v51  ;;  %v804_v11 = vshll.u32 %v5210_v59, %v789_v21  ;;  %vm5675_vm6 = vcmp.le.f32.partialorder %v879_v18, 0.7853982 }
 0x148   : > { %v963_v39 = vxor.u32 2147483648, %v962_v62  ;;  %v5679_v40 = vsub.s32 %v1043_v37, %v1046_v10  ;;  %v791_v30 = vshrl.u32 %v5206_v49, %v790_v28  ;;  %v4366_v31 = vadd.s32 4294967169, %v1195_v45 }
 0x149   : > { %v5682_v54 = vor.u32 %v745_v44, %v744_v5  ;;  %v749_v33 = vshll.u32 %v748_v3, 23  ;;  %v806_v34 = vor.u32 %v805_v7, %v804_v11  ;;  %vm810_vm7 = vcmp.lt.s32.totalorder %v788_v60, 4  ;;  %v4839_v11 = vld [vmem:[#allocation6] sm:$0xff]  }
 0x14a   : > { %v1049_v36 = vsub.s32 0, %v5679_v40  ;;  %vm807_vm8 = vcmp.lt.s32.totalorder %v788_v60, 1  ;;  %vm809_vm9 = vcmp.lt.s32.totalorder %v788_v60, 3  ;;  %v812_v21 = vsel %vm810_vm7, %v800_v15, 2102212464  ;;  %4609 = vmatprep.subr.bf16.mxu1 %v4839_v11 }
 0x14b   : > { %v811_v18 = vsel %vm807_vm8, %v791_v30, %v794_v23  ;;  %v813_v19 = vsel %vm809_vm9, %v797_v24, %v812_v21  ;;  %v815_v50 = vsel %vm807_vm8, %v794_v23, %v797_v24  ;;  %v816_v56 = vsel %vm810_vm7, %v803_v27, 920167782  ;;  %v4841_v30 = vld [vmem:[#allocation6 + $0x8] sm:$0xff]   ;;  %4610 = vmatpush3.bf16.msra.mxu1 %v4839_v11 }
 0x14c   : > { %v4359_v37 = vmin.u32 %v1049_v36, %v5679_v40  ;;  %vm808_vm10 = vcmp.lt.s32.totalorder %v788_v60, 2  ;;  %v817_v28 = vsel %vm809_vm9, %v800_v15, %v816_v56  ;;  %v819_v45 = vsel %vm807_vm8, %v797_v24, %v800_v15  ;;  %4611 = vmatprep.subr.bf16.mxu1 %v4841_v30 }
 0x14d   : > { %v964_v58 = vsel %vm881_vm5, %v963_v39, %v962_v62  ;;  %v818_v61 = vsel %vm808_vm10, %v815_v50, %v817_v28  ;;  %v820_v46 = vsel %vm810_vm7, %v806_v34, 1326507024  ;;  %v1198_v26 = vand.u32 8388607, %v1191_v48  ;;  %v4840_v39 = vld [vmem:[%s7016_s6] sm:$0xff]  }
 0x14e   : > { %v1051_v29 = vclz %v4359_v37  ;;  %v814_v41 = vsel %vm808_vm10, %v811_v18, %v813_v19  ;;  %v821_v32 = vsel %vm809_vm9, %v803_v27, %v820_v46  ;;  %v1201_v0 = vadd.s32 1, %v4366_v31  ;;  %v640_v27 = vpop.permute.xlu0 %639  ;;  %4621 = vmatprep.subr.bf16.mxu0 %v4840_v39 }
 0x14f   : > { %v822_v44 = vsel %vm808_vm10, %v819_v45, %v821_v32  ;;  %v5694_v3 = vmul.u32.u64.low %v5670_v22, %v818_v61  ;;  %v5695_v51 = vmul.u32.u64.high %v5670_v22, %v818_v61, %v5694_v3  ;;  %v1199_v7 = vor.u32 8388608, %v1198_v26  ;;  %4622 = vmatpush3.bf16.msra.mxu0 %v4840_v39  ;;  %4612 = vmatpush3.bf16.msra.mxu1 %v4841_v30 }
 0x150   : > { %v4360_v5 = vadd.s32 4294967294, %v1051_v29  ;;  %v5699_v62 = vmul.u32.u64.low %v5670_v22, %v822_v44  ;;  %v5700_v10 = vmul.u32.u64.high %v5670_v22, %v822_v44, %v5699_v62  ;;  %vm1202_vm11 = vcmp.gt.s32.totalorder %v1201_v0, 0 }
 0x151   : > { %v5705_v15 = vsel %vm5675_vm6, %v5469_v16, %v964_v58  ;;  %v5707_v60 = vor.u32 4788187, %v749_v33  ;;  %v1039_v23 = vadd.s32 %v5629_v1, %v5626_v63  ;;  %v1203_v24 = vsel %vm1202_vm11, %v1201_v0, 0  ;;  %v4842_v33 = vld [vmem:[%s7016_s6 + $0x8] sm:$0xff]  }
 0x152   : > { %v753_v31 = vcvt.s32.f32 %v5682_v54  ;;  %vm4361_vm12 = vcmp.lt.s32.totalorder %v4360_v5, 0  ;;  %v1069_v34 = vsub.s32 4, %v5662_v47  ;;  %v1205_v36 = vand.u32 31, %v1203_v24  ;;  %4623 = vmatprep.subr.bf16.mxu0 %v4842_v33 }
 0x153   : > { %v1054_v21 = vsel %vm4361_vm12, 0, %v4360_v5  ;;  %v830_v63 = vmul.u32 %v5670_v22, %v814_v41  ;;  %v833_v1 = vadd.s32 1, %v5695_v51  ;;  %v5721_v18 = vshll.u32 %v1199_v7, 8  ;;  %4624 = vmatpush3.bf16.msra.mxu0 %v4842_v33 }
 0x154   : > { %v1055_v19 = vsub.s32 32, %v1054_v21  ;;  %v1059_v50 = vsub.s32 4294967266, %v1054_v21  ;;  %v5723_v56 = vshrl.u32 %v1203_v24, 5  ;;  %v5726_v37 = vmul.f32 %v5466_v13, %v640_v27 }
 0x155   : > { %v1056_v28 = vshll.u32 %v5679_v40, %v1054_v21  ;;  %vm832_vm13 = vc.u32 %v5700_v10, %v5694_v3  ;;  %v1206_v22 = vsub.s32 32, %v1205_v36  ;;  %v1208_v45 = vshll.u32 %v5206_v49, %v1205_v36 }
 0x156   : > { %v1057_v58 = vshrl.u32 %v1039_v23, %v1055_v19  ;;  %v1060_v61 = vadd.s32 127, %v1059_v50  ;;  %v834_v46 = vsel %vm832_vm13, %v833_v1, %v5695_v51  ;;  %v1211_v26 = vshll.u32 %v7035_v53, %v1205_v36 }
 0x157   : > { %v835_v29 = vadd.s32 %v834_v46, %v830_v63  ;;  %v1209_v41 = vshrl.u32 %v7035_v53, %v1206_v22  ;;  %v1212_v32 = vshrl.u32 %v5208_v55, %v1206_v22  ;;  %v1214_v40 = vshll.u32 %v5208_v55, %v1205_v36 }
 0x158   : > { %v1058_v0 = vor.u32 %v1057_v58, %v1056_v28  ;;  %v1061_v44 = vshll.u32 %v1060_v61, 23  ;;  %v1207_v7 = vshrl.u32 %v5206_v49, %v1206_v22  ;;  %v1215_v5 = vshrl.u32 %v5209_v57, %v1206_v22 }
 0x159   : > { %v836_v62 = vadd.s32 536870912, %v835_v29  ;;  %v1210_v23 = vor.u32 %v1209_v41, %v1208_v45  ;;  %v1217_v51 = vshll.u32 %v5209_v57, %v1205_v36  ;;  %v1218_v24 = vshrl.u32 %v5210_v59, %v1206_v22 }
 0x15a   : > { %v1062_v27 = vor.u32 4788187, %v1061_v44  ;;  %v1065_v11 = vcvt.s32.f32 %v1058_v0  ;;  %v1213_v39 = vor.u32 %v1212_v32, %v1211_v26  ;;  %v1216_v21 = vor.u32 %v1215_v5, %v1214_v40 }
 0x15b   : > { %v5741_v63 = vshrl.u32 %v836_v62, 30  ;;  %v1219_v1 = vor.u32 %v1218_v24, %v1217_v51  ;;  %v1220_v19 = vshll.u32 %v5210_v59, %v1205_v36  ;;  %v1221_v50 = vshrl.u32 %v5211_v2, %v1206_v22  ;;  %v655_v36 = vpop.permute.xlu1 %654 }
 0x15c   : > { %v1063_v28 = vand.u32 2147483647, %v1062_v27  ;;  %vm1223_vm14 = vcmp.lt.s32.totalorder %v5723_v56, 1  ;;  %vm1224_vm15 = vcmp.lt.s32.totalorder %v5723_v56, 2  ;;  %vm1226_vm0 = vcmp.lt.s32.totalorder %v5723_v56, 4 }
 0x15d   : > { %vm985_vm1 = vcmp.lt.s32.totalorder %v5481_v25, 0  ;;  %v838_v30 = vshll.u32 %v5741_v63, 30  ;;  %v1222_v33 = vor.u32 %v1221_v50, %v1220_v19  ;;  %vm1225_vm2 = vcmp.lt.s32.totalorder %v5723_v56, 3 }
 0x15e   : > { %v1228_v45 = vsel %vm1226_vm0, %v1216_v21, 2102212464  ;;  %v1066_v58 = vmul.f32 %v1065_v11, %v1063_v28  ;;  %v1227_v22 = vsel %vm1223_vm14, %v1207_v7, %v1210_v23  ;;  %v1231_v61 = vsel %vm1223_vm14, %v1210_v23, %v1213_v39 }
 0x15f   : > { %v1232_v46 = vsel %vm1226_vm0, %v1219_v1, 920167782  ;;  %v5759_v26 = vsub.s32 %v835_v29, %v838_v30  ;;  %v1229_v41 = vsel %vm1225_vm2, %v1213_v39, %v1228_v45  ;;  %v1235_v40 = vsel %vm1223_vm14, %v1213_v39, %v1216_v21 }
 0x160   : > { %v1233_v32 = vsel %vm1225_vm2, %v1216_v21, %v1232_v46  ;;  %v751_v0 = vand.u32 2147483647, %v5707_v60  ;;  %v1236_v7 = vsel %vm1226_vm0, %v1222_v33, 1326507024  ;;  %v5773_v29 = vmul.f32 %v5466_v13, %v655_v36 }
 0x161   : > { %v1234_v44 = vsel %vm1224_vm15, %v1231_v61, %v1233_v32  ;;  %vm5777_vm3 = vcmp.le.f32.partialorder %v983_v35, 0.7853982  ;;  %v841_v62 = vsub.s32 0, %v5759_v26  ;;  %v1237_v60 = vsel %vm1225_vm2, %v1219_v1, %v1236_v7 }
 0x162   : > { %v5785_v23 = vmul.u32.u64.low %v5721_v18, %v1234_v44  ;;  %v5786_v51 = vmul.u32.u64.high %v5721_v18, %v1234_v44, %v5785_v23  ;;  %v1230_v24 = vsel %vm1224_vm15, %v1227_v22, %v1229_v41  ;;  %v1238_v27 = vsel %vm1224_vm15, %v1235_v40, %v1237_v60 }
 0x163   : > { %v1087_v35 = vand.u32 2147483647, %v5726_v37  ;;  %v1090_v11 = vand.u32 2139095040, %v5726_v37  ;;  %v1067_v39 = vxor.u32 2147483648, %v1066_v58  ;;  %v4351_v21 = vmin.u32 %v841_v62, %v5759_v26 }
 0x164   : > { %v5796_v19 = vmul.u32.u64.low %v5721_v18, %v1238_v27  ;;  %v5797_v1 = vmul.u32.u64.high %v5721_v18, %v1238_v27, %v5796_v19  ;;  %v5802_v50 = vsel %vm5675_vm6, 0, %v5655_v52  ;;  %4907 = vcosq.f32 %v5705_v15 }
 0x165   : > { %v1091_v56 = vshrl.u32 %v1090_v11, 23  ;;  %v7034_v28 = vand.u32 2147483647, %v5773_v29  ;;  %4909 = vsinq.f32 %v5705_v15  ;;  %vm673_vm4 = vcmp.lt.s32.totalorder %v5472_v17, 0 }
 0x166   : > { %v754_v30 = vmul.f32 %v753_v31, %v751_v0  ;;  %v843_v33 = vclz %v4351_v21  ;;  %v1249_v45 = vadd.s32 1, %v5786_v51  ;;  %v1070_v52 = vsel %vm985_vm1, %v1069_v34, %v5662_v47 }
 0x167   : > { %v1246_v38 = vmul.u32 %v5721_v18, %v1230_v24  ;;  %v4362_v36 = vadd.s32 4294967169, %v1091_v56  ;;  %v1402_v22 = vand.u32 2139095040, %v5773_v29  ;;  %v1068_v15 = vsel %vm985_vm1, %v1067_v39, %v1066_v58  ;;  %v650_v58 = vpop.permute.xlu0 %649 }
 0x168   : > { %v4352_v61 = vadd.s32 4294967294, %v843_v33  ;;  %vm1248_vm5 = vc.u32 %v5797_v1, %v5785_v23  ;;  %v1094_v54 = vand.u32 8388607, %v1087_v35  ;;  %v1406_v47 = vand.u32 8388607, %v7034_v28 }
 0x169   : > { %v1250_v31 = vsel %vm1248_vm5, %v1249_v45, %v5786_v51  ;;  %v1097_v46 = vadd.s32 1, %v4362_v36  ;;  %v1403_v41 = vshrl.u32 %v1402_v22, 23  ;;  %v755_v34 = vxor.u32 2147483648, %v754_v30 }
 0x16a   : > { %v831_v18 = vadd.s32 %v5694_v3, %v5700_v10  ;;  %vm4353_vm6 = vcmp.lt.s32.totalorder %v4352_v61, 0  ;;  %v1251_v32 = vadd.s32 %v1250_v31, %v1246_v38  ;;  %v5831_v40 = vsel %vm5777_vm3, %v5481_v25, %v1068_v15 }
 0x16b   : > { %v846_v0 = vsel %vm4353_vm6, 0, %v4352_v61  ;;  %vm1098_vm7 = vcmp.gt.s32.totalorder %v1097_v46, 0  ;;  %v4374_v44 = vadd.s32 4294967169, %v1403_v41  ;;  %v1095_v51 = vor.u32 8388608, %v1094_v54 }
 0x16c   : > { %v847_v7 = vsub.s32 32, %v846_v0  ;;  %v851_v62 = vsub.s32 4294967266, %v846_v0  ;;  %v1252_v60 = vadd.s32 536870912, %v1251_v32  ;;  %v5835_v24 = vsel %vm5777_vm3, 0, %v1070_v52 }
 0x16d   : > { %v1099_v3 = vsel %vm1098_vm7, %v1097_v46, 0  ;;  %v1407_v10 = vor.u32 8388608, %v1406_v47  ;;  %v5838_v27 = vmul.f32 %v5466_v13, %v650_v58  ;;  %v5842_v19 = vadd.s32 1, %v4374_v44 }
 0x16e   : > { %v849_v11 = vshrl.u32 %v831_v18, %v847_v7  ;;  %v852_v39 = vadd.s32 127, %v851_v62  ;;  %v5840_v21 = vshrl.u32 %v1252_v60, 30  ;;  %v5844_v56 = vpop.eup %4907  ;;  %v5848_v33 = vsel %vm673_vm4, %v755_v34, %v754_v30 }
 0x16f   : > { %4911 = vcosq.f32 %v5831_v40  ;;  %v5852_v5 = vadd.s32 %v5785_v23, %v5797_v1  ;;  %v1101_v45 = vand.u32 31, %v1099_v3  ;;  %v5854_v13 = vpop.eup %4909  ;;  %v848_v52 = vshll.u32 %v5759_v26, %v846_v0 }
 0x170   : > { %v853_v38 = vshll.u32 %v852_v39, 23  ;;  %v1254_v36 = vshll.u32 %v5840_v21, 30  ;;  %v5858_v22 = vshll.u32 %v1095_v51, 8  ;;  %v1100_v15 = vshrl.u32 %v1099_v3, 5 }
 0x171   : > { %v1102_v61 = vsub.s32 32, %v1101_v45  ;;  %v5860_v54 = vshll.u32 %v1407_v10, 8  ;;  %v1295_v30 = vand.u32 2147483647, %v5838_v27  ;;  %v850_v31 = vor.u32 %v849_v11, %v848_v52 }
 0x172   : > { %v5863_v46 = vsub.s32 %v1251_v32, %v1254_v36  ;;  %v1104_v23 = vshll.u32 %v5206_v49, %v1101_v45  ;;  %vm1410_vm8 = vcmp.gt.s32.totalorder %v5842_v19, 0  ;;  %v854_v1 = vor.u32 4788187, %v853_v38 }
 0x173   : > { %v1105_v26 = vshrl.u32 %v7035_v53, %v1102_v61  ;;  %v1107_v41 = vshll.u32 %v7035_v53, %v1101_v45  ;;  %v1108_v47 = vshrl.u32 %v5208_v55, %v1102_v61  ;;  %v1110_v18 = vshll.u32 %v5208_v55, %v1101_v45 }
 0x174   : > { %v1257_v34 = vsub.s32 0, %v5863_v46  ;;  %v1111_v58 = vshrl.u32 %v5209_v57, %v1102_v61  ;;  %v1298_v32 = vand.u32 2139095040, %v5838_v27  ;;  %v1113_v7 = vshll.u32 %v5209_v57, %v1101_v45 }
 0x175   : > { %v1106_v0 = vor.u32 %v1105_v26, %v1104_v23  ;;  %v1109_v44 = vor.u32 %v1108_v47, %v1107_v41  ;;  %v1114_v62 = vshrl.u32 %v5210_v59, %v1102_v61  ;;  %v1116_v3 = vshll.u32 %v5210_v59, %v1101_v45 }
 0x176   : > { %v4367_v60 = vmin.u32 %v1257_v34, %v5863_v46  ;;  %v1112_v51 = vor.u32 %v1111_v58, %v1110_v18  ;;  %v1117_v10 = vshrl.u32 %v5211_v2, %v1102_v61  ;;  %v855_v11 = vand.u32 2147483647, %v854_v1 }
 0x177   : > { %v857_v39 = vcvt.s32.f32 %v850_v31  ;;  %v1103_v52 = vshrl.u32 %v5206_v49, %v1102_v61  ;;  %v1115_v38 = vor.u32 %v1114_v62, %v1113_v7  ;;  %vm1119_vm9 = vcmp.lt.s32.totalorder %v1100_v15, 1 }
 0x178   : > { %v1259_v36 = vclz %v4367_v60  ;;  %v1118_v28 = vor.u32 %v1117_v10, %v1116_v3  ;;  %vm1122_vm10 = vcmp.lt.s32.totalorder %v1100_v15, 4  ;;  %vm1121_vm11 = vcmp.lt.s32.totalorder %v1100_v15, 3 }
 0x179   : > { %v5880_v23 = vpop.eup %4911  ;;  %v1124_v26 = vsel %vm1122_vm10, %v1112_v51, 2102212464  ;;  %v1127_v41 = vsel %vm1119_vm9, %v1106_v0, %v1109_v44  ;;  %v1128_v47 = vsel %vm1122_vm10, %v1115_v38, 920167782  ;;  %vm1120_vm12 = vcmp.lt.s32.totalorder %v1100_v15, 2 }
 0x17a   : > { %v4368_v34 = vadd.s32 4294967294, %v1259_v36  ;;  %v1123_v45 = vsel %vm1119_vm9, %v1103_v52, %v1106_v0  ;;  %v1129_v18 = vsel %vm1121_vm11, %v1112_v51, %v1128_v47  ;;  %v1125_v58 = vsel %vm1121_vm11, %v1109_v44, %v1124_v26 }
 0x17b   : > { %v1130_v31 = vsel %vm1120_vm12, %v1127_v41, %v1129_v18  ;;  %v1131_v1 = vsel %vm1119_vm9, %v1109_v44, %v1112_v51  ;;  %v1132_v61 = vsel %vm1122_vm10, %v1118_v28, 1326507024  ;;  %v5888_v3 = vmul.f32 %v857_v39, %v855_v11 }
 0x17c   : > { %vm4369_vm13 = vcmp.lt.s32.totalorder %v4368_v34, 0  ;;  %v1133_v7 = vsel %vm1121_vm11, %v1115_v38, %v1132_v61  ;;  %v5884_v62 = vmul.u32.u64.low %v5858_v22, %v1130_v31  ;;  %v5885_v60 = vmul.u32.u64.high %v5858_v22, %v1130_v31, %v5884_v62 }
 0x17d   : > { %v1262_v10 = vsel %vm4369_vm13, 0, %v4368_v34  ;;  %v1134_v36 = vsel %vm1120_vm12, %v1131_v1, %v1133_v7  ;;  %v1411_v0 = vsel %vm1410_vm8, %v5842_v19, 0  ;;  %v1126_v28 = vsel %vm1120_vm12, %v1123_v45, %v1125_v58 }
 0x17e   : > { %v1263_v52 = vsub.s32 32, %v1262_v10  ;;  %v1267_v26 = vsub.s32 4294967266, %v1262_v10  ;;  %v5895_v44 = vshrl.u32 %v1411_v0, 5  ;;  %v1277_v51 = vsub.s32 4, %v5840_v21 }
 0x17f   : > { %v5899_v38 = vmul.u32.u64.low %v5858_v22, %v1134_v36  ;;  %v5900_v41 = vmul.u32.u64.high %v5858_v22, %v1134_v36, %v5899_v38  ;;  %v1413_v11 = vand.u32 31, %v1411_v0  ;;  %v1264_v39 = vshll.u32 %v5863_v46, %v1262_v10 }
 0x180   : > { %v1265_v47 = vshrl.u32 %v5852_v5, %v1263_v52  ;;  %v1268_v34 = vadd.s32 127, %v1267_v26  ;;  %v1145_v19 = vadd.s32 1, %v5885_v60  ;;  %v859_v18 = vxor.u32 2147483648, %v5888_v3 }
 0x181   : > { %v1142_v15 = vmul.u32 %v5858_v22, %v1126_v28  ;;  %v1414_v45 = vsub.s32 32, %v1413_v11  ;;  %vm1431_vm14 = vcmp.lt.s32.totalorder %v5895_v44, 1  ;;  %v1416_v1 = vshll.u32 %v5206_v49, %v1413_v11 }
 0x182   : > { %v1266_v58 = vor.u32 %v1265_v47, %v1264_v39  ;;  %v1269_v31 = vshll.u32 %v1268_v34, 23  ;;  %v1419_v61 = vshll.u32 %v7035_v53, %v1413_v11  ;;  %vm1144_vm15 = vc.u32 %v5900_v41, %v5884_v62 }
 0x183   : > { %v1417_v5 = vshrl.u32 %v7035_v53, %v1414_v45  ;;  %v1422_v46 = vshll.u32 %v5208_v55, %v1413_v11  ;;  %v1425_v7 = vshll.u32 %v5209_v57, %v1413_v11  ;;  %vm1193_vm0 = vcmp.lt.s32.totalorder %v5634_v6, 0 }
 0x184   : > { %v1270_v22 = vor.u32 4788187, %v1269_v31  ;;  %v1146_v10 = vsel %vm1144_vm15, %v1145_v19, %v5885_v60  ;;  %v1420_v36 = vshrl.u32 %v5208_v55, %v1414_v45  ;;  %v1428_v0 = vshll.u32 %v5210_v59, %v1413_v11 }
 0x185   : > { %v1147_v52 = vadd.s32 %v1146_v10, %v1142_v15  ;;  %v1418_v26 = vor.u32 %v1417_v5, %v1416_v1  ;;  %v1423_v28 = vshrl.u32 %v5209_v57, %v1414_v45  ;;  %v1426_v38 = vshrl.u32 %v5210_v59, %v1414_v45 }
 0x186   : > { %v1271_v39 = vand.u32 2147483647, %v1270_v22  ;;  %v1273_v47 = vcvt.s32.f32 %v1266_v58  ;;  %v1421_v34 = vor.u32 %v1420_v36, %v1419_v61  ;;  %v1429_v53 = vshrl.u32 %v5211_v2, %v1414_v45 }
 0x187   : > { %vm777_vm1 = vcmp.lt.s32.totalorder %v5488_v43, 0  ;;  %vm5925_vm2 = vcmp.le.f32.partialorder %v1191_v48, 0.7853982  ;;  %v1148_v11 = vadd.s32 536870912, %v1147_v52  ;;  %v1415_v19 = vshrl.u32 %v5206_v49, %v1414_v45 }
 0x188   : > { %v1424_v15 = vor.u32 %v1423_v28, %v1422_v46  ;;  %v1427_v31 = vor.u32 %v1426_v38, %v1425_v7  ;;  %v1274_v1 = vmul.f32 %v1273_v47, %v1271_v39  ;;  %vm1089_vm3 = vcmp.lt.s32.totalorder %v5726_v37, 0 }
 0x189   : > { %v1430_v58 = vor.u32 %v1429_v53, %v1428_v0  ;;  %vm1433_vm5 = vcmp.lt.s32.totalorder %v5895_v44, 3  ;;  %vm1434_vm6 = vcmp.lt.s32.totalorder %v5895_v44, 4  ;;  %v1149_v61 = vshrl.u32 %v1148_v11, 30 }
 0x18a   : > { %v1436_v5 = vsel %vm1434_vm6, %v1424_v15, 2102212464  ;;  %v1439_v48 = vsel %vm1431_vm14, %v1418_v26, %v1421_v34  ;;  %v1440_v22 = vsel %vm1434_vm6, %v1427_v31, 920167782  ;;  %v1275_v10 = vxor.u32 2147483648, %v1274_v1 }
 0x18b   : > { %vm1432_vm7 = vcmp.lt.s32.totalorder %v5895_v44, 2  ;;  %v1441_v45 = vsel %vm1433_vm5, %v1424_v15, %v1440_v22  ;;  %v1299_v46 = vshrl.u32 %v1298_v32, 23  ;;  %vm5942_vm8 = vcmp.le.f32.partialorder %v1087_v35, 0.7853982 }
 0x18c   : > { %v1150_v7 = vshll.u32 %v1149_v61, 30  ;;  %v1435_v36 = vsel %vm1431_vm14, %v1415_v19, %v1418_v26  ;;  %v1442_v0 = vsel %vm1432_vm7, %v1439_v48, %v1441_v45  ;;  %v1443_v28 = vsel %vm1431_vm14, %v1421_v34, %v1424_v15 }
 0x18d   : > { %v1437_v38 = vsel %vm1433_vm5, %v1421_v34, %v1436_v5  ;;  %v1444_v32 = vsel %vm1434_vm6, %v1430_v58, 1326507024  ;;  %v5955_v39 = vmul.u32.u64.low %v5860_v54, %v1442_v0  ;;  %v5956_v35 = vmul.u32.u64.high %v5860_v54, %v1442_v0, %v5955_v39 }
 0x18e   : > { %v1278_v47 = vsel %vm1193_vm0, %v1277_v51, %v5840_v21  ;;  %v5962_v26 = vsub.s32 %v1147_v52, %v1150_v7  ;;  %v1173_v11 = vsub.s32 4, %v1149_v61  ;;  %v1445_v19 = vsel %vm1433_vm5, %v1427_v31, %v1444_v32 }
 0x18f   : > { %4913 = vsinq.f32 %v5831_v40  ;;  %v1276_v34 = vsel %vm1193_vm0, %v1275_v10, %v1274_v1  ;;  %v1446_v15 = vsel %vm1432_vm7, %v1443_v28, %v1445_v19  ;;  %v1302_v58 = vand.u32 8388607, %v1295_v30 }
 0x190   : > { %v1153_v5 = vsub.s32 0, %v5962_v26  ;;  %v1438_v21 = vsel %vm1432_vm7, %v1435_v36, %v1437_v38  ;;  %v5977_v51 = vmul.u32.u64.low %v5860_v54, %v1446_v15  ;;  %v5978_v52 = vmul.u32.u64.high %v5860_v54, %v1446_v15, %v5977_v51 }
 0x191   : > { %v860_v40 = vsel %vm777_vm1, %v859_v18, %v5888_v3  ;;  %v5987_v31 = vsel %vm5925_vm2, 0, %v1278_v47  ;;  %v1457_v1 = vadd.s32 1, %v5956_v35  ;;  %v4370_v48 = vadd.s32 4294967169, %v1299_v46 }
 0x192   : > { %v1279_v44 = vsel %vm5925_vm2, %v5634_v6, %v1276_v34  ;;  %v1143_v22 = vadd.s32 %v5884_v62, %v5900_v41  ;;  %v4363_v10 = vmin.u32 %v1153_v5, %v5962_v26  ;;  %v1174_v45 = vsel %vm1089_vm3, %v1173_v11, %v1149_v61 }
 0x193   : > { %v1454_v3 = vmul.u32 %v5860_v54, %v1438_v21  ;;  %v1303_v18 = vor.u32 8388608, %v1302_v58  ;;  %v1305_v7 = vadd.s32 1, %v4370_v48  ;;  %vm6001_vm9 = vcmp.le.f32.partialorder %v671_v20, 0.7853982 }
 0x194   : > { %v1155_v60 = vclz %v4363_v10  ;;  %vm1456_vm10 = vc.u32 %v5978_v52, %v5955_v39  ;;  %v757_v62 = vsub.s32 4, %v5594_v14  ;;  %v759_v41 = vsel %vm6001_vm9, %v5472_v17, %v5848_v33 }
 0x195   : > { %4915 = vcosq.f32 %v1279_v44  ;;  %v6014_v54 = vsel %vm5942_vm8, 0, %v1174_v45  ;;  %v1458_v20 = vsel %vm1456_vm10, %v1457_v1, %v5956_v35  ;;  %vm1306_vm11 = vcmp.gt.s32.totalorder %v1305_v7, 0 }
 0x196   : > { %4917 = vsinq.f32 %v1279_v44  ;;  %v4364_v61 = vadd.s32 4294967294, %v1155_v60  ;;  %v1459_v36 = vadd.s32 %v1458_v20, %v1454_v3  ;;  %v1307_v0 = vsel %vm1306_vm11, %v1305_v7, 0 }
 0x197   : > { %v1309_v28 = vand.u32 31, %v1307_v0  ;;  %v6017_v38 = vshll.u32 %v1303_v18, 8  ;;  %4919 = vcosq.f32 %v759_v41  ;;  %vm6021_vm12 = vcmp.le.f32.partialorder %v775_v42, 0.7853982 }
 0x198   : > { %vm4365_vm13 = vcmp.lt.s32.totalorder %v4364_v61, 0  ;;  %v1460_v32 = vadd.s32 536870912, %v1459_v36  ;;  %v6028_v35 = vsel %vm673_vm4, %v757_v62, %v5594_v14  ;;  %4921 = vsinq.f32 %v759_v41 }
 0x199   : > { %v6030_v47 = vpop.eup %4913  ;;  %v1158_v11 = vsel %vm4365_vm13, 0, %v4364_v61  ;;  %v1308_v19 = vshrl.u32 %v1307_v0, 5  ;;  %v1310_v34 = vsub.s32 32, %v1309_v28  ;;  %v861_v15 = vsub.s32 4, %v5741_v63 }
 0x19a   : > { %v1159_v58 = vsub.s32 32, %v1158_v11  ;;  %v1163_v42 = vsub.s32 4294967266, %v1158_v11  ;;  %v6033_v5 = vshrl.u32 %v1460_v32, 30  ;;  %v6038_v21 = vsel %vm6021_vm12, %v5488_v43, %v860_v40 }
 0x19b   : > { %v1312_v14 = vshll.u32 %v5206_v49, %v1309_v28  ;;  %v7064_v51 = vmov 2475754826   ;;  %v1316_v44 = vshrl.u32 %v5208_v55, %v1310_v34  ;;  %v1160_v10 = vshll.u32 %v5962_v26, %v1158_v11 }
 0x19c   : > { %v1313_v1 = vshrl.u32 %v7064_v51, %v1310_v34  ;;  %v1315_v48 = vshll.u32 %v7064_v51, %v1309_v28  ;;  %v1161_v45 = vshrl.u32 %v1143_v22, %v1159_v58  ;;  %v1164_v3 = vadd.s32 127, %v1163_v42 }
 0x19d   : > { %v1462_v18 = vshll.u32 %v6033_v5, 30  ;;  %v1311_v7 = vshrl.u32 %v5206_v49, %v1310_v34  ;;  %v1318_v40 = vshll.u32 %v5208_v55, %v1309_v28  ;;  %v1319_v62 = vshrl.u32 %v5209_v57, %v1310_v34 }
 0x19e   : > { %v1314_v60 = vor.u32 %v1313_v1, %v1312_v14  ;;  %v1162_v41 = vor.u32 %v1161_v45, %v1160_v10  ;;  %v1165_v20 = vshll.u32 %v1164_v3, 23  ;;  %v1317_v0 = vor.u32 %v1316_v44, %v1315_v48 }
 0x19f   : > { %v6049_v61 = vsub.s32 %v1459_v36, %v1462_v18  ;;  %v6051_v32 = vpop.eup %4915  ;;  %v1320_v51 = vor.u32 %v1319_v62, %v1318_v40  ;;  %v1321_v26 = vshll.u32 %v5209_v57, %v1309_v28  ;;  %v1322_v22 = vshrl.u32 %v5210_v59, %v1310_v34 }
 0x1a0   : > { %v1324_v11 = vshll.u32 %v5210_v59, %v1309_v28  ;;  %v6056_v49 = vpop.eup %4917  ;;  %v1166_v58 = vor.u32 4788187, %v1165_v20  ;;  %v1169_v55 = vcvt.s32.f32 %v1162_v41  ;;  %v1325_v14 = vshrl.u32 %v5211_v2, %v1310_v34 }
 0x1a1   : > { %v1465_v42 = vsub.s32 0, %v6049_v61  ;;  %v6060_v36 = vpop.eup %4919  ;;  %v1323_v1 = vor.u32 %v1322_v22, %v1321_v26  ;;  %vm1327_vm4 = vcmp.lt.s32.totalorder %v1308_v19, 1  ;;  %vm1328_vm14 = vcmp.lt.s32.totalorder %v1308_v19, 2 }
 0x1a2   : > { %vm1329_vm15 = vcmp.lt.s32.totalorder %v1308_v19, 3  ;;  %v6062_v48 = vpop.eup %4921  ;;  %v1167_v57 = vand.u32 2147483647, %v1166_v58  ;;  %v1326_v59 = vor.u32 %v1325_v14, %v1324_v11  ;;  %vm1330_vm0 = vcmp.lt.s32.totalorder %v1308_v19, 4 }
 0x1a3   : > { %v4375_v44 = vmin.u32 %v1465_v42, %v6049_v61  ;;  %v1331_v28 = vsel %vm1327_vm4, %v1311_v7, %v1314_v60  ;;  %v1332_v10 = vsel %vm1330_vm0, %v1320_v51, 2102212464  ;;  %v1335_v45 = vsel %vm1327_vm4, %v1314_v60, %v1317_v0 }
 0x1a4   : > { %v1336_v3 = vsel %vm1330_vm0, %v1323_v1, 920167782  ;;  %v1170_v2 = vmul.f32 %v1169_v55, %v1167_v57  ;;  %vm1401_vm2 = vcmp.lt.s32.totalorder %v5773_v29, 0  ;;  %v1333_v18 = vsel %vm1329_vm15, %v1317_v0, %v1332_v10 }
 0x1a5   : > { %v1467_v34 = vclz %v4375_v44  ;;  %v1337_v40 = vsel %vm1329_vm15, %v1320_v51, %v1336_v3  ;;  %v1339_v41 = vsel %vm1327_vm4, %v1317_v0, %v1320_v51  ;;  %v1340_v20 = vsel %vm1330_vm0, %v1326_v59, 1326507024 }
 0x1a6   : > { %v1338_v62 = vsel %vm1328_vm14, %v1335_v45, %v1337_v40  ;;  %4923 = vcosq.f32 %v6038_v21  ;;  %v1171_v7 = vxor.u32 2147483648, %v1170_v2  ;;  %v1334_v60 = vsel %vm1328_vm14, %v1331_v28, %v1333_v18 }
 0x1a7   : > { %v4376_v26 = vadd.s32 4294967294, %v1467_v34  ;;  %v1341_v22 = vsel %vm1329_vm15, %v1323_v1, %v1340_v20  ;;  %v6077_v58 = vmul.u32.u64.low %v6017_v38, %v1338_v62  ;;  %v6078_v55 = vmul.u32.u64.high %v6017_v38, %v1338_v62, %v6077_v58 }
 0x1a8   : > { %v1342_v11 = vsel %vm1328_vm14, %v1339_v41, %v1341_v22  ;;  %v760_v42 = vsel %vm6001_vm9, 0, %v6028_v35  ;;  %v7065_v0 = vand.u32 2147483647, %v5773_v29  ;;  %v862_v19 = vsel %vm777_vm1, %v861_v15, %v5741_v63 }
 0x1a9   : > { %vm4377_vm6 = vcmp.lt.s32.totalorder %v4376_v26, 0  ;;  %v6090_v14 = vmul.u32.u64.low %v6017_v38, %v1342_v11  ;;  %v6091_v1 = vmul.u32.u64.high %v6017_v38, %v1342_v11, %v6090_v14  ;;  %v1455_v46 = vadd.s32 %v5955_v39, %v5978_v52 }
 0x1aa   : > { %vm6085_vm5 = vcmp.le.f32.partialorder %v7065_v0, 0.7853982  ;;  %v1470_v35 = vsel %vm4377_vm6, 0, %v4376_v26  ;;  %v1485_v57 = vsub.s32 4, %v6033_v5  ;;  %v1350_v44 = vmul.u32 %v6017_v38, %v1334_v60 }
 0x1ab   : > { %v1172_v59 = vsel %vm1089_vm3, %v1171_v7, %v1170_v2  ;;  %v1471_v28 = vsub.s32 32, %v1470_v35  ;;  %v1475_v10 = vsub.s32 4294967266, %v1470_v35  ;;  %v768_v45 = vxor.u32 2147483648, %v6062_v48 }
 0x1ac   : > { %v1353_v3 = vadd.s32 1, %v6078_v55  ;;  %v771_v34 = vxor.u32 2147483648, %v6060_v36  ;;  %v864_v63 = vsel %vm6021_vm12, 0, %v862_v19  ;;  %v1604_v39 = vand.u32 3, %v760_v42 }
 0x1ad   : > { %v1472_v52 = vshll.u32 %v6049_v61, %v1470_v35  ;;  %v1473_v15 = vshrl.u32 %v1455_v46, %v1471_v28  ;;  %v1476_v18 = vadd.s32 127, %v1475_v10  ;;  %vm1352_vm1 = vc.u32 %v6091_v1, %v6077_v58 }
 0x1ae   : > { %vm763_vm3 = vweird.f32 %v5472_v17  ;;  %v1175_v38 = vsel %vm5942_vm8, %v5726_v37, %v1172_v59  ;;  %v1486_v2 = vsel %vm1401_vm2, %v1485_v57, %v6033_v5  ;;  %v1354_v33 = vsel %vm1352_vm1, %v1353_v3, %v6078_v55 }
 0x1af   : > { %4925 = vsinq.f32 %v6038_v21  ;;  %v1474_v40 = vor.u32 %v1473_v15, %v1472_v52  ;;  %v1477_v61 = vshll.u32 %v1476_v18, 23  ;;  %v1355_v62 = vadd.s32 %v1354_v33, %v1350_v44 }
 0x1b0   : > { %vm1606_vm7 = vcmp.eq.s32.totalorder %v1604_v39, 0  ;;  %v4924_v41 = vpop.eup %4923  ;;  %vm1609_vm9 = vcmp.eq.s32.totalorder %v1604_v39, 2  ;;  %v1707_v7 = vand.u32 3, %v864_v63  ;;  %v764_v26 = vadd.s32 3, %v760_v42 }
 0x1b1   : > { %v1608_v20 = vsel %vm1606_vm7, %v6060_v36, %v768_v45  ;;  %4927 = vcosq.f32 %v1175_v38  ;;  %v1478_v53 = vor.u32 4788187, %v1477_v61  ;;  %vm1297_vm8 = vcmp.lt.s32.totalorder %v5838_v27, 0 }
 0x1b2   : > { %v1356_v60 = vadd.s32 536870912, %v1355_v62  ;;  %v1611_v5 = vsel %vm1609_vm9, %v771_v34, %v6062_v48  ;;  %4929 = vsinq.f32 %v1175_v38  ;;  %v1481_v22 = vcvt.s32.f32 %v1474_v40 }
 0x1b3   : > { %v6125_v21 = vsel %vm6085_vm5, 0, %v1486_v2  ;;  %vm1605_vm10 = vcmp.lt.s32.totalorder %v1604_v39, 2  ;;  %v1479_v11 = vand.u32 2147483647, %v1478_v53  ;;  %v765_v14 = vand.u32 3, %v764_v26 }
 0x1b4   : > { %v1357_v55 = vshrl.u32 %v1356_v60, 30  ;;  %v1612_v0 = vsel %vm1605_vm10, %v1608_v20, %v1611_v5  ;;  %v6128_v42 = vadd.s32 %v6077_v58, %v6091_v1  ;;  %vm867_vm11 = vweird.f32 %v5488_v43 }
 0x1b5   : > { %v875_v19 = vxor.u32 2147483648, %v4924_v41  ;;  %vm1708_vm12 = vcmp.lt.s32.totalorder %v1707_v7, 2  ;;  %v868_v46 = vadd.s32 3, %v864_v63  ;;  %v1482_v35 = vmul.f32 %v1481_v22, %v1479_v11 }
 0x1b6   : > { %v1358_v57 = vshll.u32 %v1357_v55, 30  ;;  %vm1709_vm13 = vcmp.eq.s32.totalorder %v1707_v7, 0  ;;  %vm1712_vm4 = vcmp.eq.s32.totalorder %v1707_v7, 2  ;;  %vm2355_vm14 = vcmask 261120  }
 0x1b7   : > { %v1381_v44 = vsub.s32 4, %v1357_v55  ;;  %v1613_v59 = vsel %vm763_vm3, nan, %v1612_v0  ;;  %vm767_vm15 = vcmp.eq.s32.totalorder %v765_v14, 0  ;;  %v869_v28 = vand.u32 3, %v868_v46 }
 0x1b8   : > { %v1483_v10 = vxor.u32 2147483648, %v1482_v35  ;;  %v6133_v3 = vsub.s32 %v1355_v62, %v1358_v57  ;;  %v769_v58 = vsel %vm767_vm15, %v6060_v36, %v768_v45  ;;  %vm770_vm0 = vcmp.eq.s32.totalorder %v765_v14, 2 }
 0x1b9   : > { %v4926_v1 = vpop.eup %4925  ;;  %vm766_vm6 = vcmp.lt.s32.totalorder %v765_v14, 2  ;;  %v772_v63 = vsel %vm770_vm0, %v771_v34, %v6062_v48  ;;  %v976_v39 = vxor.u32 2147483648, %v5854_v13  ;;  %v979_v52 = vxor.u32 2147483648, %v5844_v56 }
 0x1ba   : > { %v1484_v15 = vsel %vm1401_vm2, %v1483_v10, %v1482_v35  ;;  %v1361_v18 = vsub.s32 0, %v6133_v3  ;;  %v872_v38 = vxor.u32 2147483648, %v4926_v1  ;;  %v1714_v2 = vsel %vm1712_vm4, %v875_v19, %v4926_v1 }
 0x1bb   : > { %v6145_v36 = vsel %vm1297_vm8, %v1381_v44, %v1357_v55  ;;  %v773_v45 = vsel %vm766_vm6, %v769_v58, %v772_v63  ;;  %vm870_vm1 = vcmp.lt.s32.totalorder %v869_v28, 2  ;;  %vm871_vm7 = vcmp.eq.s32.totalorder %v869_v28, 0  ;;  %v6147_v48 = vpop.eup %4927 }
 0x1bc   : > { %v1487_v34 = vsel %vm6085_vm5, %v5773_v29, %v1484_v15  ;;  %v4371_v33 = vmin.u32 %v1361_v18, %v6133_v3  ;;  %v1711_v40 = vsel %vm1709_vm13, %v4924_v41, %v872_v38  ;;  %vm874_vm2 = vcmp.eq.s32.totalorder %v869_v28, 2  ;;  %v6154_v61 = vpop.eup %4929 }
 0x1bd   : > { %v1715_v62 = vsel %vm1708_vm12, %v1711_v40, %v1714_v2  ;;  %v873_v20 = vsel %vm871_vm7, %v4924_v41, %v872_v38  ;;  %v876_v26 = vsel %vm874_vm2, %v875_v19, %v4926_v1  ;;  %v1080_v53 = vxor.u32 2147483648, %v6030_v47 }
 0x1be   : > { %v1363_v60 = vclz %v4371_v33  ;;  %v1716_v5 = vsel %vm867_vm11, nan, %v1715_v62  ;;  %v774_v51 = vsel %vm763_vm3, nan, %v773_v45  ;;  %v877_v22 = vsel %vm870_vm1, %v873_v20, %v876_v26 }
 0x1bf   : > { %vm971_vm5 = vweird.f32 %v5469_v16  ;;  %vm1075_vm9 = vweird.f32 %v5481_v25  ;;  %v2339_v11 = vpack.c.bf16 %v1716_v5, %v1613_v59  ;;  %v878_v7 = vsel %vm867_vm11, nan, %v877_v22 }
 0x1c0   : > { %v1810_v41 = vand.u32 3, %v5802_v50  ;;  %v1913_v55 = vand.u32 3, %v5835_v24  ;;  %4931 = vcosq.f32 %v1487_v34  ;;  %v4372_v0 = vadd.s32 4294967294, %v1363_v60 }
 0x1c1   : > { %v1507_v14 = vpack.c.bf16 %v878_v7, %v774_v51  ;;  %v1083_v19 = vxor.u32 2147483648, %v5880_v23  ;;  %4613 = vmatprep.mubr.msk.bf16.mxu1 %vm2355_vm14, %v2339_v11  ;;  %v972_v17 = vadd.s32 3, %v5802_v50  ;;  %v1076_v46 = vadd.s32 3, %v5835_v24 }
 0x1c2   : > { %vm1812_vm3 = vcmp.eq.s32.totalorder %v1810_v41, 0  ;;  %vm1815_vm10 = vcmp.eq.s32.totalorder %v1810_v41, 2  ;;  %vm4373_vm12 = vcmp.lt.s32.totalorder %v4372_v0, 0  ;;  %vm1915_vm11 = vcmp.eq.s32.totalorder %v1913_v55, 0 }
 0x1c3   : > { %4625 = vmatprep.mubr.msk.bf16.mxu0 %vm2355_vm14, %v1507_v14  ;;  %v1814_v43 = vsel %vm1812_vm3, %v5844_v56, %v976_v39  ;;  %v1817_v35 = vsel %vm1815_vm10, %v979_v52, %v5854_v13  ;;  %4933 = vsinq.f32 %v1487_v34  ;;  %v1366_v57 = vsel %vm4373_vm12, 0, %v4372_v0 }
 0x1c4   : > { %vm1811_vm13 = vcmp.lt.s32.totalorder %v1810_v41, 2  ;;  %v1917_v44 = vsel %vm1915_vm11, %v5880_v23, %v1080_v53  ;;  %v1367_v50 = vsub.s32 32, %v1366_v57  ;;  %v1371_v59 = vsub.s32 4294967266, %v1366_v57 }
 0x1c5   : > { %v1818_v24 = vsel %vm1811_vm13, %v1814_v43, %v1817_v35  ;;  %vm1918_vm4 = vcmp.eq.s32.totalorder %v1913_v55, 2  ;;  %vm1914_vm15 = vcmp.lt.s32.totalorder %v1913_v55, 2  ;;  %v973_v10 = vand.u32 3, %v972_v17 }
 0x1c6   : > { %v1920_v28 = vsel %vm1918_vm4, %v1083_v19, %v6030_v47  ;;  %v1077_v58 = vand.u32 3, %v1076_v46  ;;  %v1368_v1 = vshll.u32 %v6133_v3, %v1366_v57  ;;  %v1369_v63 = vshrl.u32 %v6128_v42, %v1367_v50 }
 0x1c7   : > { %v1372_v15 = vadd.s32 127, %v1371_v59  ;;  %v1921_v18 = vsel %vm1914_vm15, %v1917_v44, %v1920_v28  ;;  %v1819_v38 = vsel %vm971_vm5, nan, %v1818_v24  ;;  %vm975_vm0 = vcmp.eq.s32.totalorder %v973_v10, 0 }
 0x1c8   : > { %v1922_v2 = vsel %vm1075_vm9, nan, %v1921_v18  ;;  %vm978_vm6 = vcmp.eq.s32.totalorder %v973_v10, 2  ;;  %v1370_v45 = vor.u32 %v1369_v63, %v1368_v1  ;;  %v977_v40 = vsel %vm975_vm0, %v5844_v56, %v976_v39 }
 0x1c9   : > { %v1373_v34 = vshll.u32 %v1372_v15, 23  ;;  %v2340_v33 = vpack.c.bf16 %v1922_v2, %v1819_v38  ;;  %vm974_vm1 = vcmp.lt.s32.totalorder %v973_v10, 2  ;;  %v980_v42 = vsel %vm978_vm6, %v979_v52, %v5854_v13 }
 0x1ca   : > { %vm1079_vm7 = vcmp.eq.s32.totalorder %v1077_v58, 0  ;;  %vm1179_vm2 = vweird.f32 %v5726_v37  ;;  %v1184_v3 = vxor.u32 2147483648, %v6154_v61  ;;  %v6195_v62 = vpop.eup %4931  ;;  %vm6199_vm3 = vcmp.le.f32.partialorder %v1295_v30, 0.7853982 }
 0x1cb   : > { %v1374_v26 = vor.u32 4788187, %v1373_v34  ;;  %4614 = vmatmul.mubr.msk.bf16.vlgmr.msra.gmra.mrb[0].mxu1 %vm2355_vm14, %v2340_v33  ;;  %v981_v39 = vsel %vm974_vm1, %v977_v40, %v980_v42  ;;  %v1081_v56 = vsel %vm1079_vm7, %v5880_v23, %v1080_v53  ;;  %vm1082_vm10 = vcmp.eq.s32.totalorder %v1077_v58, 2 }
 0x1cc   : > { %v1377_v13 = vcvt.s32.f32 %v1370_v45  ;;  %v982_v52 = vsel %vm971_vm5, nan, %v981_v39  ;;  %vm1078_vm12 = vcmp.lt.s32.totalorder %v1077_v58, 2  ;;  %v1084_v60 = vsel %vm1082_vm10, %v1083_v19, %v6030_v47 }
 0x1cd   : > { %v1375_v5 = vand.u32 2147483647, %v1374_v26  ;;  %v1085_v51 = vsel %vm1078_vm12, %v1081_v56, %v1084_v60  ;;  %v1187_v30 = vxor.u32 2147483648, %v6147_v48  ;;  %v1288_v22 = vxor.u32 2147483648, %v6056_v49  ;;  %v6210_v11 = vpop.eup %4933 }
 0x1ce   : > { %v1086_v7 = vsel %vm1075_vm9, nan, %v1085_v51  ;;  %v2016_v23 = vand.u32 3, %v6014_v54  ;;  %v2119_v53 = vand.u32 3, %v5987_v31  ;;  %v1180_v16 = vadd.s32 3, %v6014_v54 }
 0x1cf   : > { %v1378_v41 = vmul.f32 %v1377_v13, %v1375_v5  ;;  %v1508_v55 = vpack.c.bf16 %v1086_v7, %v982_v52  ;;  %v1291_v47 = vxor.u32 2147483648, %v6051_v32  ;;  %v1284_v0 = vadd.s32 3, %v5987_v31 }
 0x1d0   : > { %vm2017_vm5 = vcmp.lt.s32.totalorder %v2016_v23, 2  ;;  %vm2018_vm11 = vcmp.eq.s32.totalorder %v2016_v23, 0  ;;  %vm2021_vm13 = vcmp.eq.s32.totalorder %v2016_v23, 2  ;;  %vm2120_vm4 = vcmp.lt.s32.totalorder %v2119_v53, 2 }
 0x1d1   : > { %v1379_v14 = vxor.u32 2147483648, %v1378_v41  ;;  %4626 = vmatmul.mubr.msk.bf16.vlgmr.msra.gmra.mrb[0].mxu0 %vm2355_vm14, %v1508_v55  ;;  %v2020_v25 = vsel %vm2018_vm11, %v6147_v48, %v1184_v3  ;;  %v2023_v19 = vsel %vm2021_vm13, %v1187_v30, %v6154_v61  ;;  %vm2121_vm9 = vcmp.eq.s32.totalorder %v2119_v53, 0  ;;  %v4844_v55 = vld [vmem:[#allocation7 + $0x8] sm:$0xff]  }
 0x1d2   : > { %v2024_v17 = vsel %vm2017_vm5, %v2020_v25, %v2023_v19  ;;  %v2123_v54 = vsel %vm2121_vm9, %v6051_v32, %v1288_v22  ;;  %vm2124_vm15 = vcmp.eq.s32.totalorder %v2119_v53, 2  ;;  %v1181_v46 = vand.u32 3, %v1180_v16 }
 0x1d3   : > { %v1380_v31 = vsel %vm1297_vm8, %v1379_v14, %v1378_v41  ;;  %v2025_v43 = vsel %vm1179_vm2, nan, %v2024_v17  ;;  %v2126_v35 = vsel %vm2124_vm15, %v1291_v47, %v6056_v49  ;;  %v1285_v57 = vand.u32 3, %v1284_v0  ;;  %v4843_v41 = vld [vmem:[#allocation7] sm:$0xff]  }
 0x1d4   : > { %v1383_v44 = vsel %vm6199_vm3, %v5838_v27, %v1380_v31  ;;  %vm1283_vm0 = vweird.f32 %v5634_v6  ;;  %v2127_v50 = vsel %vm2120_vm4, %v2123_v54, %v2126_v35  ;;  %vm1183_vm6 = vcmp.eq.s32.totalorder %v1181_v46, 0  ;;  %4633 = vmatprep.subr.bf16.mxu1 %v4843_v41  ;;  %v4422_v54 = vld [vmem:[%s7018_s8] ss:$0 sm:$0xff] }
 0x1d5   : > { %4935 = vcosq.f32 %v1383_v44  ;;  %v2128_v59 = vsel %vm1283_vm0, nan, %v2127_v50  ;;  %v1185_v24 = vsel %vm1183_vm6, %v6147_v48, %v1184_v3  ;;  %vm1186_vm8 = vcmp.eq.s32.totalorder %v1181_v46, 2  ;;  %4634 = vmatpush3.bf16.msra.mxu1 %v4843_v41 }
 0x1d6   : > { %4937 = vsinq.f32 %v1383_v44  ;;  %v2341_v28 = vpack.c.bf16 %v2128_v59, %v2025_v43  ;;  %vm1182_vm1 = vcmp.lt.s32.totalorder %v1181_v46, 2  ;;  %v1188_v10 = vsel %vm1186_vm8, %v1187_v30, %v6154_v61  ;;  %4635 = vmatprep.subr.bf16.mxu1 %v4844_v55 }
 0x1d7   : > { %v1384_v58 = vsel %vm6199_vm3, 0, %v6145_v36  ;;  %v1189_v1 = vsel %vm1182_vm1, %v1185_v24, %v1188_v10  ;;  %vm1287_vm7 = vcmp.eq.s32.totalorder %v1285_v57, 0  ;;  %vm1290_vm10 = vcmp.eq.s32.totalorder %v1285_v57, 2 }
 0x1d8   : > { %4617 = vmatprep.mubr.msk.bf16.mxu1 %vm2355_vm14, %v2341_v28  ;;  %v1190_v63 = vsel %vm1179_vm2, nan, %v1189_v1  ;;  %vm1286_vm12 = vcmp.lt.s32.totalorder %v1285_v57, 2  ;;  %v1289_v48 = vsel %vm1287_vm7, %v6051_v32, %v1288_v22  ;;  %v1292_v15 = vsel %vm1290_vm10, %v1291_v47, %v6056_v49  ;;  %v6269_v47 = vld [vmem:[%s7014_s4] sm:$0xff]  }
 0x1d9   : > { %v1293_v18 = vsel %vm1286_vm12, %v1289_v48, %v1292_v15  ;;  %v1496_v61 = vxor.u32 2147483648, %v6210_v11  ;;  %v1499_v38 = vxor.u32 2147483648, %v6195_v62  ;;  %v2325_v36 = vand.u32 3, %v6125_v21  ;;  %4636 = vmatpush3.bf16.msra.mxu1 %v4844_v55 }
 0x1da   : > { %v1294_v2 = vsel %vm1283_vm0, nan, %v1293_v18  ;;  %v2222_v45 = vand.u32 3, %v1384_v58  ;;  %v1388_v34 = vadd.s32 3, %v1384_v58  ;;  %v1492_v37 = vadd.s32 3, %v6125_v21 }
 0x1db   : > { %v1509_v33 = vpack.c.bf16 %v1294_v2, %v1190_v63  ;;  %vm2327_vm2 = vcmp.eq.s32.totalorder %v2325_v36, 0  ;;  %vm2330_vm3 = vcmp.eq.s32.totalorder %v2325_v36, 2  ;;  %vm1491_vm5 = vweird.f32 %v5773_v29  ;;  %v4845_v29 = vld [vmem:[#allocation7 + $0x10] sm:$0xff]  }
 0x1dc   : > { %v2329_v32 = vsel %vm2327_vm2, %v6195_v62, %v1496_v61  ;;  %v2332_v49 = vsel %vm2330_vm3, %v1499_v38, %v6210_v11  ;;  %v1389_v40 = vand.u32 3, %v1388_v34  ;;  %v1493_v42 = vand.u32 3, %v1492_v37  ;;  %4637 = vmatprep.subr.bf16.mxu1 %v4845_v29 }
 0x1dd   : > { %4629 = vmatprep.mubr.msk.bf16.mxu0 %vm2355_vm14, %v1509_v33  ;;  %vm2223_vm11 = vcmp.lt.s32.totalorder %v2222_v45, 2  ;;  %vm2326_vm13 = vcmp.lt.s32.totalorder %v2325_v36, 2  ;;  %vm2224_vm4 = vcmp.eq.s32.totalorder %v2222_v45, 0  ;;  %vm2227_vm6 = vcmp.eq.s32.totalorder %v2222_v45, 2  ;;  %4638 = vmatpush3.bf16.msra.mxu1 %v4845_v29 }
 0x1de   : > { %v2333_v3 = vsel %vm2326_vm13, %v2329_v32, %v2332_v49  ;;  %vm1495_vm9 = vcmp.eq.s32.totalorder %v1493_v42, 0  ;;  %vm1498_vm15 = vcmp.eq.s32.totalorder %v1493_v42, 2  ;;  %vm1494_vm0 = vcmp.lt.s32.totalorder %v1493_v42, 2 }
 0x1df   : > { %v4936_v6 = vpop.eup %4935  ;;  %v1497_v26 = vsel %vm1495_vm9, %v6195_v62, %v1496_v61  ;;  %v1500_v39 = vsel %vm1498_vm15, %v1499_v38, %v6210_v11  ;;  %vm1394_vm8 = vcmp.eq.s32.totalorder %v1389_v40, 2  ;;  %vm1390_vm1 = vcmp.lt.s32.totalorder %v1389_v40, 2 }
 0x1e0   : > { %v4938_v21 = vpop.eup %4937  ;;  %v1395_v20 = vxor.u32 2147483648, %v4936_v6  ;;  %v1501_v13 = vsel %vm1494_vm0, %v1497_v26, %v1500_v39  ;;  %vm1391_vm7 = vcmp.eq.s32.totalorder %v1389_v40, 0  ;;  %v2334_v51 = vsel %vm1491_vm5, nan, %v2333_v3 }
 0x1e1   : > { %v1392_v56 = vxor.u32 2147483648, %v4938_v21  ;;  %v1502_v22 = vsel %vm1491_vm5, nan, %v1501_v13  ;;  %vm1387_vm10 = vweird.f32 %v5838_v27  ;;  %v4846_v27 = vld [vmem:[#allocation7 + $0x18] sm:$0xff]  }
 0x1e2   : > { %v2229_v52 = vsel %vm2227_vm6, %v1395_v20, %v4938_v21  ;;  %v1396_v60 = vsel %vm1394_vm8, %v1395_v20, %v4938_v21  ;;  %4639 = vmatprep.subr.bf16.mxu1 %v4846_v27 }
 0x1e3   : > { %v2226_v5 = vsel %vm2224_vm4, %v4936_v6, %v1392_v56  ;;  %v1393_v30 = vsel %vm1391_vm7, %v4936_v6, %v1392_v56  ;;  %4640 = vmatpush3.bf16.msra.mxu1 %v4846_v27 }
 0x1e4   : > { %v2230_v62 = vsel %vm2223_vm11, %v2226_v5, %v2229_v52  ;;  %v1397_v11 = vsel %vm1390_vm1, %v1393_v30, %v1396_v60  ;;  %4649 = vmatprep.subr.bf16.mxu1 %v6269_v47 }
 0x1e5   : > { %v2231_v7 = vsel %vm1387_vm10, nan, %v2230_v62  ;;  %v1398_v23 = vsel %vm1387_vm10, nan, %v1397_v11 }
 0x1e6   : > { %v2342_v53 = vpack.c.bf16 %v2334_v51, %v2231_v7  ;;  %v1510_v16 = vpack.c.bf16 %v1502_v22, %v1398_v23 }
 0x1e8   : > { %4618 = vmatmul.mubr.msk.bf16.gmra.mrb[4].mxu1 %vm2355_vm14, %v2342_v53  ;;  %4630 = vmatmul.mubr.msk.bf16.gmra.mrb[4].mxu0 %vm2355_vm14, %v1510_v16  ;;  %vm2636_vm14 = vcmask 523264  }
 0x29e   : > { %v4615_v0 = vpop.f32.mrb[0].mxu1 }
 0x29f   : > { %v2402_v14 = vpop.f32.mrb[1].mxu1 }
 0x2a0   : > { %v4616_v25 = vpop.f32.mrb[2].mxu1 }
 0x2a1   : > { %v2405_v19 = vpop.f32.mrb[3].mxu1 }
 0x2a4   : > { %v4627_v17 = vpop.f32.mrb[0].mxu0 }
 0x2a5   : > { %v2500_v46 = vadd.f32 %v4627_v17, %v4615_v0  ;;  %v2491_v31 = vpop.f32.mrb[1].mxu0  ;;  %v4848_v0 = vld [vmem:[%s7014_s4 + $0x8] sm:$0xff]   ;;  %v4849_v17 = vld [vmem:[%s7014_s4 + $0x10] sm:$0xff]  }
 0x2a6   : > { %v2492_v43 = vadd.f32 %v2491_v31, %v2402_v14  ;;  %v4628_v35 = vpop.f32.mrb[2].mxu0 }
 0x2a7   : > { %v2531_v57 = vadd.f32 %v4422_v54, %v2500_v46  ;;  %v2503_v44 = vadd.f32 %v4628_v35, %v4616_v25  ;;  %v2494_v50 = vpop.f32.mrb[3].mxu0 }
 0x2a8   : > { %v2529_v59 = vadd.f32 %v4422_v54, %v2492_v43  ;;  %v2495_v24 = vadd.f32 %v2494_v50, %v2405_v19  ;;  %v4852_v50 = vld [vmem:[%s7014_s4 + $0x28] sm:$0xff]  }
 0x2a9   : > { %v4425_v28 = vmul.f32 -1.442695, %v2531_v57  ;;  %v2532_v10 = vadd.f32 %v4422_v54, %v2503_v44 }
 0x2aa   : > { %v4423_v58 = vmul.f32 -1.442695, %v2529_v59  ;;  %v2530_v1 = vadd.f32 %v4422_v54, %v2495_v24 }
 0x2ab   : > { %4939 = vpow2.f32 %v4425_v28  ;;  %v4426_v63 = vmul.f32 -1.442695, %v2532_v10 }
 0x2ac   : > { %4941 = vpow2.f32 %v4423_v58  ;;  %v4424_v48 = vmul.f32 -1.442695, %v2530_v1 }
 0x2ad   : > { %4943 = vpow2.f32 %v4426_v63 }
 0x2ae   : > { %4945 = vpow2.f32 %v4424_v48  ;;  %v4853_v48 = vld [vmem:[%s7014_s4 + $0x30] sm:$0xff]  }
 0x2b5   : > { %v4940_v15 = vpop.eup %4939 }
 0x2b6   : > { %v4942_v18 = vpop.eup %4941  ;;  %v2563_v61 = vadd.f32 1.0, %v4940_v15 }
 0x2b7   : > { %v4944_v38 = vpop.eup %4943  ;;  %v2561_v36 = vadd.f32 1.0, %v4942_v18 }
 0x2b8   : > { %v4946_v2 = vpop.eup %4945  ;;  %4947 = vrcp.f32 %v2563_v61  ;;  %v2564_v45 = vadd.f32 1.0, %v4944_v38  ;;  %v4854_v61 = vld [vmem:[%s7014_s4 + $0x38] sm:$0xff]   ;;  %v4855_v38 = vld [vmem:[%s7021_s11] ss:$12 sps:$4 sm:$0xff]  }
 0x2b9   : > { %4949 = vrcp.f32 %v2561_v36  ;;  %v2562_v34 = vadd.f32 1.0, %v4946_v2  ;;  %v4857_v36 = vld [vmem:[%s7021_s11 + $0x4] ss:$12 sps:$4 sm:$0xff]   ;;  %v4858_v2 = vld [vmem:[%s7021_s11 + $0x8] ss:$12 sps:$4 sm:$0xff]  }
 0x2ba   : > { %4951 = vrcp.f32 %v2564_v45  ;;  %v4861_v45 = vld [vmem:[%s7021_s11 + $0x1c] ss:$12 sps:$4 sm:$0xff]   ;;  %3031 = vmatprep.subr.bf16.mxu0 %v4857_v36 }
 0x2bb   : > { %4953 = vrcp.f32 %v2562_v34  ;;  %v4619_v37 = vpop.f32.mrb[4].mxu1  ;;  %v4631_v33 = vpop.f32.mrb[4].mxu0  ;;  %v4862_v34 = vld [vmem:[%s7021_s11 + $0x20] ss:$12 sps:$4 sm:$0xff]   ;;  %3032 = vmatpush1.bf16.msra.mxu0 %v4855_v38 }
 0x2bc   : > { %v2516_v32 = vadd.f32 %v4631_v33, %v4619_v37  ;;  %v2418_v49 = vpop.f32.mrb[5].mxu1  ;;  %v2507_v40 = vpop.f32.mrb[5].mxu0  ;;  %v4859_v37 = vld [vmem:[%s7021_s11 + $0x18] ss:$12 sps:$4 sm:$0xff]   ;;  %3033 = vmatprep.subr.bf16.mxu0 %v4861_v45  ;;  %v4865_v33 = vld [vmem:[%s7021_s11 + $0x34] ss:$12 sps:$4 sm:$0xff]  }
 0x2bd   : > { %v2508_v42 = vadd.f32 %v2507_v40, %v2418_v49  ;;  %v4620_v6 = vpop.f32.mrb[6].mxu1  ;;  %v4632_v3 = vpop.f32.mrb[6].mxu0  ;;  %v5212_v49 = vmov 0   ;;  %v4863_v40 = vld [vmem:[%s7021_s11 + $0x30] ss:$12 sps:$4 sm:$0xff]  }
 0x2be   : > { %v2535_v21 = vadd.f32 %v4422_v54, %v2516_v32  ;;  %v2519_v20 = vadd.f32 %v4632_v3, %v4620_v6  ;;  %v2421_v26 = vpop.f32.mrb[7].mxu1  ;;  %v2510_v39 = vpop.f32.mrb[7].mxu0  ;;  %v4866_v32 = vld [vmem:[%s7021_s11 + $0x38] ss:$12 sps:$4 sm:$0xff]   ;;  %3063 = vmatprep.mubr.bf16.mxu0 %v5212_v49  ;;  %v4870_v6 = vld [vmem:[%s7021_s11 + $0x50] ss:$12 sps:$4 sm:$0xff]  }
 0x2bf   : > { %v2533_v56 = vadd.f32 %v4422_v54, %v2508_v42  ;;  %v2511_v13 = vadd.f32 %v2510_v39, %v2421_v26  ;;  %3034 = vmatpush1.bf16.msra.mxu0 %v4859_v37  ;;  %v4869_v42 = vld [vmem:[%s7021_s11 + $0x4c] ss:$12 sps:$4 sm:$0xff]   ;;  %v4867_v3 = vld [vmem:[%s7021_s11 + $0x48] ss:$12 sps:$4 sm:$0xff]   ;;  %v4440_v26 = vld [vmem:[#allocation4] ss:$0 sm:$0xff] }
 0x2c0   : > { %v4429_v52 = vmul.f32 -1.442695, %v2535_v21  ;;  %v2536_v60 = vadd.f32 %v4422_v54, %v2519_v20  ;;  %3035 = vmatprep.subr.bf16.mxu0 %v4865_v33  ;;  %v4431_v20 = vld [vmem:[%s7020_s10] ss:$0 sm:$0xff] }
 0x2c1   : > { %v4427_v5 = vmul.f32 -1.442695, %v2533_v56  ;;  %v2534_v51 = vadd.f32 %v4422_v54, %v2511_v13  ;;  %v4727_v39 = vadd.f32 %v4440_v26, %v4431_v20 }
 0x2c2   : > { %v4948_v30 = vpop.eup %4947  ;;  %4955 = vpow2.f32 %v4429_v52  ;;  %v4430_v22 = vmul.f32 -1.442695, %v2536_v60 }
 0x2c3   : > { %v4950_v62 = vpop.eup %4949  ;;  %4957 = vpow2.f32 %v4427_v5  ;;  %v4428_v11 = vmul.f32 -1.442695, %v2534_v51  ;;  %v2587_v53 = vmul.f32 %v4948_v30, %v2531_v57  ;;  %v4851_v57 = vld [vmem:[%s7014_s4 + $0x20] sm:$0xff]   ;;  %3036 = vmatpush1.bf16.msra.mxu0 %v4863_v40 }
 0x2c4   : > { %v4952_v7 = vpop.eup %4951  ;;  %4959 = vpow2.f32 %v4430_v22  ;;  %v2585_v41 = vmul.f32 %v4950_v62, %v2529_v59  ;;  %3037 = vmatprep.subr.bf16.mxu0 %v4869_v42 }
 0x2c5   : > { %v4954_v23 = vpop.eup %4953  ;;  %v2588_v16 = vmul.f32 %v4952_v7, %v2532_v10  ;;  %4961 = vpow2.f32 %v4428_v11 }
 0x2c6   : > { %v2586_v55 = vmul.f32 %v4954_v23, %v2530_v1 }
 0x2c7   : > { %v2602_v29 = vpack.c.bf16 %v2588_v16, %v2587_v53  ;;  %3038 = vmatpush1.bf16.msra.mxu0 %v4867_v3 }
 0x2c8   : > { %v2601_v27 = vpack.c.bf16 %v2586_v55, %v2585_v41 }
 0x2ca   : > { %4641 = vmatprep.mubr.msk.bf16.mxu1 %vm2636_vm14, %v2601_v27 }
 0x2cb   : > { %4642 = vmatmul.mubr.msk.bf16.vlgmr.msra.gmra.mrb[8].mxu1 %vm2636_vm14, %v2602_v29 }
 0x2cc   : > { %v4956_v14 = vpop.eup %4955  ;;  %4650 = vmatpush3.bf16.msra.mxu1 %v6269_v47  ;;  %v4850_v47 = vld [vmem:[%s7014_s4 + $0x18] sm:$0xff]  }
 0x2cd   : > { %v4958_v25 = vpop.eup %4957  ;;  %v2567_v19 = vadd.f32 1.0, %v4956_v14  ;;  %4651 = vmatprep.subr.bf16.mxu1 %v4848_v0 }
 0x2ce   : > { %v4960_v54 = vpop.eup %4959  ;;  %v2565_v46 = vadd.f32 1.0, %v4958_v25 }
 0x2cf   : > { %v4962_v31 = vpop.eup %4961  ;;  %4963 = vrcp.f32 %v2567_v19  ;;  %v2568_v43 = vadd.f32 1.0, %v4960_v54 }
 0x2d0   : > { %4965 = vrcp.f32 %v2565_v46  ;;  %v2566_v35 = vadd.f32 1.0, %v4962_v31  ;;  %4652 = vmatpush3.bf16.msra.mxu1 %v4848_v0 }
 0x2d1   : > { %4967 = vrcp.f32 %v2568_v43  ;;  %4653 = vmatprep.subr.bf16.mxu1 %v4849_v17 }
 0x2d2   : > { %4969 = vrcp.f32 %v2566_v35 }
 0x2d4   : > { %4654 = vmatpush3.bf16.msra.mxu1 %v4849_v17 }
 0x2d5   : > { %4655 = vmatprep.subr.bf16.mxu1 %v4850_v47 }
 0x2d8   : > { %4656 = vmatpush3.bf16.msra.mxu1 %v4850_v47 }
 0x2d9   : > { %v4964_v44 = vpop.eup %4963  ;;  %4657 = vmatprep.subr.bf16.mxu1 %v4851_v57 }
 0x2da   : > { %v4966_v59 = vpop.eup %4965  ;;  %v2591_v10 = vmul.f32 %v4964_v44, %v2535_v21  ;;  %v6345_v21 = vld [vmem:[%s7012_s2] sm:$0xff]  }
 0x2db   : > { %v4968_v24 = vpop.eup %4967  ;;  %v2589_v1 = vmul.f32 %v4966_v59, %v2533_v56  ;;  %4689 = vmatprep.subr.bf16.mxu0 %v6345_v21 }
 0x2dc   : > { %v4970_v28 = vpop.eup %4969  ;;  %v2592_v58 = vmul.f32 %v4968_v24, %v2536_v60  ;;  %4658 = vmatpush3.bf16.msra.mxu1 %v4851_v57 }
 0x2dd   : > { %v2590_v63 = vmul.f32 %v4970_v28, %v2534_v51  ;;  %4659 = vmatprep.subr.bf16.mxu1 %v4852_v50 }
 0x2de   : > { %v2604_v15 = vpack.c.bf16 %v2592_v58, %v2591_v10 }
 0x2df   : > { %v2603_v18 = vpack.c.bf16 %v2590_v63, %v2589_v1 }
 0x2e0   : > { %4660 = vmatpush3.bf16.msra.mxu1 %v4852_v50 }
 0x2e1   : > { %4645 = vmatprep.mubr.msk.bf16.mxu1 %vm2636_vm14, %v2603_v18  ;;  %4661 = vmatprep.subr.bf16.mxu1 %v4853_v48 }
 0x2e2   : > { %4646 = vmatmul.mubr.msk.bf16.gmra.mrb[12].mxu1 %vm2636_vm14, %v2604_v15 }
 0x2e3   : > { %4665 = vmatprep.mubr.bf16.mxu1 %v5460_v8 }
 0x2e4   : > { %4662 = vmatpush3.bf16.msra.mxu1 %v4853_v48 }
 0x2e5   : > { %4663 = vmatprep.subr.bf16.mxu1 %v4854_v61 }
 0x2e8   : > { %4664 = vmatpush3.bf16.msra.mxu1 %v4854_v61 }
 0x2e9   : > { %4673 = vmatprep.subr.bf16.mxu1 %v4858_v2 }
 0x2eb   : > { %4666 = vmatmul.mubr.bf16.vlgmr.msra.gmra.mrb[8].mxu1 %v5458_v4 }
 0x2ec   : > { %4669 = vmatprep.mubr.bf16.mxu1 %v5462_v9  ;;  %4674 = vmatpush3.bf16.msra.mxu1 %v4858_v2 }
 0x2ed   : > { %4675 = vmatprep.subr.bf16.mxu1 %v4862_v34 }
 0x2f0   : > { %4676 = vmatpush3.bf16.msra.mxu1 %v4862_v34 }
 0x2f1   : > { %4677 = vmatprep.subr.bf16.mxu1 %v4866_v32 }
 0x2f3   : > { %4670 = vmatmul.mubr.bf16.gmra.mrb[12].mxu1 %v5464_v12 }
 0x2f4   : > { %4678 = vmatpush3.bf16.msra.mxu1 %v4866_v32 }
 0x2f5   : > { %4679 = vmatprep.subr.bf16.mxu1 %v4870_v6 }
 0x2f8   : > { %4680 = vmatpush3.bf16.msra.mxu1 %v4870_v6  ;;  %v4872_v6 = vld [vmem:[%s7012_s2 + $0x8] sm:$0xff]  }
 0x3be   : > { %v4667_v56 = vpop.f32.mrb[8].mxu1 }
 0x3bf   : > { %v4721_v13 = vadd.f32 %v4667_v56, %v4431_v20  ;;  %v2823_v52 = vpop.f32.mrb[9].mxu1 }
 0x3c0   : > { %v4723_v60 = vadd.f32 %v4431_v20, %v2823_v52  ;;  %v4668_v5 = vpop.f32.mrb[10].mxu1 }
 0x3c1   : > { %v4722_v51 = vadd.f32 %v4721_v13, %v4440_v26  ;;  %v4726_v30 = vadd.f32 %v4727_v39, %v4668_v5  ;;  %v2826_v22 = vpop.f32.mrb[11].mxu1 }
 0x3c2   : > { %v4724_v62 = vadd.f32 %v4723_v60, %v4440_v26  ;;  %v4728_v11 = vadd.f32 %v4727_v39, %v2826_v22  ;;  %v4873_v60 = vld [vmem:[%s7012_s2 + $0x10] sm:$0xff]   ;;  %v4876_v22 = vld [vmem:[%s7012_s2 + $0x28] sm:$0xff]  }
 0x3c3   : > { %v4451_v7 = vmul.f32 -1.442695, %v4722_v51  ;;  %v4452_v23 = vmul.f32 -1.442695, %v4726_v30 }
 0x3c4   : > { %v4449_v53 = vmul.f32 -1.442695, %v4724_v62  ;;  %v4450_v16 = vmul.f32 -1.442695, %v4728_v11 }
 0x3c5   : > { %4971 = vpow2.f32 %v4451_v7  ;;  %v2940_v7 = vlaneseq }
 0x3c6   : > { %4973 = vpow2.f32 %v4449_v53  ;;  %v4671_v41 = vpop.f32.mrb[12].mxu1 }
 0x3c7   : > { %4975 = vpow2.f32 %v4452_v23  ;;  %v4730_v55 = vadd.f32 %v4727_v39, %v4671_v41  ;;  %v2839_v29 = vpop.f32.mrb[13].mxu1  ;;  %v6389_v23 = vshrl.u32 %v2940_v7, 7 }
 0x3c8   : > { %4977 = vpow2.f32 %v4450_v16  ;;  %v4732_v27 = vadd.f32 %v4727_v39, %v2839_v29  ;;  %v4672_v0 = vpop.f32.mrb[14].mxu1  ;;  %v6395_v16 = vld [vmem:[%s7022_s12] sm:$0x7] }
 0x3c9   : > { %v4455_v14 = vmul.f32 -1.442695, %v4730_v55  ;;  %v4734_v25 = vadd.f32 %v4727_v39, %v4672_v0  ;;  %v2842_v19 = vpop.f32.mrb[15].mxu1  ;;  %v2942_v53 = vsub.s32 0, %v6389_v23 }
 0x3ca   : > { %v4453_v17 = vmul.f32 -1.442695, %v4732_v27  ;;  %v4736_v54 = vadd.f32 %v4727_v39, %v2842_v19 }
 0x3cb   : > { %4979 = vpow2.f32 %v4455_v14  ;;  %v4456_v46 = vmul.f32 -1.442695, %v4734_v25 }
 0x3cc   : > { %4981 = vpow2.f32 %v4453_v17  ;;  %v4454_v31 = vmul.f32 -1.442695, %v4736_v54 }
 0x3cd   : > { %4983 = vpow2.f32 %v4456_v46 }
 0x3ce   : > { %4985 = vpow2.f32 %v4454_v31 }
 0x3cf   : > { %v4972_v43 = vpop.eup %4971 }
 0x3d0   : > { %v4974_v35 = vpop.eup %4973  ;;  %v2888_v47 = vadd.f32 1.0, %v4972_v43 }
 0x3d1   : > { %v4976_v57 = vpop.eup %4975  ;;  %v2886_v44 = vadd.f32 1.0, %v4974_v35 }
 0x3d2   : > { %v4978_v50 = vpop.eup %4977  ;;  %4987 = vrcp.f32 %v2888_v47  ;;  %v2889_v59 = vadd.f32 1.0, %v4976_v57 }
 0x3d3   : > { %4989 = vrcp.f32 %v2886_v44  ;;  %v2887_v24 = vadd.f32 1.0, %v4978_v50 }
 0x3d4   : > { %4991 = vrcp.f32 %v2889_v59 }
 0x3d5   : > { %v4980_v28 = vpop.eup %4979  ;;  %4993 = vrcp.f32 %v2887_v24 }
 0x3d6   : > { %v4982_v10 = vpop.eup %4981  ;;  %v2892_v58 = vadd.f32 1.0, %v4980_v28 }
 0x3d7   : > { %v4984_v1 = vpop.eup %4983  ;;  %v2890_v63 = vadd.f32 1.0, %v4982_v10 }
 0x3d8   : > { %v4986_v48 = vpop.eup %4985  ;;  %4995 = vrcp.f32 %v2892_v58  ;;  %v2893_v15 = vadd.f32 1.0, %v4984_v1  ;;  %v2946_v58 = vsub.s32 1, %v6389_v23 }
 0x3d9   : > { %4997 = vrcp.f32 %v2890_v63  ;;  %v2891_v18 = vadd.f32 1.0, %v4986_v48 }
 0x3da   : > { %4999 = vrcp.f32 %v2893_v15  ;;  %v6451_v1 = vrot.slane %v6395_v16, %v2946_v58 }
 0x3db   : > { %5001 = vrcp.f32 %v2891_v18 }
 0x3dc   : > { %v4988_v61 = vpop.eup %4987 }
 0x3dd   : > { %v4990_v38 = vpop.eup %4989  ;;  %v2912_v36 = vmul.f32 %v4988_v61, %v4722_v51 }
 0x3de   : > { %v4992_v2 = vpop.eup %4991  ;;  %v2910_v45 = vmul.f32 %v4990_v38, %v4724_v62  ;;  %v4877_v62 = vld [vmem:[%s7012_s2 + $0x30] sm:$0xff]  }
 0x3df   : > { %v4994_v34 = vpop.eup %4993  ;;  %v2913_v37 = vmul.f32 %v4992_v2, %v4726_v30  ;;  %v4875_v30 = vld [vmem:[%s7012_s2 + $0x20] sm:$0xff]  }
 0x3e0   : > { %v2911_v33 = vmul.f32 %v4994_v34, %v4728_v11  ;;  %v4878_v11 = vld [vmem:[%s7012_s2 + $0x38] sm:$0xff]  }
 0x3e1   : > { %v2919_v32 = vpack.c.bf16 %v2913_v37, %v2912_v36 }
 0x3e2   : > { %v4996_v40 = vpop.eup %4995  ;;  %v2918_v42 = vpack.c.bf16 %v2911_v33, %v2910_v45  ;;  %v4477_v45 = vld [vmem:[%s7013_s3] ss:$0 sm:$0xff] }
 0x3e3   : > { %v4998_v3 = vpop.eup %4997  ;;  %v2916_v39 = vmul.f32 %v4996_v40, %v4730_v55 }
 0x3e4   : > { %v5000_v20 = vpop.eup %4999  ;;  %4469 = vmatmul.mubr.msk.bf16.vlgmr.msra.gmra.mrb[8].mxu0 %vm2636_vm14, %v2918_v42  ;;  %4681 = vmatprep.mubr.msk.bf16.mxu1 %vm2636_vm14, %v2918_v42  ;;  %v2914_v13 = vmul.f32 %v4998_v3, %v4732_v27 }
 0x3e5   : > { %v5002_v26 = vpop.eup %5001  ;;  %v2917_v56 = vmul.f32 %v5000_v20, %v4734_v25  ;;  %4690 = vmatpush3.bf16.msra.mxu0 %v6345_v21  ;;  %4682 = vmatmul.mubr.msk.bf16.vlgmr.msra.gmra.mrb[16].mxu1 %vm2636_vm14, %v2919_v32  ;;  %v4874_v21 = vld [vmem:[%s7012_s2 + $0x18] sm:$0xff]  }
 0x3e6   : > { %v2915_v52 = vmul.f32 %v5002_v26, %v4736_v54  ;;  %4691 = vmatprep.subr.bf16.mxu0 %v4872_v6  ;;  %3073 = vmatprep.mubr.bf16.mxu0 %v5212_v49 }
 0x3e7   : > { %v2921_v5 = vpack.c.bf16 %v2917_v56, %v2916_v39 }
 0x3e8   : > { %v2920_v51 = vpack.c.bf16 %v2915_v52, %v2914_v13 }
 0x3e9   : > { %4692 = vmatpush3.bf16.msra.mxu0 %v4872_v6 }
 0x3ea   : > { %4693 = vmatprep.subr.bf16.mxu0 %v4873_v60  ;;  %4685 = vmatprep.mubr.msk.bf16.mxu1 %vm2636_vm14, %v2920_v51 }
 0x3ec   : > { %4470 = vmatmul.mubr.msk.bf16.gmra.mrb[12].mxu0 %vm2636_vm14, %v2919_v32 }
 0x3ed   : > { %4694 = vmatpush3.bf16.msra.mxu0 %v4873_v60  ;;  %4686 = vmatmul.mubr.msk.bf16.gmra.mrb[20].mxu1 %vm2636_vm14, %v2921_v5 }
 0x3ee   : > { %4695 = vmatprep.subr.bf16.mxu0 %v4874_v21  ;;  %3083 = vmatprep.mubr.bf16.mxu0 %v5212_v49 }
 0x3ef   : > { %3750 = vmatprep.mubr.bf16.mxu1 %v5212_v49 }
 0x3f1   : > { %4696 = vmatpush3.bf16.msra.mxu0 %v4874_v21 }
 0x3f2   : > { %4697 = vmatprep.subr.bf16.mxu0 %v4875_v30 }
 0x3f4   : > { %4471 = vmatmul.mubr.msk.bf16.gmra.mrb[16].mxu0 %vm2636_vm14, %v2920_v51 }
 0x3f5   : > { %4698 = vmatpush3.bf16.msra.mxu0 %v4875_v30  ;;  %3093 = vmatprep.mubr.bf16.mxu0 %v5212_v49 }
 0x3f6   : > { %4699 = vmatprep.subr.bf16.mxu0 %v4876_v22 }
 0x3f9   : > { %4700 = vmatpush3.bf16.msra.mxu0 %v4876_v22 }
 0x3fa   : > { %4701 = vmatprep.subr.bf16.mxu0 %v4877_v62 }
 0x3fc   : > { %4472 = vmatmul.mubr.msk.bf16.gmra.mrb[20].mxu0 %vm2636_vm14, %v2921_v5 }
 0x3fd   : > { %4702 = vmatpush3.bf16.msra.mxu0 %v4877_v62  ;;  %4705 = vmatprep.mubr.bf16.mxu0 %v5460_v8 }
 0x3fe   : > { %4703 = vmatprep.subr.bf16.mxu0 %v4878_v11 }
 0x401   : > { %4704 = vmatpush3.bf16.msra.mxu0 %v4878_v11 }
 0x404   : > { %4706 = vmatmul.mubr.bf16.vlgmr.msra.gmra.mrb[24].mxu0 %v5458_v4  ;;  %v6402_v4 = vrot.slane %v6395_v16, %v2942_v53 }
 0x405   : > { %4709 = vmatprep.mubr.bf16.mxu0 %v5462_v9 }
 0x40c   : > { %4710 = vmatmul.mubr.bf16.gmra.mrb[28].mxu0 %v5464_v12 }
 0x4b7   : > { %v6397_v41 = vpop.f32.mrb[8].mxu0 }
 0x4b8   : > { %v6404_v8 = vpop.f32.mrb[9].mxu0  ;;  %v6406_v9 = vpop.f32.mrb[16].mxu1 }
 0x4b9   : > { %v3069_v12 = vpop.f32.mrb[10].mxu0  ;;  %v6408_v55 = vpop.f32.mrb[17].mxu1 }
 0x4ba   : > { %v6411_v29 = vadd.f32 %v3069_v12, %v6402_v4  ;;  %v6413_v27 = vpop.f32.mrb[11].mxu0  ;;  %v6415_v0 = vpop.f32.mrb[18].mxu1 }
 0x4bb   : > { %v6417_v14 = vpop.f32.mrb[19].mxu1 }
 0x4bf   : > { %v3075_v25 = vpop.f32.mrb[12].mxu0 }
 0x4c0   : > { %v6420_v19 = vadd.f32 %v3075_v25, %v6402_v4  ;;  %v6422_v17 = vpop.f32.mrb[13].mxu0  ;;  %v6424_v54 = vpop.f32.mrb[20].mxu1  ;;  %v6502_v25 = vadd.f32 %v6397_v41, %v6402_v4 }
 0x4c1   : > { %v3079_v46 = vpop.f32.mrb[14].mxu0  ;;  %v6426_v31 = vpop.f32.mrb[21].mxu1 }
 0x4c2   : > { %v6429_v43 = vadd.f32 %v3079_v46, %v6402_v4  ;;  %v6431_v35 = vpop.f32.mrb[15].mxu0  ;;  %v6433_v47 = vpop.f32.mrb[22].mxu1  ;;  %v3410_v46 = vadd.f32 1.0, %v6502_v25 }
 0x4c3   : > { %v6435_v57 = vpop.f32.mrb[23].mxu1 }
 0x4c7   : > { %v3085_v44 = vpop.f32.mrb[16].mxu0 }
 0x4c8   : > { %v6438_v50 = vadd.f32 %v3085_v44, %v6402_v4  ;;  %v6440_v59 = vpop.f32.mrb[17].mxu0 }
 0x4c9   : > { %v3089_v24 = vpop.f32.mrb[18].mxu0 }
 0x4ca   : > { %v6443_v28 = vadd.f32 %v3089_v24, %v6402_v4  ;;  %v6445_v10 = vpop.f32.mrb[19].mxu0 }
 0x4cf   : > { %v3095_v63 = vpop.f32.mrb[20].mxu0 }
 0x4d0   : > { %v6454_v48 = vadd.f32 %v3095_v63, %v6402_v4  ;;  %v3097_v15 = vpop.f32.mrb[21].mxu0 }
 0x4d1   : > { %v6457_v18 = vadd.f32 %v3097_v15, %v6451_v1  ;;  %v3099_v61 = vpop.f32.mrb[22].mxu0 }
 0x4d2   : > { %v6460_v38 = vadd.f32 %v3099_v61, %v6402_v4  ;;  %v3101_v36 = vpop.f32.mrb[23].mxu0 }
 0x4d3   : > { %v6463_v2 = vadd.f32 %v3101_v36, %v6451_v1 }
 0x4d7   : > { %v4707_v34 = vpop.f32.mrb[24].mxu0 }
 0x4d8   : > { %v3274_v37 = vpop.f32.mrb[25].mxu0  ;;  %v6470_v42 = vadd.f32 %v4707_v34, %v4477_v45 }
 0x4d9   : > { %v6468_v33 = vadd.f32 %v4477_v45, %v3274_v37  ;;  %v4708_v32 = vpop.f32.mrb[26].mxu0 }
 0x4da   : > { %v3277_v40 = vpop.f32.mrb[27].mxu0  ;;  %v6478_v26 = vadd.f32 %v4708_v32, %v4477_v45  ;;  %v3311_v56 = vsel %vm2636_vm14, %v6470_v42, 0.0 }
 0x4db   : > { %v6472_v6 = vadd.f32 %v4477_v45, %v3277_v40  ;;  %v3305_v3 = vsel %vm2636_vm14, %v6468_v33, 0.0 }
 0x4dc   : > { %3306 = vadd.xlane.f32.xlu0 %v3305_v3  ;;  %v3314_v22 = vsel %vm2636_vm14, %v6478_v26, 0.0 }
 0x4dd   : > { %v3308_v20 = vsel %vm2636_vm14, %v6472_v6, 0.0 }
 0x4de   : > { %3309 = vadd.xlane.f32.xlu1 %v3308_v20 }
 0x4df   : > { %v4711_v39 = vpop.f32.mrb[28].mxu0 }
 0x4e0   : > { %v3290_v13 = vpop.f32.mrb[29].mxu0  ;;  %3312 = vadd.xlane.f32.xlu0 %v3311_v56  ;;  %v6482_v52 = vadd.f32 %v4711_v39, %v4477_v45 }
 0x4e1   : > { %v6484_v60 = vadd.f32 %v4477_v45, %v3290_v13  ;;  %v4712_v5 = vpop.f32.mrb[30].mxu0 }
 0x4e2   : > { %v3293_v51 = vpop.f32.mrb[31].mxu0  ;;  %v6492_v62 = vadd.f32 %v4712_v5, %v4477_v45  ;;  %v3323_v11 = vsel %vm2636_vm14, %v6482_v52, 0.0 }
 0x4e3   : > { %v6486_v21 = vadd.f32 %v4477_v45, %v3293_v51  ;;  %v3317_v30 = vsel %vm2636_vm14, %v6484_v60, 0.0 }
 0x4e4   : > { %3318 = vadd.xlane.f32.xlu1 %v3317_v30  ;;  %3315 = vadd.xlane.f32.xlu0 %v3314_v22  ;;  %v3326_v12 = vsel %vm2636_vm14, %v6492_v62, 0.0  ;;  %v3412_v30 = vadd.f32 1.0, %v6420_v19  ;;  %v3413_v22 = vadd.f32 1.0, %v6429_v43 }
 0x4e5   : > { %v3320_v7 = vsel %vm2636_vm14, %v6486_v21, 0.0 }
 0x4e8   : > { %3324 = vadd.xlane.f32.xlu1 %v3323_v11  ;;  %3321 = vadd.xlane.f32.xlu0 %v3320_v7  ;;  %v3411_v11 = vadd.f32 1.0, %v6411_v29 }
 0x4ec   : > { %3327 = vadd.xlane.f32.xlu0 %v3326_v12 }
 0x4f9   : > { %3426 = vrot.lane.b32.xlu1 %v3410_v46, %s5213_s19 }
 0x569   : > { %v3307_v44 = vpop.xlane.xlu0 %3306 }
 0x56a   : > { %v3330_v24 = vmul.f32 0.015625, %v3307_v44 }
 0x56b   : > { %v3310_v63 = vpop.xlane.xlu1 %3309 }
 0x56c   : > { %v6507_v36 = vsub.f32 %v6468_v33, %v3330_v24  ;;  %v3331_v45 = vmul.f32 0.015625, %v3310_v63 }
 0x56d   : > { %v3313_v15 = vpop.xlane.xlu0 %3312 }
 0x56e   : > { %v3332_v61 = vmul.f32 0.015625, %v3313_v15  ;;  %v6515_v32 = vsub.f32 %v6472_v6, %v3331_v45  ;;  %v3346_v20 = vmul.f32 %v6507_v36, %v6507_v36 }
 0x570   : > { %v6510_v34 = vsub.f32 %v6470_v42, %v3332_v61  ;;  %v3354_v56 = vsel %vm2636_vm14, %v3346_v20, 0.0  ;;  %v3347_v5 = vmul.f32 %v6515_v32, %v6515_v32 }
 0x571   : > { %v3316_v37 = vpop.xlane.xlu0 %3315  ;;  %v3319_v7 = vpop.xlane.xlu1 %3318 }
 0x572   : > { %v3333_v41 = vmul.f32 0.015625, %v3316_v37  ;;  %v3348_v4 = vmul.f32 %v6510_v34, %v6510_v34  ;;  %v3357_v51 = vsel %vm2636_vm14, %v3347_v5, 0.0  ;;  %v3334_v15 = vmul.f32 0.015625, %v3319_v7 }
 0x573   : > { %v3414_v7 = vadd.f32 1.0, %v6438_v50 }
 0x574   : > { %v6518_v40 = vsub.f32 %v6478_v26, %v3333_v41  ;;  %v3360_v3 = vsel %vm2636_vm14, %v3348_v4, 0.0  ;;  %v6543_v41 = vsub.f32 %v6484_v60, %v3334_v15 }
 0x575   : > { %3361 = vadd.xlane.f32.xlu1 %v3360_v3  ;;  %v3322_v12 = vpop.xlane.xlu0 %3321  ;;  %v3325_v46 = vpop.xlane.xlu1 %3324 }
 0x576   : > { %v3349_v39 = vmul.f32 %v6518_v40, %v6518_v40  ;;  %v3336_v24 = vmul.f32 0.015625, %v3325_v46  ;;  %v3335_v45 = vmul.f32 0.015625, %v3322_v12  ;;  %v3416_v12 = vadd.f32 1.0, %v6454_v48 }
 0x578   : > { %v3363_v13 = vsel %vm2636_vm14, %v3349_v39, 0.0  ;;  %v6537_v61 = vsub.f32 %v6482_v52, %v3336_v24  ;;  %v6546_v4 = vsub.f32 %v6486_v21, %v3335_v45 }
 0x579   : > { %3355 = vadd.xlane.f32.xlu1 %v3354_v56  ;;  %3364 = vadd.xlane.f32.xlu0 %v3363_v13  ;;  %v3328_v44 = vpop.xlane.xlu0 %3327  ;;  %v3350_v13 = vmul.f32 %v6543_v41, %v6543_v41  ;;  %v3427_v46 = vpop.permute.xlu1 %3426 }
 0x57a   : > { %v3337_v63 = vmul.f32 0.015625, %v3328_v44  ;;  %v3352_v3 = vmul.f32 %v6537_v61, %v6537_v61  ;;  %v3351_v5 = vmul.f32 %v6546_v4, %v6546_v4 }
 0x57c   : > { %v6540_v37 = vsub.f32 %v6492_v62, %v3337_v63  ;;  %v3372_v39 = vsel %vm2636_vm14, %v3352_v3, 0.0 }
 0x57d   : > { %3358 = vadd.xlane.f32.xlu0 %v3357_v51  ;;  %v3366_v51 = vsel %vm2636_vm14, %v3350_v13, 0.0 }
 0x57e   : > { %v3353_v20 = vmul.f32 %v6540_v37, %v6540_v37 }
 0x580   : > { %v3375_v56 = vsel %vm2636_vm14, %v3353_v20, 0.0 }
 0x58a   : > { %3430 = vrot.lane.b32.xlu1 %v3412_v30, %s5213_s19  ;;  %v3369_v30 = vsel %vm2636_vm14, %v3351_v5, 0.0 }
 0x58e   : > { %3432 = vrot.lane.b32.xlu1 %v3413_v22, %s5213_s19  ;;  %v3415_v22 = vadd.f32 1.0, %v6443_v28 }
 0x593   : > { %3428 = vrot.lane.b32.xlu0 %v3411_v11, %s5213_s19  ;;  %v3417_v11 = vadd.f32 1.0, %v6460_v38 }
 0x5b2   : > { %3373 = vadd.xlane.f32.xlu1 %v3372_v39  ;;  %3376 = vadd.xlane.f32.xlu0 %v3375_v56 }
 0x5b6   : > { %3367 = vadd.xlane.f32.xlu1 %v3366_v51  ;;  %3370 = vadd.xlane.f32.xlu0 %v3369_v30 }
 0x5c7   : > { %3436 = vrot.lane.b32.xlu1 %v3415_v22, %s5213_s19 }
 0x5cb   : > { %3440 = vrot.lane.b32.xlu1 %v3417_v11, %s5213_s19 }
 0x5cc   : > { %3434 = vrot.lane.b32.xlu0 %v3414_v7, %s5213_s19 }
 0x5d0   : > { %3438 = vrot.lane.b32.xlu0 %v3416_v12, %s5213_s19 }
 0x602   : > { %v3362_v44 = vpop.xlane.xlu1 %3361 }
 0x603   : > { %v3380_v24 = vmul.f32 0.015625, %v3362_v44 }
 0x605   : > { %v3388_v63 = vadd.f32 1e-06, %v3380_v24 }
 0x606   : > { %v3356_v15 = vpop.xlane.xlu1 %3355  ;;  %v3365_v45 = vpop.xlane.xlu0 %3364 }
 0x607   : > { %5003 = vrsqrt.f32 %v3388_v63  ;;  %v3378_v3 = vmul.f32 0.015625, %v3356_v15  ;;  %v3381_v20 = vmul.f32 0.015625, %v3365_v45 }
 0x609   : > { %v3386_v39 = vadd.f32 1e-06, %v3378_v3  ;;  %v3389_v56 = vadd.f32 1e-06, %v3381_v20 }
 0x60a   : > { %v3359_v13 = vpop.xlane.xlu0 %3358  ;;  %v3431_v11 = vpop.permute.xlu1 %3430 }
 0x60b   : > { %5005 = vrsqrt.f32 %v3386_v39  ;;  %v3379_v5 = vmul.f32 0.015625, %v3359_v13 }
 0x60c   : > { %5007 = vrsqrt.f32 %v3389_v56  ;;  %v6574_v56 = vadd.f32 %v6404_v8, %v6451_v1  ;;  %v6587_v8 = vadd.f32 %v6413_v27, %v6451_v1 }
 0x60d   : > { %v3387_v51 = vadd.f32 1e-06, %v3379_v5 }
 0x60e   : > { %v3433_v45 = vpop.permute.xlu1 %3432  ;;  %v3429_v5 = vpop.permute.xlu0 %3428 }
 0x60f   : > { %5009 = vrsqrt.f32 %v3387_v51 }
 0x611   : > { %v5004_v30 = vpop.eup %5003 }
 0x612   : > { %v3404_v22 = vmul.f32 %v5004_v30, %v6510_v34  ;;  %v6578_v34 = vadd.f32 %v6422_v17, %v6451_v1  ;;  %v6591_v17 = vadd.f32 %v6431_v35, %v6451_v1 }
 0x614   : > { %v3452_v7 = vmul.f32 %v3431_v11, %v3404_v22 }
 0x615   : > { %v5006_v12 = vpop.eup %5005 }
 0x616   : > { %v5008_v44 = vpop.eup %5007  ;;  %v3402_v24 = vmul.f32 %v5006_v12, %v6507_v36  ;;  %v3460_v15 = vadd.f32 %v3452_v7, %v6420_v19 }
 0x617   : > { %v3405_v63 = vmul.f32 %v5008_v44, %v6518_v40 }
 0x618   : > { %v3450_v3 = vmul.f32 %v3427_v46, %v3402_v24  ;;  %v3468_v40 = vmul.f32 %v3460_v15, %v6578_v34 }
 0x619   : > { %v5010_v20 = vpop.eup %5009  ;;  %v3453_v39 = vmul.f32 %v3433_v45, %v3405_v63 }
 0x61a   : > { %v3403_v13 = vmul.f32 %v5010_v20, %v6515_v32  ;;  %v3458_v36 = vadd.f32 %v3450_v3, %v6502_v25  ;;  %v6602_v11 = vadd.f32 %v3468_v40, %v6470_v42 }
 0x61b   : > { %v3461_v19 = vadd.f32 %v3453_v39, %v6429_v43 }
 0x61c   : > { %v3451_v46 = vmul.f32 %v3429_v5, %v3403_v13  ;;  %v3466_v51 = vmul.f32 %v3458_v36, %v6574_v56  ;;  %v3488_v35 = vsel %vm2636_vm14, %v6602_v11, 0.0 }
 0x61d   : > { %v3469_v30 = vmul.f32 %v3461_v19, %v6591_v17 }
 0x61e   : > { %v3459_v32 = vadd.f32 %v3451_v46, %v6411_v29  ;;  %v6595_v25 = vadd.f32 %v3466_v51, %v6468_v33 }
 0x61f   : > { %v6612_v33 = vadd.f32 %v3469_v30, %v6478_v26 }
 0x620   : > { %v3467_v43 = vmul.f32 %v3459_v32, %v6587_v8  ;;  %v3482_v22 = vsel %vm2636_vm14, %v6595_v25, 0.0 }
 0x621   : > { %3483 = vadd.xlane.f32.xlu0 %v3482_v22  ;;  %v3491_v7 = vsel %vm2636_vm14, %v6612_v33, 0.0 }
 0x622   : > { %v6605_v27 = vadd.f32 %v3467_v43, %v6472_v6 }
 0x624   : > { %v3485_v29 = vsel %vm2636_vm14, %v6605_v27, 0.0 }
 0x625   : > { %3486 = vadd.xlane.f32.xlu1 %v3485_v29  ;;  %3489 = vadd.xlane.f32.xlu0 %v3488_v35 }
 0x629   : > { %3492 = vadd.xlane.f32.xlu0 %v3491_v7 }
 0x63f   : > { %v3374_v42 = vpop.xlane.xlu1 %3373  ;;  %v3377_v12 = vpop.xlane.xlu0 %3376 }
 0x640   : > { %v3384_v44 = vmul.f32 0.015625, %v3374_v42  ;;  %v3385_v6 = vmul.f32 0.015625, %v3377_v12 }
 0x642   : > { %v3392_v24 = vadd.f32 1e-06, %v3384_v44  ;;  %v3393_v63 = vadd.f32 1e-06, %v3385_v6 }
 0x643   : > { %v3368_v15 = vpop.xlane.xlu1 %3367  ;;  %v3371_v45 = vpop.xlane.xlu0 %3370 }
 0x644   : > { %5011 = vrsqrt.f32 %v3392_v24  ;;  %v3382_v3 = vmul.f32 0.015625, %v3368_v15  ;;  %v3383_v20 = vmul.f32 0.015625, %v3371_v45  ;;  %v6629_v24 = vadd.f32 %v6445_v10, %v6451_v1 }
 0x645   : > { %5013 = vrsqrt.f32 %v3393_v63 }
 0x646   : > { %v3390_v26 = vadd.f32 1e-06, %v3382_v3  ;;  %v3391_v39 = vadd.f32 1e-06, %v3383_v20 }
 0x647   : > { %v3435_v13 = vpop.permute.xlu0 %3434  ;;  %v3437_v36 = vpop.permute.xlu1 %3436 }
 0x648   : > { %5015 = vrsqrt.f32 %v3390_v26 }
 0x649   : > { %5017 = vrsqrt.f32 %v3391_v39 }
 0x64b   : > { %v3439_v51 = vpop.permute.xlu0 %3438  ;;  %v3441_v32 = vpop.permute.xlu1 %3440 }
 0x64e   : > { %v5012_v5 = vpop.eup %5011 }
 0x64f   : > { %v5014_v40 = vpop.eup %5013  ;;  %v3408_v19 = vmul.f32 %v5012_v5, %v6537_v61  ;;  %v6624_v61 = vadd.f32 %v6440_v59, %v6451_v1 }
 0x650   : > { %v3409_v46 = vmul.f32 %v5014_v40, %v6540_v37 }
 0x651   : > { %v3456_v30 = vmul.f32 %v3439_v51, %v3408_v19 }
 0x652   : > { %v5016_v43 = vpop.eup %5015  ;;  %v3457_v22 = vmul.f32 %v3441_v32, %v3409_v46 }
 0x653   : > { %v5018_v29 = vpop.eup %5017  ;;  %v3406_v35 = vmul.f32 %v5016_v43, %v6543_v41  ;;  %v3464_v12 = vadd.f32 %v3456_v30, %v6454_v48 }
 0x654   : > { %v3407_v7 = vmul.f32 %v5018_v29, %v6546_v4  ;;  %v3465_v6 = vadd.f32 %v3457_v22, %v6460_v38 }
 0x655   : > { %v3454_v42 = vmul.f32 %v3435_v13, %v3406_v35  ;;  %v3472_v63 = vmul.f32 %v3464_v12, %v6457_v18  ;;  %v4879_v35 = vld [vmem:[%s7023_s13] ss:$8 sps:$4 sm:$0xff]   ;;  %v4882_v12 = vld [vmem:[%s7023_s13 + $0x10] ss:$8 sps:$4 sm:$0xff]  }
 0x656   : > { %v3455_v44 = vmul.f32 %v3437_v36, %v3407_v7  ;;  %v3473_v38 = vmul.f32 %v3465_v6, %v6463_v2  ;;  %v4881_v7 = vld [vmem:[%s7023_s13 + $0x4] ss:$8 sps:$4 sm:$0xff]  }
 0x657   : > { %v3462_v37 = vadd.f32 %v3454_v42, %v6438_v50  ;;  %v6645_v10 = vadd.f32 %v3472_v63, %v6482_v52  ;;  %v4884_v42 = vld [vmem:[%s7023_s13 + $0x14] ss:$8 sps:$4 sm:$0xff]   ;;  %3718 = vmatprep.subr.bf16.mxu1 %v4881_v7 }
 0x658   : > { %v3463_v41 = vadd.f32 %v3455_v44, %v6443_v28  ;;  %v6650_v1 = vadd.f32 %v3473_v38, %v6492_v62  ;;  %3719 = vmatpush1.bf16.msra.mxu1 %v4879_v35 }
 0x659   : > { %v3470_v4 = vmul.f32 %v3462_v37, %v6624_v61  ;;  %3720 = vmatprep.subr.bf16.mxu1 %v4884_v42 }
 0x65a   : > { %v3471_v48 = vmul.f32 %v3463_v41, %v6629_v24 }
 0x65b   : > { %v6637_v15 = vadd.f32 %v3470_v4, %v6484_v60  ;;  %v3500_v60 = vsel %vm2636_vm14, %v6645_v10, 0.0 }
 0x65c   : > { %v6640_v59 = vadd.f32 %v3471_v48, %v6486_v21  ;;  %v3503_v21 = vsel %vm2636_vm14, %v6650_v1, 0.0  ;;  %3721 = vmatpush1.bf16.msra.mxu1 %v4882_v12 }
 0x65d   : > { %v3494_v50 = vsel %vm2636_vm14, %v6637_v15, 0.0 }
 0x65e   : > { %v3497_v28 = vsel %vm2636_vm14, %v6640_v59, 0.0  ;;  %3495 = vadd.xlane.f32.xlu1 %v3494_v50 }
 0x65f   : > { %3498 = vadd.xlane.f32.xlu0 %v3497_v28 }
 0x662   : > { %3501 = vadd.xlane.f32.xlu1 %v3500_v60 }
 0x663   : > { %3504 = vadd.xlane.f32.xlu0 %v3503_v21 }
 0x673   : > { %3610 = vrot.lane.b32.xlu1 %v6574_v56, %s5213_s19 }
 0x6ae   : > { %v3484_v52 = vpop.xlane.xlu0 %3483 }
 0x6af   : > { %v3506_v45 = vmul.f32 0.015625, %v3484_v52 }
 0x6b1   : > { %v6659_v62 = vsub.f32 %v6595_v25, %v3506_v45 }
 0x6b2   : > { %v3487_v3 = vpop.xlane.xlu1 %3486  ;;  %v3490_v20 = vpop.xlane.xlu0 %3489 }
 0x6b3   : > { %v3508_v26 = vmul.f32 0.015625, %v3490_v20  ;;  %v3507_v39 = vmul.f32 0.015625, %v3487_v3  ;;  %v3522_v51 = vmul.f32 %v6659_v62, %v6659_v62 }
 0x6b5   : > { %v6662_v13 = vsub.f32 %v6602_v11, %v3508_v26  ;;  %v6667_v19 = vsub.f32 %v6605_v27, %v3507_v39  ;;  %v3530_v30 = vsel %vm2636_vm14, %v3522_v51, 0.0  ;;  %v4888_v51 = vld [vmem:[%s7023_s13 + $0x30] ss:$8 sps:$4 sm:$0xff]  }
 0x6b6   : > { %v3493_v36 = vpop.xlane.xlu0 %3492 }
 0x6b7   : > { %v3509_v5 = vmul.f32 0.015625, %v3493_v36  ;;  %v3524_v40 = vmul.f32 %v6662_v13, %v6662_v13  ;;  %v3523_v22 = vmul.f32 %v6667_v19, %v6667_v19 }
 0x6b9   : > { %v6670_v56 = vsub.f32 %v6612_v33, %v3509_v5  ;;  %v3536_v46 = vsel %vm2636_vm14, %v3524_v40, 0.0  ;;  %v3533_v29 = vsel %vm2636_vm14, %v3523_v22, 0.0  ;;  %v4885_v40 = vld [vmem:[%s7023_s13 + $0x20] ss:$8 sps:$4 sm:$0xff]  }
 0x6ba   : > { %3537 = vadd.xlane.f32.xlu1 %v3536_v46  ;;  %v4887_v46 = vld [vmem:[%s7023_s13 + $0x24] ss:$8 sps:$4 sm:$0xff]  }
 0x6bb   : > { %v3525_v32 = vmul.f32 %v6670_v56, %v6670_v56  ;;  %3722 = vmatprep.subr.bf16.mxu1 %v4887_v46 }
 0x6bc   : > { %3723 = vmatpush1.bf16.msra.mxu1 %v4885_v40 }
 0x6bd   : > { %v3539_v43 = vsel %vm2636_vm14, %v3525_v32, 0.0  ;;  %v4890_v32 = vld [vmem:[%s7023_s13 + $0x34] ss:$8 sps:$4 sm:$0xff]  }
 0x6be   : > { %3531 = vadd.xlane.f32.xlu1 %v3530_v30  ;;  %3540 = vadd.xlane.f32.xlu0 %v3539_v43 }
 0x6bf   : > { %3724 = vmatprep.subr.bf16.mxu1 %v4890_v32 }
 0x6c0   : > { %3725 = vmatpush1.bf16.msra.mxu1 %v4888_v51 }
 0x6c2   : > { %3534 = vadd.xlane.f32.xlu0 %v3533_v29 }
 0x6eb   : > { %v3496_v44 = vpop.xlane.xlu1 %3495 }
 0x6ec   : > { %v3499_v6 = vpop.xlane.xlu0 %3498  ;;  %v3510_v37 = vmul.f32 0.015625, %v3496_v44 }
 0x6ed   : > { %v3511_v41 = vmul.f32 0.015625, %v3499_v6 }
 0x6ee   : > { %v6695_v50 = vsub.f32 %v6637_v15, %v3510_v37 }
 0x6ef   : > { %v3502_v4 = vpop.xlane.xlu1 %3501  ;;  %v6701_v60 = vsub.f32 %v6640_v59, %v3511_v41 }
 0x6f0   : > { %v3512_v63 = vmul.f32 0.015625, %v3502_v4  ;;  %v3505_v48 = vpop.xlane.xlu0 %3504  ;;  %v3526_v20 = vmul.f32 %v6695_v50, %v6695_v50 }
 0x6f1   : > { %v3513_v38 = vmul.f32 0.015625, %v3505_v48  ;;  %v3527_v39 = vmul.f32 %v6701_v60, %v6701_v60 }
 0x6f2   : > { %v6698_v28 = vsub.f32 %v6645_v10, %v3512_v63  ;;  %v3542_v36 = vsel %vm2636_vm14, %v3526_v20, 0.0 }
 0x6f3   : > { %v6704_v21 = vsub.f32 %v6650_v1, %v3513_v38  ;;  %v3545_v5 = vsel %vm2636_vm14, %v3527_v39, 0.0 }
 0x6f4   : > { %v3528_v52 = vmul.f32 %v6698_v28, %v6698_v28 }
 0x6f5   : > { %v3529_v45 = vmul.f32 %v6704_v21, %v6704_v21 }
 0x6f6   : > { %v3548_v3 = vsel %vm2636_vm14, %v3528_v52, 0.0 }
 0x6f7   : > { %3549 = vadd.xlane.f32.xlu1 %v3548_v3  ;;  %v3551_v26 = vsel %vm2636_vm14, %v3529_v45, 0.0 }
 0x6f8   : > { %3552 = vadd.xlane.f32.xlu0 %v3551_v26 }
 0x6fb   : > { %3543 = vadd.xlane.f32.xlu1 %v3542_v36 }
 0x6fc   : > { %3546 = vadd.xlane.f32.xlu0 %v3545_v5 }
 0x70c   : > { %3614 = vrot.lane.b32.xlu1 %v6578_v34, %s5213_s19  ;;  %v3611_v34 = vpop.permute.xlu1 %3610 }
 0x710   : > { %3616 = vrot.lane.b32.xlu1 %v6591_v17, %s5213_s19 }
 0x712   : > { %3612 = vrot.lane.b32.xlu0 %v6587_v8, %s5213_s19 }
 0x714   : > { %3620 = vrot.lane.b32.xlu1 %v6629_v24, %s5213_s19 }
 0x716   : > { %3618 = vrot.lane.b32.xlu0 %v6624_v61, %s5213_s19  ;;  %v2950_v61 = vsub.s32 2, %v6389_v23 }
 0x718   : > { %3624 = vrot.lane.b32.xlu1 %v6463_v2, %s5213_s19  ;;  %v2951_v44 = vrot.slane %v6395_v16, %v2950_v61 }
 0x71a   : > { %3622 = vrot.lane.b32.xlu0 %v6457_v18, %s5213_s19  ;;  %v6747_v6 = vadd.f32 %v6408_v55, %v2951_v44  ;;  %v6750_v48 = vadd.f32 %v6417_v14, %v2951_v44  ;;  %v6757_v14 = vadd.f32 %v6415_v0, %v2951_v44 }
 0x71c   : > { %v3586_v45 = vadd.f32 1.0, %v6747_v6  ;;  %v3587_v55 = vadd.f32 1.0, %v6750_v48 }
 0x747   : > { %v3538_v30 = vpop.xlane.xlu1 %3537 }
 0x748   : > { %v3556_v42 = vmul.f32 0.015625, %v3538_v30 }
 0x74a   : > { %v3564_v2 = vadd.f32 1e-06, %v3556_v42 }
 0x74b   : > { %v3541_v17 = vpop.xlane.xlu0 %3540  ;;  %v3532_v43 = vpop.xlane.xlu1 %3531 }
 0x74c   : > { %v3554_v29 = vmul.f32 0.015625, %v3532_v43  ;;  %v3557_v24 = vmul.f32 0.015625, %v3541_v17  ;;  %v6760_v43 = vadd.f32 %v6406_v9, %v2951_v44  ;;  %v6769_v9 = vadd.f32 %v6426_v31, %v2951_v44 }
 0x74e   : > { %v3562_v8 = vadd.f32 1e-06, %v3554_v29  ;;  %v3565_v12 = vadd.f32 1e-06, %v3557_v24  ;;  %v3588_v42 = vadd.f32 1.0, %v6760_v43 }
 0x74f   : > { %v3535_v22 = vpop.xlane.xlu0 %3534 }
 0x750   : > { %v3555_v35 = vmul.f32 0.015625, %v3535_v22  ;;  %5019 = vrsqrt.f32 %v3562_v8  ;;  %v3589_v8 = vadd.f32 1.0, %v6757_v14 }
 0x752   : > { %v3563_v7 = vadd.f32 1e-06, %v3555_v35 }
 0x754   : > { %5021 = vrsqrt.f32 %v3563_v7 }
 0x755   : > { %5023 = vrsqrt.f32 %v3565_v12 }
 0x756   : > { %5025 = vrsqrt.f32 %v3564_v2 }
 0x75a   : > { %v5020_v18 = vpop.eup %5019 }
 0x75b   : > { %v3578_v38 = vmul.f32 %v5020_v18, %v6659_v62 }
 0x75d   : > { %v3594_v5 = vmul.f32 %v3586_v45, %v3578_v38  ;;  %v6779_v45 = vadd.f32 %v6424_v54, %v2951_v44 }
 0x75e   : > { %v5022_v41 = vpop.eup %5021 }
 0x75f   : > { %v3579_v20 = vmul.f32 %v5022_v41, %v6667_v19  ;;  %v5024_v40 = vpop.eup %5023  ;;  %v3634_v22 = vadd.f32 %v3611_v34, %v3594_v5  ;;  %v3590_v41 = vadd.f32 1.0, %v6769_v9  ;;  %v3592_v54 = vadd.f32 1.0, %v6779_v45 }
 0x760   : > { %v5026_v17 = vpop.eup %5025  ;;  %v3581_v35 = vmul.f32 %v5024_v40, %v6670_v56  ;;  %v6772_v56 = vadd.f32 %v6435_v57, %v2951_v44  ;;  %v6782_v57 = vadd.f32 %v6433_v47, %v2951_v44 }
 0x761   : > { %v3595_v30 = vmul.f32 %v3587_v55, %v3579_v20  ;;  %v3580_v0 = vmul.f32 %v5026_v17, %v6662_v13  ;;  %v4895_v17 = vld [vmem:[%s7070_s15 + $0x50] sm:$0xff]  }
 0x762   : > { %v3597_v61 = vmul.f32 %v3589_v8, %v3581_v35  ;;  %v4899_v35 = vld [vmem:[%s7070_s15 + $0x60] sm:$0xff]  }
 0x763   : > { %v3596_v34 = vmul.f32 %v3588_v42, %v3580_v0  ;;  %v4900_v8 = vld [vmem:[%s7070_s15 + $0x20] sm:$0xff]   ;;  %v4901_v0 = vld [vmem:[%s7070_s15 + $0x68] sm:$0xff]   ;;  %v4904_v42 = vld [vmem:[%s7070_s15 + $0x30] sm:$0xff]  }
 0x784   : > { %v3550_v37 = vpop.xlane.xlu1 %3549 }
 0x785   : > { %v3560_v4 = vmul.f32 0.015625, %v3550_v37  ;;  %v3553_v63 = vpop.xlane.xlu0 %3552 }
 0x786   : > { %v3561_v52 = vmul.f32 0.015625, %v3553_v63 }
 0x787   : > { %v3568_v3 = vadd.f32 1e-06, %v3560_v4 }
 0x788   : > { %v3544_v16 = vpop.xlane.xlu1 %3543  ;;  %v3569_v46 = vadd.f32 1e-06, %v3561_v52  ;;  %v3591_v52 = vadd.f32 1.0, %v6772_v56 }
 0x789   : > { %v3558_v26 = vmul.f32 0.015625, %v3544_v16  ;;  %v3547_v39 = vpop.xlane.xlu0 %3546  ;;  %5027 = vrsqrt.f32 %v3568_v3 }
 0x78a   : > { %v3559_v36 = vmul.f32 0.015625, %v3547_v39 }
 0x78b   : > { %v3566_v51 = vadd.f32 1e-06, %v3558_v26 }
 0x78c   : > { %v3567_v62 = vadd.f32 1e-06, %v3559_v36  ;;  %v3615_v32 = vpop.permute.xlu1 %3614  ;;  %v3593_v36 = vadd.f32 1.0, %v6782_v57 }
 0x78d   : > { %5029 = vrsqrt.f32 %v3566_v51  ;;  %v3613_v19 = vpop.permute.xlu0 %3612  ;;  %v3636_v18 = vadd.f32 %v3615_v32, %v3596_v34  ;;  %v4906_v34 = vld [vmem:[%s7070_s15 + $0x38] sm:$0xff]  }
 0x78e   : > { %5031 = vrsqrt.f32 %v3567_v62  ;;  %v3635_v29 = vadd.f32 %v3613_v19, %v3595_v30  ;;  %v4893_v30 = vld [vmem:[%s7070_s15 + $0x48] sm:$0xff]   ;;  %v4896_v19 = vld [vmem:[%s7070_s15 + $0x10] sm:$0xff]  }
 0x78f   : > { %5033 = vrsqrt.f32 %v3569_v46 }
 0x790   : > { %v3642_v7 = vpack.c.bf16 %v3635_v29, %v3634_v22  ;;  %v3617_v24 = vpop.permute.xlu1 %3616  ;;  %v4897_v22 = vld [vmem:[%s7070_s15 + $0x58] sm:$0xff]  }
 0x791   : > { %v3637_v12 = vadd.f32 %v3617_v24, %v3597_v61  ;;  %v3619_v16 = vpop.permute.xlu0 %3618  ;;  %v4898_v29 = vld [vmem:[%s7070_s15 + $0x18] sm:$0xff]   ;;  %v4903_v24 = vld [vmem:[%s7070_s15 + $0x70] sm:$0xff]  }
 0x792   : > { %4494 = vmatmul.mubr.msk.bf16.vlgmr.msra.gmra.mrb[24].mxu1 %vm2636_vm14, %v3642_v7  ;;  %v4902_v7 = vld [vmem:[%s7070_s15 + $0x28] sm:$0xff]   ;;  %v4905_v61 = vld [vmem:[%s7070_s15 + $0x78] sm:$0xff]  }
 0x793   : > { %3760 = vmatprep.mubr.bf16.mxu1 %v5212_v49  ;;  %v5028_v2 = vpop.eup %5027  ;;  %v3643_v4 = vpack.c.bf16 %v3637_v12, %v3636_v18  ;;  %v3654_v12 = vld [vmem:[%s7071_s26] sm:$0x3] }
 0x794   : > { %v3621_v20 = vpop.permute.xlu1 %3620  ;;  %v3584_v39 = vmul.f32 %v5028_v2, %v6698_v28  ;;  %v4891_v28 = vld [vmem:[%s7070_s15 + $0x40] sm:$0xff]   ;;  %v6846_v2 = vrot.slane %v3654_v12, %v2942_v53  ;;  %v6850_v18 = vrot.slane %v3654_v12, %v2946_v58 }
 0x795   : > { %v3623_v46 = vpop.permute.xlu0 %3622  ;;  %4569 = vmatprep.subr.bf16.mxu0 %v4891_v28 }
 0x796   : > { %v3600_v44 = vmul.f32 %v3592_v54, %v3584_v39 }
 0x797   : > { %v5030_v13 = vpop.eup %5029 }
 0x798   : > { %v5032_v37 = vpop.eup %5031  ;;  %v3582_v63 = vmul.f32 %v5030_v13, %v6695_v50  ;;  %v3625_v40 = vpop.permute.xlu1 %3624  ;;  %v3640_v51 = vadd.f32 %v3623_v46, %v3600_v44 }
 0x799   : > { %v5034_v38 = vpop.eup %5033  ;;  %v3583_v31 = vmul.f32 %v5032_v37, %v6701_v60 }
 0x79a   : > { %v3598_v3 = vmul.f32 %v3590_v41, %v3582_v63  ;;  %4495 = vmatmul.mubr.msk.bf16.gmra.mrb[28].mxu1 %vm2636_vm14, %v3643_v4  ;;  %v3585_v55 = vmul.f32 %v5034_v38, %v6704_v21  ;;  %v4892_v21 = vld [vmem:[%s7070_s15] sm:$0xff]  }
 0x79b   : > { %v3599_v26 = vmul.f32 %v3591_v52, %v3583_v31  ;;  %3770 = vmatprep.mubr.bf16.mxu1 %v5212_v49  ;;  %4570 = vmatpush3.bf16.msra.mxu0 %v4892_v21 }
 0x79c   : > { %v3638_v50 = vadd.f32 %v3619_v16, %v3598_v3  ;;  %v3601_v5 = vmul.f32 %v3593_v36, %v3585_v55  ;;  %4571 = vmatprep.subr.bf16.mxu0 %v4893_v30 }
 0x79d   : > { %v3639_v60 = vadd.f32 %v3621_v20, %v3599_v26 }
 0x79e   : > { %v3641_v62 = vadd.f32 %v3625_v40, %v3601_v5 }
 0x79f   : > { %v3644_v47 = vpack.c.bf16 %v3639_v60, %v3638_v50 }
 0x7a0   : > { %v3645_v32 = vpack.c.bf16 %v3641_v62, %v3640_v51 }
 0x7a2   : > { %4496 = vmatmul.mubr.msk.bf16.gmra.mrb[32].mxu1 %vm2636_vm14, %v3644_v47 }
 0x7a3   : > { %3780 = vmatprep.mubr.bf16.mxu1 %v5212_v49  ;;  %v4894_v49 = vld [vmem:[%s7070_s15 + $0x8] sm:$0xff]  }
 0x7a4   : > { %4572 = vmatpush3.bf16.msra.mxu0 %v4894_v49 }
 0x7a5   : > { %4573 = vmatprep.subr.bf16.mxu0 %v4895_v17 }
 0x7a8   : > { %4574 = vmatpush3.bf16.msra.mxu0 %v4896_v19 }
 0x7a9   : > { %4575 = vmatprep.subr.bf16.mxu0 %v4897_v22 }
 0x7aa   : > { %4497 = vmatmul.mubr.msk.bf16.gmra.mrb[36].mxu1 %vm2636_vm14, %v3645_v32 }
 0x7ac   : > { %4576 = vmatpush3.bf16.msra.mxu0 %v4898_v29 }
 0x7ad   : > { %4577 = vmatprep.subr.bf16.mxu0 %v4899_v35 }
 0x7b0   : > { %4578 = vmatpush3.bf16.msra.mxu0 %v4900_v8 }
 0x7b1   : > { %4579 = vmatprep.subr.bf16.mxu0 %v4901_v0 }
 0x7b4   : > { %4580 = vmatpush3.bf16.msra.mxu0 %v4902_v7 }
 0x7b5   : > { %4581 = vmatprep.subr.bf16.mxu0 %v4903_v24 }
 0x7b8   : > { %4582 = vmatpush3.bf16.msra.mxu0 %v4904_v42 }
 0x7b9   : > { %4583 = vmatprep.subr.bf16.mxu0 %v4905_v61 }
 0x7bc   : > { %4584 = vmatpush3.bf16.msra.mxu0 %v4906_v34 }
 0x865   : > { %v3752_v13 = vpop.f32.mrb[24].mxu1 }
 0x866   : > { %v3753_v37 = vadd.f32 %v3752_v13, %v6846_v2  ;;  %v3754_v41 = vpop.f32.mrb[25].mxu1 }
 0x867   : > { %v3755_v4 = vadd.f32 %v3754_v41, %v6850_v18  ;;  %v3756_v63 = vpop.f32.mrb[26].mxu1 }
 0x868   : > { %v3807_v38 = vmul.f32 0.044715, %v3753_v37  ;;  %v6855_v52 = vadd.f32 %v3756_v63, %v6846_v2  ;;  %v3758_v31 = vpop.f32.mrb[27].mxu1  ;;  %v3791_v41 = vmul.f32 0.5, %v3753_v37 }
 0x869   : > { %v3808_v3 = vmul.f32 0.044715, %v3755_v4  ;;  %v6858_v53 = vadd.f32 %v3758_v31, %v6850_v18 }
 0x86a   : > { %v3823_v16 = vmul.f32 %v3807_v38, %v3753_v37  ;;  %v3809_v23 = vmul.f32 0.044715, %v6855_v52 }
 0x86b   : > { %v3824_v58 = vmul.f32 %v3808_v3, %v3755_v4  ;;  %v3810_v20 = vmul.f32 0.044715, %v6858_v53 }
 0x86c   : > { %v3839_v26 = vmul.f32 %v3823_v16, %v3753_v37  ;;  %v3825_v50 = vmul.f32 %v3809_v23, %v6855_v52 }
 0x86d   : > { %v3840_v39 = vmul.f32 %v3824_v58, %v3755_v4  ;;  %v3826_v55 = vmul.f32 %v3810_v20, %v6858_v53  ;;  %v3762_v60 = vpop.f32.mrb[28].mxu1 }
 0x86e   : > { %v3855_v54 = vadd.f32 %v3839_v26, %v3753_v37  ;;  %v3841_v36 = vmul.f32 %v3825_v50, %v6855_v52  ;;  %v6866_v47 = vadd.f32 %v3762_v60, %v6846_v2  ;;  %v3764_v44 = vpop.f32.mrb[29].mxu1 }
 0x86f   : > { %v3842_v5 = vmul.f32 %v3826_v55, %v6858_v53  ;;  %v3765_v40 = vadd.f32 %v3764_v44, %v6850_v18  ;;  %v3766_v46 = vpop.f32.mrb[30].mxu1  ;;  %v3856_v51 = vadd.f32 %v3840_v39, %v3755_v4  ;;  %v3792_v39 = vmul.f32 0.5, %v3755_v4 }
 0x870   : > { %v3871_v62 = vmul.f32 0.7978846, %v3855_v54  ;;  %v3857_v32 = vadd.f32 %v3841_v36, %v6855_v52  ;;  %v3811_v28 = vmul.f32 0.044715, %v6866_v47  ;;  %v6873_v21 = vadd.f32 %v3766_v46, %v6846_v2  ;;  %v3768_v30 = vpop.f32.mrb[31].mxu1 }
 0x871   : > { %v3812_v49 = vmul.f32 0.044715, %v3765_v40  ;;  %v6876_v17 = vadd.f32 %v3768_v30, %v6850_v18  ;;  %v3858_v19 = vadd.f32 %v3842_v5, %v6858_v53  ;;  %v3872_v22 = vmul.f32 0.7978846, %v3856_v51 }
 0x872   : > { %5035 = vtanh.f32 %v3871_v62  ;;  %v3873_v29 = vmul.f32 0.7978846, %v3857_v32  ;;  %v3827_v35 = vmul.f32 %v3811_v28, %v6866_v47  ;;  %v3813_v8 = vmul.f32 0.044715, %v6873_v21 }
 0x873   : > { %v3828_v0 = vmul.f32 %v3812_v49, %v3765_v40  ;;  %v3814_v7 = vmul.f32 0.044715, %v6876_v17  ;;  %v3874_v24 = vmul.f32 0.7978846, %v3858_v19  ;;  %5037 = vtanh.f32 %v3872_v22 }
 0x874   : > { %5039 = vtanh.f32 %v3873_v29  ;;  %v3843_v42 = vmul.f32 %v3827_v35, %v6866_v47  ;;  %v3829_v61 = vmul.f32 %v3813_v8, %v6873_v21  ;;  %v3793_v49 = vmul.f32 0.5, %v6855_v52 }
 0x875   : > { %v3844_v34 = vmul.f32 %v3828_v0, %v3765_v40  ;;  %v3830_v12 = vmul.f32 %v3814_v7, %v6876_v17  ;;  %v3772_v13 = vpop.f32.mrb[32].mxu1  ;;  %5041 = vtanh.f32 %v3874_v24  ;;  %v3794_v22 = vmul.f32 0.5, %v6858_v53 }
 0x876   : > { %v3845_v63 = vmul.f32 %v3829_v61, %v6873_v21  ;;  %v6887_v38 = vadd.f32 %v3772_v13, %v6846_v2  ;;  %v3774_v31 = vpop.f32.mrb[33].mxu1  ;;  %v3859_v20 = vadd.f32 %v3843_v42, %v6866_v47  ;;  %v3796_v7 = vmul.f32 0.5, %v3765_v40 }
 0x877   : > { %v3846_v3 = vmul.f32 %v3830_v12, %v6876_v17  ;;  %v6891_v16 = vadd.f32 %v3774_v31, %v6850_v18  ;;  %v3776_v23 = vpop.f32.mrb[34].mxu1  ;;  %v3860_v58 = vadd.f32 %v3844_v34, %v3765_v40 }
 0x878   : > { %v3815_v26 = vmul.f32 0.044715, %v6887_v38  ;;  %v6896_v50 = vadd.f32 %v3776_v23, %v6846_v2  ;;  %v3778_v37 = vpop.f32.mrb[35].mxu1  ;;  %v3861_v55 = vadd.f32 %v3845_v63, %v6873_v21  ;;  %v3875_v51 = vmul.f32 0.7978846, %v3859_v20 }
 0x879   : > { %v3816_v60 = vmul.f32 0.044715, %v6891_v16  ;;  %v6901_v54 = vadd.f32 %v3778_v37, %v6850_v18  ;;  %v3862_v36 = vadd.f32 %v3846_v3, %v6876_v17  ;;  %v3876_v44 = vmul.f32 0.7978846, %v3860_v58 }
 0x87a   : > { %v3831_v5 = vmul.f32 %v3815_v26, %v6887_v38  ;;  %v3817_v46 = vmul.f32 0.044715, %v6896_v50  ;;  %v3877_v62 = vmul.f32 0.7978846, %v3861_v55 }
 0x87b   : > { %v3832_v32 = vmul.f32 %v3816_v60, %v6891_v16  ;;  %v3818_v4 = vmul.f32 0.044715, %v6901_v54  ;;  %v3878_v28 = vmul.f32 0.7978846, %v3862_v36  ;;  %5043 = vtanh.f32 %v3876_v44 }
 0x87c   : > { %v5036_v30 = vpop.eup %5035  ;;  %v3833_v19 = vmul.f32 %v3817_v46, %v6896_v50  ;;  %5045 = vtanh.f32 %v3875_v51  ;;  %v3847_v53 = vmul.f32 %v3831_v5, %v6887_v38 }
 0x87d   : > { %v5038_v29 = vpop.eup %5037  ;;  %v3834_v35 = vmul.f32 %v3818_v4, %v6901_v54  ;;  %v3782_v8 = vpop.f32.mrb[36].mxu1  ;;  %v3903_v0 = vadd.f32 1.0, %v5036_v30  ;;  %5047 = vtanh.f32 %v3878_v28  ;;  %v3848_v42 = vmul.f32 %v3832_v32, %v6891_v16 }
 0x87e   : > { %v5040_v24 = vpop.eup %5039  ;;  %v6914_v61 = vadd.f32 %v3782_v8, %v6846_v2  ;;  %v3784_v34 = vpop.f32.mrb[37].mxu1  ;;  %v3904_v52 = vadd.f32 1.0, %v5038_v29  ;;  %5049 = vtanh.f32 %v3877_v62  ;;  %v3849_v3 = vmul.f32 %v3833_v19, %v6896_v50 }
 0x87f   : > { %v5042_v12 = vpop.eup %5041  ;;  %v3850_v13 = vmul.f32 %v3834_v35, %v6901_v54  ;;  %v6919_v63 = vadd.f32 %v3784_v34, %v6850_v18  ;;  %v3786_v31 = vpop.f32.mrb[38].mxu1  ;;  %v3905_v40 = vadd.f32 1.0, %v5040_v24  ;;  %v3919_v60 = vmul.f32 %v3903_v0, %v3791_v41 }
 0x880   : > { %v3819_v23 = vmul.f32 0.044715, %v6914_v61  ;;  %v6924_v58 = vadd.f32 %v3786_v31, %v6846_v2  ;;  %v3788_v20 = vpop.f32.mrb[39].mxu1  ;;  %v3906_v26 = vadd.f32 1.0, %v5042_v12  ;;  %v3920_v5 = vmul.f32 %v3904_v52, %v3792_v39 }
 0x881   : > { %v3820_v37 = vmul.f32 0.044715, %v6919_v63  ;;  %v6928_v55 = vadd.f32 %v3788_v20, %v6850_v18  ;;  %v3921_v36 = vmul.f32 %v3905_v40, %v3793_v49  ;;  %v3864_v51 = vadd.f32 %v3848_v42, %v6891_v16 }
 0x882   : > { %v3821_v44 = vmul.f32 0.044715, %v6924_v58  ;;  %v3922_v46 = vmul.f32 %v3906_v26, %v3794_v22  ;;  %v3866_v4 = vadd.f32 %v3850_v13, %v6901_v54  ;;  %v3835_v28 = vmul.f32 %v3819_v23, %v6914_v61 }
 0x883   : > { %v3836_v62 = vmul.f32 %v3820_v37, %v6919_v63  ;;  %v3822_v2 = vmul.f32 0.044715, %v6928_v55  ;;  %v3935_v32 = vpack.c.bf16 %v3921_v36, %v3919_v60  ;;  %v3798_v18 = vmul.f32 0.5, %v6876_v17 }
 0x884   : > { %v3936_v30 = vpack.c.bf16 %v3922_v46, %v3920_v5  ;;  %v3880_v41 = vmul.f32 0.7978846, %v3864_v51  ;;  %v3837_v19 = vmul.f32 %v3821_v44, %v6924_v58  ;;  %v3795_v22 = vmul.f32 0.5, %v6866_v47 }
 0x885   : > { %v5044_v49 = vpop.eup %5043  ;;  %v3838_v39 = vmul.f32 %v3822_v2, %v6928_v55  ;;  %v3882_v29 = vmul.f32 0.7978846, %v3866_v4  ;;  %v3852_v8 = vmul.f32 %v3836_v62, %v6919_v63  ;;  %v3863_v24 = vadd.f32 %v3847_v53, %v6887_v38 }
 0x886   : > { %v5046_v35 = vpop.eup %5045  ;;  %4110 = vmatprep.mubr.bf16.mxu0 %v3936_v30  ;;  %v3908_v0 = vadd.f32 1.0, %v5044_v49  ;;  %5051 = vtanh.f32 %v3880_v41  ;;  %v3865_v52 = vadd.f32 %v3849_v3, %v6896_v50  ;;  %v3851_v47 = vmul.f32 %v3835_v28, %v6914_v61 }
 0x887   : > { %v5048_v42 = vpop.eup %5047  ;;  %v3854_v17 = vmul.f32 %v3838_v39, %v6928_v55  ;;  %4111 = vmatmul.mubr.bf16.vlgmr.msra.gmra.mrb[32].mxu0 %v3935_v32  ;;  %v3907_v34 = vadd.f32 1.0, %v5046_v35  ;;  %5053 = vtanh.f32 %v3882_v29  ;;  %v3797_v31 = vmul.f32 0.5, %v6873_v21 }
 0x888   : > { %v5050_v12 = vpop.eup %5049  ;;  %v3910_v13 = vadd.f32 1.0, %v5048_v42  ;;  %v3879_v40 = vmul.f32 0.7978846, %v3863_v24  ;;  %v3853_v23 = vmul.f32 %v3837_v19, %v6924_v58  ;;  %v3924_v20 = vmul.f32 %v3908_v0, %v3796_v7 }
 0x889   : > { %v3909_v26 = vadd.f32 1.0, %v5050_v12  ;;  %v3881_v53 = vmul.f32 0.7978846, %v3865_v52  ;;  %v3868_v60 = vadd.f32 %v3852_v8, %v6919_v63  ;;  %v3870_v36 = vadd.f32 %v3854_v17, %v6928_v55 }
 0x88a   : > { %v3926_v37 = vmul.f32 %v3910_v13, %v3798_v18  ;;  %5055 = vtanh.f32 %v3879_v40  ;;  %v3923_v44 = vmul.f32 %v3907_v34, %v3795_v22  ;;  %v3867_v21 = vadd.f32 %v3851_v47, %v6914_v61 }
 0x88b   : > { %v3925_v3 = vmul.f32 %v3909_v26, %v3797_v31  ;;  %5057 = vtanh.f32 %v3881_v53  ;;  %v3884_v46 = vmul.f32 0.7978846, %v3868_v60  ;;  %v3886_v51 = vmul.f32 0.7978846, %v3870_v36 }
 0x88c   : > { %v3938_v5 = vpack.c.bf16 %v3926_v37, %v3924_v20  ;;  %v3869_v2 = vadd.f32 %v3853_v23, %v6924_v58  ;;  %v3883_v7 = vmul.f32 0.7978846, %v3867_v21  ;;  %v3800_v18 = vmul.f32 0.5, %v6891_v16 }
 0x88d   : > { %v3937_v62 = vpack.c.bf16 %v3925_v3, %v3923_v44  ;;  %5059 = vtanh.f32 %v3884_v46  ;;  %v3802_v41 = vmul.f32 0.5, %v6901_v54  ;;  %v3799_v0 = vmul.f32 0.5, %v6887_v38 }
 0x88e   : > { %4118 = vmatprep.mubr.bf16.mxu0 %v3938_v5  ;;  %5061 = vtanh.f32 %v3886_v51  ;;  %v3885_v32 = vmul.f32 0.7978846, %v3869_v2  ;;  %v3801_v24 = vmul.f32 0.5, %v6896_v50  ;;  %v3804_v13 = vmul.f32 0.5, %v6919_v63 }
 0x88f   : > { %4119 = vmatmul.mubr.bf16.gmra.mrb[36].mxu0 %v3937_v62  ;;  %5063 = vtanh.f32 %v3883_v7  ;;  %v3806_v31 = vmul.f32 0.5, %v6928_v55  ;;  %v3803_v20 = vmul.f32 0.5, %v6914_v61  ;;  %v3805_v53 = vmul.f32 0.5, %v6924_v58  ;;  %v4498_v55 = vld [vmem:[%s7072_s17] ss:$0 sm:$0xff] }
 0x890   : > { %v5052_v4 = vpop.eup %5051  ;;  %5065 = vtanh.f32 %v3885_v32 }
 0x891   : > { %v5054_v28 = vpop.eup %5053  ;;  %v3912_v30 = vadd.f32 1.0, %v5052_v4 }
 0x892   : > { %v3914_v49 = vadd.f32 1.0, %v5054_v28 }
 0x893   : > { %v3928_v39 = vmul.f32 %v3912_v30, %v3800_v18 }
 0x894   : > { %v5056_v19 = vpop.eup %5055  ;;  %v3930_v22 = vmul.f32 %v3914_v49, %v3802_v41 }
 0x895   : > { %v5058_v29 = vpop.eup %5057  ;;  %v3911_v35 = vadd.f32 1.0, %v5056_v19 }
 0x896   : > { %v3940_v8 = vpack.c.bf16 %v3930_v22, %v3928_v39  ;;  %v3913_v42 = vadd.f32 1.0, %v5058_v29 }
 0x897   : > { %v5060_v17 = vpop.eup %5059  ;;  %v3927_v34 = vmul.f32 %v3911_v35, %v3799_v0 }
 0x898   : > { %4126 = vmatprep.mubr.bf16.mxu0 %v3940_v8  ;;  %v3929_v52 = vmul.f32 %v3913_v42, %v3801_v24  ;;  %v5062_v12 = vpop.eup %5061  ;;  %v3916_v16 = vadd.f32 1.0, %v5060_v17 }
 0x899   : > { %v5064_v47 = vpop.eup %5063  ;;  %v3918_v40 = vadd.f32 1.0, %v5062_v12 }
 0x89a   : > { %v3939_v54 = vpack.c.bf16 %v3929_v52, %v3927_v34  ;;  %v5066_v23 = vpop.eup %5065  ;;  %v3915_v38 = vadd.f32 1.0, %v5064_v47  ;;  %v3932_v50 = vmul.f32 %v3916_v16, %v3804_v13 }
 0x89b   : > { %v3934_v26 = vmul.f32 %v3918_v40, %v3806_v31  ;;  %v3917_v37 = vadd.f32 1.0, %v5066_v23 }
 0x89c   : > { %4127 = vmatmul.mubr.bf16.gmra.mrb[40].mxu0 %v3939_v54  ;;  %v3931_v36 = vmul.f32 %v3915_v38, %v3803_v20 }
 0x89d   : > { %v3942_v60 = vpack.c.bf16 %v3934_v26, %v3932_v50  ;;  %v3933_v44 = vmul.f32 %v3917_v37, %v3805_v53 }
 0x89f   : > { %4134 = vmatprep.mubr.bf16.mxu0 %v3942_v60  ;;  %v3941_v3 = vpack.c.bf16 %v3933_v44, %v3931_v36 }
 0x8a4   : > { %4135 = vmatmul.mubr.bf16.gmra.mrb[44].mxu0 %v3941_v3 }
 0x95a   : > { %v4585_v63 = vpop.f32.mrb[32].mxu0 }
 0x95b   : > { %v4586_v5 = vpop.f32.mrb[33].mxu0 }
 0x95c   : > { %v4587_v61 = vadd.f32 %v4586_v5, %v4585_v63  ;;  %v4588_v46 = vpop.f32.mrb[34].mxu0 }
 0x95d   : > { %v4589_v51 = vpop.f32.mrb[35].mxu0 }
 0x95e   : > { %v4113_v21 = vadd.f32 %v4587_v61, %v4498_v55  ;;  %v4590_v62 = vadd.f32 %v4589_v51, %v4588_v46 }
 0x960   : > { %v4116_v2 = vadd.f32 %v4590_v62, %v4498_v55  ;;  %4151 = vrot.lane.b32.xlu0 %v4113_v21, %s5213_s19 }
 0x962   : > { %v4591_v58 = vpop.f32.mrb[36].mxu0  ;;  %4153 = vrot.lane.b32.xlu1 %v4116_v2, %s5213_s19 }
 0x963   : > { %v4592_v7 = vpop.f32.mrb[37].mxu0 }
 0x964   : > { %v4593_v32 = vadd.f32 %v4592_v7, %v4591_v58  ;;  %v4594_v4 = vpop.f32.mrb[38].mxu0 }
 0x965   : > { %v4595_v28 = vpop.f32.mrb[39].mxu0 }
 0x966   : > { %v4121_v30 = vadd.f32 %v4593_v32, %v4498_v55  ;;  %v4596_v18 = vadd.f32 %v4595_v28, %v4594_v4 }
 0x968   : > { %v4124_v41 = vadd.f32 %v4596_v18, %v4498_v55  ;;  %4155 = vrot.lane.b32.xlu0 %v4121_v30, %s5213_s19 }
 0x96a   : > { %4157 = vrot.lane.b32.xlu1 %v4124_v41, %s5213_s19 }
 0x96f   : > { %v4597_v49 = vpop.f32.mrb[40].mxu0 }
 0x970   : > { %v4598_v19 = vpop.f32.mrb[41].mxu0 }
 0x971   : > { %v4599_v39 = vadd.f32 %v4598_v19, %v4597_v49  ;;  %v4600_v22 = vpop.f32.mrb[42].mxu0 }
 0x972   : > { %v4601_v29 = vpop.f32.mrb[43].mxu0 }
 0x973   : > { %v4129_v35 = vadd.f32 %v4599_v39, %v4498_v55  ;;  %v4602_v8 = vadd.f32 %v4601_v29, %v4600_v22 }
 0x975   : > { %v4132_v0 = vadd.f32 %v4602_v8, %v4498_v55  ;;  %4159 = vrot.lane.b32.xlu0 %v4129_v35, %s5213_s19 }
 0x977   : > { %4161 = vrot.lane.b32.xlu1 %v4132_v0, %s5213_s19  ;;  %v4603_v24 = vpop.f32.mrb[44].mxu0 }
 0x978   : > { %v4604_v42 = vpop.f32.mrb[45].mxu0 }
 0x979   : > { %v4605_v17 = vadd.f32 %v4604_v42, %v4603_v24  ;;  %v4606_v34 = vpop.f32.mrb[46].mxu0 }
 0x97a   : > { %v4607_v52 = vpop.f32.mrb[47].mxu0 }
 0x97b   : > { %v4137_v12 = vadd.f32 %v4605_v17, %v4498_v55  ;;  %v4608_v16 = vadd.f32 %v4607_v52, %v4606_v34 }
 0x97d   : > { %v4140_v47 = vadd.f32 %v4608_v16, %v4498_v55  ;;  %4163 = vrot.lane.b32.xlu0 %v4137_v12, %s5213_s19 }
 0x97f   : > { %4165 = vrot.lane.b32.xlu1 %v4140_v47, %s5213_s19 }
 0x9d2   : > { %v4152_v54 = vpop.permute.xlu0 %4151 }
 0x9d3   : > { %v4175_v13 = vmul.f32 %v4152_v54, %v6747_v6 }
 0x9d4   : > { %v4154_v31 = vpop.permute.xlu1 %4153 }
 0x9d5   : > { %v4176_v40 = vmul.f32 %v4154_v31, %v6750_v48  ;;  %4191 = vrot.lane.b32.xlu0 %v4175_v13, %s5213_s19 }
 0x9d7   : > { %4193 = vrot.lane.b32.xlu1 %v4176_v40, %s5213_s19 }
 0x9da   : > { %v4156_v23 = vpop.permute.xlu0 %4155 }
 0x9db   : > { %v4177_v20 = vmul.f32 %v4156_v23, %v6760_v43 }
 0x9dc   : > { %v4158_v38 = vpop.permute.xlu1 %4157 }
 0x9dd   : > { %v4178_v50 = vmul.f32 %v4158_v38, %v6757_v14  ;;  %4195 = vrot.lane.b32.xlu0 %v4177_v20, %s5213_s19 }
 0x9df   : > { %4197 = vrot.lane.b32.xlu1 %v4178_v50, %s5213_s19 }
 0x9e7   : > { %v4160_v26 = vpop.permute.xlu0 %4159 }
 0x9e8   : > { %v4179_v6 = vmul.f32 %v4160_v26, %v6769_v9 }
 0x9e9   : > { %v4162_v53 = vpop.permute.xlu1 %4161 }
 0x9ea   : > { %v4180_v48 = vmul.f32 %v4162_v53, %v6772_v56  ;;  %4199 = vrot.lane.b32.xlu0 %v4179_v6, %s5213_s19 }
 0x9ec   : > { %4201 = vrot.lane.b32.xlu1 %v4180_v48, %s5213_s19 }
 0x9ef   : > { %v4164_v37 = vpop.permute.xlu0 %4163 }
 0x9f0   : > { %v4181_v43 = vmul.f32 %v4164_v37, %v6779_v45 }
 0x9f1   : > { %v4166_v60 = vpop.permute.xlu1 %4165 }
 0x9f2   : > { %v4182_v14 = vmul.f32 %v4166_v60, %v6782_v57  ;;  %4203 = vrot.lane.b32.xlu0 %v4181_v43, %s5213_s19 }
 0x9f4   : > { %4205 = vrot.lane.b32.xlu1 %v4182_v14, %s5213_s19 }
 0xa47   : > { %v4192_v9 = vpop.permute.xlu0 %4191 }
 0xa48   : > { %v4215_v56 = vadd.f32 %v4192_v9, %v6595_v25 }
 0xa49   : > { %v4194_v36 = vpop.permute.xlu1 %4193 }
 0xa4a   : > { %4223 = vst.msk [vmem:[%s605_s23] sm:$0xff] %vm2636_vm14, %v4215_v56  ;;  %v4216_v45 = vadd.f32 %v4194_v36, %v6605_v27 }
 0xa4c   : > { %4224 = vst.msk [vmem:[%s605_s23 + $0x8] sm:$0xff] %vm2636_vm14, %v4216_v45 }
 0xa4f   : > { %v4196_v57 = vpop.permute.xlu0 %4195 }
 0xa50   : > { %v4217_v44 = vadd.f32 %v4196_v57, %v6602_v11 }
 0xa51   : > { %v4198_v3 = vpop.permute.xlu1 %4197 }
 0xa52   : > { %4225 = vst.msk [vmem:[%s605_s23 + $0x10] sm:$0xff] %vm2636_vm14, %v4217_v44  ;;  %v4218_v63 = vadd.f32 %v4198_v3, %v6612_v33 }
 0xa54   : > { %4226 = vst.msk [vmem:[%s605_s23 + $0x18] sm:$0xff] %vm2636_vm14, %v4218_v63 }
 0xa5c   : > { %v4200_v55 = vpop.permute.xlu0 %4199 }
 0xa5d   : > { %v4219_v25 = vadd.f32 %v4200_v55, %v6637_v15 }
 0xa5e   : > { %v4202_v5 = vpop.permute.xlu1 %4201 }
 0xa5f   : > { %4227 = vst.msk [vmem:[%s605_s23 + $0x20] sm:$0xff] %vm2636_vm14, %v4219_v25  ;;  %v4220_v27 = vadd.f32 %v4202_v5, %v6640_v59 }
 0xa61   : > { %4228 = vst.msk [vmem:[%s605_s23 + $0x28] sm:$0xff] %vm2636_vm14, %v4220_v27 }
 0xa64   : > { %v4204_v61 = vpop.permute.xlu0 %4203 }
 0xa65   : > { %v4221_v11 = vadd.f32 %v4204_v61, %v6645_v10 }
 0xa66   : > { %v4206_v46 = vpop.permute.xlu1 %4205 }
 0xa67   : > { %4229 = vst.msk [vmem:[%s605_s23 + $0x30] sm:$0xff] %vm2636_vm14, %v4221_v11  ;;  %v4222_v33 = vadd.f32 %v4206_v46, %v6650_v1 }
 0xa69   : > { %4230 = vst.msk [vmem:[%s605_s23 + $0x38] sm:$0xff] %vm2636_vm14, %v4222_v33 }
 0xa6a PF: > { %s30_s24 = sadd.s32 1, %s5197_s24  }
 0xa6b   : > { %p27_p3 = scmp.ge.s32.totalorder %s30_s24, 4  }
 0xa6d   :  { %29 = sbr.rel (!%p27_p3) target bundleno = 10 (0xa), region = 135 }
 0xa74   :  { %4253 = vsyncpa [#allocation3], 1 }
 0xa75   :  { %4255 = vsyncpa [#allocation3 + $0x1], 1 }
 0xa76   :  { %4256 = vsyncpa [#allocation5], 1 }
 0xa77   :  { %4257 = vsyncpa [#allocation8], 1 }

</bundles_post_ra>
